<compile_context>
chip_gen: v7x
topology: tpu7x:2x2x1
jax: 0.10.0
libtpu: 0.0.40
codegen_flags: <defaults>
</compile_context>

<pallas_src>
import functools

import jax
import jax.numpy as jnp
from jax.experimental import pallas as pl
from jax.experimental.pallas import tpu as pltpu


_PHASES = ((0, 0), (0, 1), (1, 0), (1, 1))   # output sub-pixel phase (py, px)
_TAPS = ((0, 0), (0, 1), (1, 0), (1, 1))     # 2x2 tap offsets (dy, dx)

_VMEM_LIMIT = 40 * 1024 * 1024               # scoped-VMEM override (all gens)
_VMEM_BUDGET = 20 * 1024 * 1024              # per-grid-step working-set target


def _round_up(x, m):
    return (x + m - 1) // m * m


# --------------------- initial layer: small dense matmul ---------------------

def _dense_kernel(a_ref, b_ref, o_ref):
    o_ref[...] = jnp.dot(a_ref[...], b_ref[...],
                         preferred_element_type=jnp.float32).astype(o_ref.dtype)


def dense_matmul(a, b):
    """(M,K)@(K,N) -> f32 with everything VMEM-resident (M = batch, tiny)."""
    M, K = a.shape
    K2, N = b.shape
    assert K == K2
    Kp = _round_up(K, 128)
    a_p = jnp.pad(a.astype(jnp.bfloat16), ((0, 0), (0, Kp - K)))
    b_p = jnp.pad(b.astype(jnp.bfloat16), ((0, Kp - K), (0, 0)))
    return pl.pallas_call(
        _dense_kernel,
        out_shape=jax.ShapeDtypeStruct((M, N), jnp.float32),
        grid_spec=pltpu.PrefetchScalarGridSpec(
            num_scalar_prefetch=0,
            grid=(1,),
            in_specs=[pl.BlockSpec((M, Kp), lambda i: (0, 0)),
                      pl.BlockSpec((Kp, N), lambda i: (0, 0))],
            out_specs=pl.BlockSpec((M, N), lambda i: (0, 0))),
        compiler_params=pltpu.CompilerParams(
            dimension_semantics=("arbitrary",),
            vmem_limit_bytes=_VMEM_LIMIT),
    )(a_p, b_p)


# ------- fused ConvTranspose2d(k=4, s=2, p=1) + partial-BN-stats kernel -------

def _convt_kernel(a_ref, b_ref, o_ref, sum_ref, sq_ref, acc_ref):
    """One M-tile of all 4 output phases + per-channel partial BN statistics.

    a_ref   : (9, tm, Ci) bf16   9-tap stack of the padded input image
    b_ref   : (4, 4, Ci, Co) bf16 per-(phase, tap) weights (grid-invariant)
    o_ref   : (4, tm, Co) bf16   phase outputs
    sum_ref : (1, 8, Co) f32     per-tile partial column sum (row 0 used)
    sq_ref  : (1, 8, Co) f32     per-tile partial column sum of squares
    acc_ref : (tm, Co)   f32     VMEM accumulator scratch
    """
    co = o_ref.shape[-1]
    col_sum = jnp.zeros((1, co), jnp.float32)
    col_sq = jnp.zeros((1, co), jnp.float32)
    for p, (py, px) in enumerate(_PHASES):
        for j, (dy, dx) in enumerate(_TAPS):
            t = (py + dy) * 3 + (px + dx)                    # static tap index
            contrib = jnp.dot(a_ref[t], b_ref[p, j],
                              preferred_element_type=jnp.float32)
            if j == 0:
                acc_ref[...] = contrib
            else:
                acc_ref[...] += contrib
        acc = acc_ref[...]
        o_ref[p] = acc.astype(o_ref.dtype)
        col_sum += jnp.sum(acc, axis=0, keepdims=True)
        col_sq += jnp.sum(acc * acc, axis=0, keepdims=True)
    sum_ref[...] = jnp.broadcast_to(col_sum[None], sum_ref.shape)
    sq_ref[...] = jnp.broadcast_to(col_sq[None], sq_ref.shape)


def _convt_tanh_kernel(a_ref, b_ref, o_ref, acc_ref):
    """Final layer: same conv, tanh fused into the epilogue, no BN stats."""
    for p, (py, px) in enumerate(_PHASES):
        for j, (dy, dx) in enumerate(_TAPS):
            t = (py + dy) * 3 + (px + dx)
            contrib = jnp.dot(a_ref[t], b_ref[p, j],
                              preferred_element_type=jnp.float32)
            if j == 0:
                acc_ref[...] = contrib
            else:
                acc_ref[...] += contrib
        o_ref[p] = jnp.tanh(acc_ref[...]).astype(o_ref.dtype)


def _pick_tile(M, Ci, Co, out_bytes):
    """Largest M-tile whose per-grid-step working set fits the VMEM budget."""
    fixed = 2 * 16 * Ci * Co * 2                      # resident weights (x2 buf)
    per_row = 2 * (9 * Ci * 2) + 2 * (4 * Co * out_bytes) + 4 * Co
    tm = 16
    for cand in (1024, 512, 256, 128, 64, 32, 16):
        if fixed + cand * per_row <= _VMEM_BUDGET:
            tm = cand
            break
    return min(tm, _round_up(M, 16))


def convt4x4s2(tap9, wb, *, tanh=False):
    """Phase-decomposed ConvTranspose2d(k=4, s=2, p=1) for one layer.

    tap9 : (9, M, Ci) bf16  tap t=(oy,ox) holds xpad[:, oy:oy+H, ox:ox+W, :]
                            flattened to rows (M = N*H*W, xpad = 1-padded input).
    wb   : (4, 4, Ci, Co)   weight matrix per (phase, tap).

    Returns (phases (4,M,Co) bf16, col_sum (Co,), col_sumsq (Co,)) or, for the
    tanh/final layer, just phases (4,M,Co) f32.
    """
    _, M, Ci = tap9.shape
    Co = wb.shape[-1]
    out_dtype = jnp.float32 if tanh else jnp.bfloat16
    out_bytes = 4 if tanh else 2
    tm = _pick_tile(M, Ci, Co, out_bytes)
    Mp = _round_up(M, tm)
    if Mp != M:
        tap9 = jnp.pad(tap9, ((0, 0), (0, Mp - M), (0, 0)))  # zero rows: exact
    n_tiles = Mp // tm

    in_specs = [pl.BlockSpec((9, tm, Ci), lambda i: (0, i, 0)),
                pl.BlockSpec((4, 4, Ci, Co), lambda i: (0, 0, 0, 0))]
    scratch = [pltpu.VMEM((tm, Co), jnp.float32)]
    cost = pl.CostEstimate(
        flops=2 * Mp * Ci * Co * 16,
        transcendentals=4 * Mp * Co if tanh else 0,
        bytes_accessed=9 * Mp * Ci * 2 + 16 * Ci * Co * 2 + 4 * Mp * Co * out_bytes)

    if tanh:
        kernel = _convt_tanh_kernel
        out_shape = jax.ShapeDtypeStruct((4, Mp, Co), out_dtype)
        out_specs = pl.BlockSpec((4, tm, Co), lambda i: (0, i, 0))
    else:
        kernel = _convt_kernel
        out_shape = (jax.ShapeDtypeStruct((4, Mp, Co), out_dtype),
                     jax.ShapeDtypeStruct((n_tiles, 8, Co), jnp.float32),
                     jax.ShapeDtypeStruct((n_tiles, 8, Co), jnp.float32))
        out_specs = [pl.BlockSpec((4, tm, Co), lambda i: (0, i, 0)),
                     pl.BlockSpec((1, 8, Co), lambda i: (i, 0, 0)),
                     pl.BlockSpec((1, 8, Co), lambda i: (i, 0, 0))]

    res = pl.pallas_call(
        kernel,
        out_shape=out_shape,
        grid_spec=pltpu.PrefetchScalarGridSpec(
            num_scalar_prefetch=0,
            grid=(n_tiles,),
            in_specs=in_specs,
            out_specs=out_specs,
            scratch_shapes=scratch),
        compiler_params=pltpu.CompilerParams(
            dimension_semantics=("parallel",),
            vmem_limit_bytes=_VMEM_LIMIT),
        cost_estimate=cost,
    )(tap9.astype(jnp.bfloat16), wb.astype(jnp.bfloat16))

    if tanh:
        return res[:, :M]
    phases, psum, psq = res
    return (phases[:, :M],
            jnp.sum(psum[:, 0, :], axis=0),
            jnp.sum(psq[:, 0, :], axis=0))


# ----------------------- XLA layout glue between layers -----------------------

def _image_to_tap9(img):
    """(N,H,W,C) activated image -> (9, N*H*W, C) bf16 tap stack of its 1-pad."""
    N, H, W, C = img.shape
    xpad = jnp.pad(img, ((0, 0), (1, 1), (1, 1), (0, 0)))
    taps = [xpad[:, oy:oy + H, ox:ox + W, :].reshape(N * H * W, C)
            for oy in range(3) for ox in range(3)]
    return jnp.stack(taps, axis=0).astype(jnp.bfloat16)


def _interleave_phases(phases, N, H, W):
    """(4, N*H*W, C) phase slabs [(py,px) row-major] -> (N, 2H, 2W, C) image."""
    C = phases.shape[-1]
    p = phases.reshape(4, N, H, W, C)
    row0 = jnp.stack([p[0], p[1]], axis=3)            # px interleave
    row1 = jnp.stack([p[2], p[3]], axis=3)
    return jnp.stack([row0, row1], axis=2).reshape(N, 2 * H, 2 * W, C)


def _bn_scale_shift(total, total_sq, count, gamma, beta, eps=1e-5):
    # training-mode BatchNorm2d: biased variance, f32.  E[x^2]-E[x]^2 is fine
    # at the bf16-level tolerance used here (switch to two-pass if tightened).
    mean = total / count
    var = total_sq / count - mean * mean
    scale = gamma * jax.lax.rsqrt(var + eps)
    shift = beta - mean * scale
    return scale, shift


def _bn_relu_phases_to_tap9(phases, scale, shift, N, H, W):
    """BN(affine)+ReLU the raw conv phases, interleave, build next tap stack.

    The elementwise BN apply / ReLU is deliberately left to XLA so it fuses
    into this (unavoidable) layout pass instead of costing an extra HBM round
    trip as a standalone kernel; the BN *statistics* were already produced by
    the Pallas conv kernel.
    """
    y = jnp.maximum(phases.astype(jnp.float32) * scale + shift, 0.0)
    img = _interleave_phases(y.astype(jnp.bfloat16), N, H, W)
    return _image_to_tap9(img)


def _phase_weights(w):
    """(Ci, Co, 4, 4) ConvTranspose2d weight -> (phase, tap, Ci, Co) matrices.

    out[n, 2m+py, 2l+px, :] = sum_{dy,dx in {0,1}}
        xpad[n, m+py+dy, l+px+dx, :] @ w[:, :, 3-py-2dy, 3-px-2dx]
    """
    rows = []
    for py, px in _PHASES:
        rows.append(jnp.stack(
            [w[:, :, 3 - py - 2 * dy, 3 - px - 2 * dx] for dy, dx in _TAPS],
            axis=0))
    return jnp.stack(rows, axis=0)


# --------------------------------- DCGAN_G ------------------------------------

class DCGANGenerator:
    """Forward-pass equivalent of DCGAN_G (ConvT+BN+ReLU pyramid, final Tanh)."""

    def __init__(self, isize, nz, nc, ngf, key, n_extra_layers=0):
        assert isize % 16 == 0, "isize has to be a multiple of 16"
        # TODO(synk): n_extra_layers > 0 (extra 3x3 Conv+BN+ReLU blocks) not
        # implemented; the reference configuration uses n_extra_layers = 0.
        assert n_extra_layers == 0
        cngf, tisize = ngf // 2, 4
        while tisize != isize:
            cngf *= 2
            tisize *= 2
        keys = iter(jax.random.split(key, 64))
        self.nz, self.nc, self.isize = nz, nc, isize

        w0 = 0.02 * jax.random.normal(next(keys), (nz, cngf, 4, 4), jnp.float32)
        self.initial = dict(
            w=w0,
            # columns ordered (ky, kx, co): matmul output reshapes straight to NHWC.
            w_mat=w0.transpose(0, 2, 3, 1).reshape(nz, 16 * cngf),
            gamma=1.0 + 0.1 * jax.random.normal(next(keys), (cngf,), jnp.float32),
            beta=0.1 * jax.random.normal(next(keys), (cngf,), jnp.float32))

        self.pyramid = []
        csize = 4
        while csize < isize // 2:
            w = 0.02 * jax.random.normal(next(keys), (cngf, cngf // 2, 4, 4),
                                         jnp.float32)
            self.pyramid.append(dict(
                w=w,
                wb=_phase_weights(w).astype(jnp.bfloat16),
                gamma=1.0 + 0.1 * jax.random.normal(next(keys), (cngf // 2,),
                                                    jnp.float32),
                beta=0.1 * jax.random.normal(next(keys), (cngf // 2,),
                                             jnp.float32)))
            cngf //= 2
            csize *= 2

        wf = 0.02 * jax.random.normal(next(keys), (cngf, nc, 4, 4), jnp.float32)
        self.final = dict(w=wf, wb=_phase_weights(wf).astype(jnp.bfloat16))

    def __call__(self, z):
        # z: (N, nz, 1, 1) NCHW at the network boundary.
        N = z.shape[0]
        cngf0 = self.initial["w"].shape[1]

        # initial ConvT(nz -> cngf, 4, 1, 0) from a 1x1 latent == dense matmul.
        y0 = dense_matmul(z.reshape(N, self.nz), self.initial["w_mat"])
        rows = y0.reshape(N * 16, cngf0)               # rows (n, ky, kx), channel-last
        # Initial-layer BatchNorm: tiny (N*16, cngf) tensor, stats in plain f32
        # JAX; apply + ReLU fuses into the tap-stack build below.
        scale, shift = _bn_scale_shift(
            jnp.sum(rows, axis=0), jnp.sum(rows * rows, axis=0), rows.shape[0],
            self.initial["gamma"], self.initial["beta"])
        act = jnp.maximum(rows * scale + shift, 0.0).astype(jnp.bfloat16)
        tap9 = _image_to_tap9(act.reshape(N, 4, 4, cngf0))

        H = 4
        for layer in self.pyramid:
            # ConvT(k=4,s=2,p=1) + fused per-channel BN statistics (Pallas).
            phases, psum, psq = convt4x4s2(tap9, layer["wb"])
            scale, shift = _bn_scale_shift(psum, psq, 4 * N * H * H,
                                           layer["gamma"], layer["beta"])
            # BN apply + ReLU folded into the next layer's tap-stack build.
            tap9 = _bn_relu_phases_to_tap9(phases, scale, shift, N, H, H)
            H *= 2

        # final ConvT(k=4,s=2,p=1) with tanh fused into the kernel epilogue.
        phases = convt4x4s2(tap9, self.final["wb"], tanh=True)
        img = _interleave_phases(phases, N, H, H)      # (N, isize, isize, nc)
        return img.transpose(0, 3, 1, 2)               # NCHW at the boundary


# ------------------------------ pure-JAX reference ----------------------------

def _ref_conv_transpose(x, w, stride, padding):
    k = w.shape[-1]
    w_t = jnp.flip(w, axis=(2, 3)).transpose(1, 0, 2, 3)   # (Co, Ci, k, k)
    return jax.lax.conv_general_dilated(
        x, w_t, window_strides=(1, 1),
        padding=[(k - 1 - padding, k - 1 - padding)] * 2,
        lhs_dilation=(stride, stride),
        dimension_numbers=("NCHW", "OIHW", "NCHW"))


def _ref_bn_relu(x, gamma, beta):
    mean = x.mean(axis=(0, 2, 3), keepdims=True)
    var = ((x - mean) ** 2).mean(axis=(0, 2, 3), keepdims=True)
    xn = (x - mean) / jnp.sqrt(var + 1e-5)
    return jnp.maximum(xn * gamma[None, :, None, None]
                       + beta[None, :, None, None], 0.0)


if __name__ == "__main__":
    key = jax.random.PRNGKey(0)
    kp, kz = jax.random.split(key)
    # small shapes consistent with DCGAN_G (isize must be a multiple of 16)
    isize, nz, nc, ngf, batch = 16, 8, 3, 8, 2
    model = DCGANGenerator(isize, nz, nc, ngf, kp)
    z = jax.random.normal(kz, (batch, nz, 1, 1), jnp.float32)

    forward = jax.jit(functools.partial(DCGANGenerator.__call__, model))
    out = jax.block_until_ready(forward(z))
    assert out.shape == (batch, nc, isize, isize), out.shape

    # cross-check against a pure-JAX (XLA conv, f32) reference
    x = z
    x = _ref_conv_transpose(x, model.initial["w"], 1, 0)
    x = _ref_bn_relu(x, model.initial["gamma"], model.initial["beta"])
    for layer in model.pyramid:
        x = _ref_conv_transpose(x, layer["w"], 2, 1)
        x = _ref_bn_relu(x, layer["gamma"], layer["beta"])
    x = jnp.tanh(_ref_conv_transpose(x, model.final["w"], 2, 1))

    max_err = float(jnp.max(jnp.abs(out - x)))
    # bf16 MXU inputs + bf16 inter-layer activations vs an f32 reference:
    # compare at bf16-level tolerance.
    assert jnp.allclose(out, x, atol=2e-2, rtol=2e-2), max_err
    print("KERNEL_OK")
</pallas_src>

<mosaic_0001>
module attributes {stable_mosaic.version = 11 : i64} {
  func.func @_dense_kernel(%arg0: i32, %arg1: memref<2x128xbf16, #tpu.memory_space<vmem>>, %arg2: memref<128x256xbf16, #tpu.memory_space<vmem>>, %arg3: memref<2x256xf32, #tpu.memory_space<vmem>>) attributes {dimension_semantics = [#tpu.dimension_semantics<arbitrary>], iteration_bounds = array<i64: 1>, scalar_prefetch = 0 : i64, scratch_operands = 0 : i64, tpu.core_type = #tpu.core_type<tc>, window_params = [{pipeline_mode = #tpu.pipeline_mode<synchronous>, transform_indices = @transform_0, window_bounds = array<i64: 2, 128>}, {pipeline_mode = #tpu.pipeline_mode<synchronous>, transform_indices = @transform_1, window_bounds = array<i64: 128, 256>}, {pipeline_mode = #tpu.pipeline_mode<synchronous>, transform_indices = @transform_2, window_bounds = array<i64: 2, 256>}]} {
    %c0 = arith.constant 0 : index
    %c0_0 = arith.constant 0 : index
    %0 = vector.load %arg1[%c0, %c0_0] : memref<2x128xbf16, #tpu.memory_space<vmem>>, vector<2x128xbf16>
    %c0_1 = arith.constant 0 : index
    %c0_2 = arith.constant 0 : index
    %1 = vector.load %arg2[%c0_1, %c0_2] : memref<128x256xbf16, #tpu.memory_space<vmem>>, vector<128x256xbf16>
    %cst = arith.constant dense<0.000000e+00> : vector<2x256xf32>
    %2 = tpu.matmul %0, %1, %cst {dimension_numbers = #tpu.dot_dimension_numbers<[1], [0], [0], [1], [0, 0, 1, 1], [], []>} : vector<2x128xbf16>, vector<128x256xbf16>, vector<2x256xf32> -> vector<2x256xf32>
    %c0_3 = arith.constant 0 : index
    %c0_4 = arith.constant 0 : index
    %3 = vector.load %arg3[%c0_3, %c0_4] : memref<2x256xf32, #tpu.memory_space<vmem>>, vector<2x256xf32>
    tpu.vector_store %arg3[%c0_3, %c0_4], %2 {strides = array<i32>} : memref<2x256xf32, #tpu.memory_space<vmem>>, vector<2x256xf32>,
    return
  }
  func.func @transform_0(%arg0: i32) -> (i32, i32) {
    %c0_i32 = arith.constant 0 : i32
    %c0_i32_0 = arith.constant 0 : i32
    %c0_i32_1 = arith.constant 0 : i32
    return %c0_i32, %c0_i32_0 : i32, i32
  }
  func.func @transform_1(%arg0: i32) -> (i32, i32) {
    %c0_i32 = arith.constant 0 : i32
    %c0_i32_0 = arith.constant 0 : i32
    %c0_i32_1 = arith.constant 0 : i32
    return %c0_i32, %c0_i32_0 : i32, i32
  }
  func.func @transform_2(%arg0: i32) -> (i32, i32) {
    %c0_i32 = arith.constant 0 : i32
    %c0_i32_0 = arith.constant 0 : i32
    %c0_i32_1 = arith.constant 0 : i32
    return %c0_i32, %c0_i32_0 : i32, i32
  }
}

module attributes {stable_mosaic.version = 11 : i64} {
  func.func @_convt_kernel(%arg0: i32, %arg1: memref<9x32x16xbf16, #tpu.memory_space<vmem>>, %arg2: memref<4x4x16x8xbf16, #tpu.memory_space<vmem>>, %arg3: memref<4x32x8xbf16, #tpu.memory_space<vmem>>, %arg4: memref<1x8x8xf32, #tpu.memory_space<vmem>>, %arg5: memref<1x8x8xf32, #tpu.memory_space<vmem>>, %arg6: memref<32x8xf32, #tpu.memory_space<vmem>>) attributes {dimension_semantics = [#tpu.dimension_semantics<parallel>], iteration_bounds = array<i64: 1>, scalar_prefetch = 0 : i64, scratch_operands = 1 : i64, tpu.core_type = #tpu.core_type<tc>, window_params = [{transform_indices = @transform_0, window_bounds = array<i64: 9, 32, 16>}, {pipeline_mode = #tpu.pipeline_mode<synchronous>, transform_indices = @transform_1, window_bounds = array<i64: 4, 4, 16, 8>}, {transform_indices = @transform_2, window_bounds = array<i64: 4, 32, 8>}, {transform_indices = @transform_3, window_bounds = array<i64: 1, 8, 8>}, {transform_indices = @transform_4, window_bounds = array<i64: 1, 8, 8>}]} {
    %cst = arith.constant 0.000000e+00 : f32
    %0 = vector.broadcast %cst : f32 to vector<1x8xf32>
    %cst_0 = arith.constant 0.000000e+00 : f32
    %1 = vector.broadcast %cst_0 : f32 to vector<1x8xf32>
    %c0 = arith.constant 0 : index
    %c0_1 = arith.constant 0 : index
    %c0_2 = arith.constant 0 : index
    %2 = vector.load %arg1[%c0, %c0_1, %c0_2] : memref<9x32x16xbf16, #tpu.memory_space<vmem>>, vector<1x32x16xbf16>
    %3 = vector.shape_cast %2 : vector<1x32x16xbf16> to vector<32x16xbf16>
    %c0_3 = arith.constant 0 : index
    %c0_4 = arith.constant 0 : index
    %c0_5 = arith.constant 0 : index
    %c0_6 = arith.constant 0 : index
    %4 = vector.load %arg2[%c0_3, %c0_4, %c0_5, %c0_6] : memref<4x4x16x8xbf16, #tpu.memory_space<vmem>>, vector<1x1x16x8xbf16>
    %5 = vector.shape_cast %4 : vector<1x1x16x8xbf16> to vector<16x8xbf16>
    %cst_7 = arith.constant dense<0.000000e+00> : vector<32x8xf32>
    %6 = tpu.matmul %3, %5, %cst_7 {dimension_numbers = #tpu.dot_dimension_numbers<[1], [0], [0], [1], [0, 0, 1, 1], [], []>} : vector<32x16xbf16>, vector<16x8xbf16>, vector<32x8xf32> -> vector<32x8xf32>
    %c0_8 = arith.constant 0 : index
    %c0_9 = arith.constant 0 : index
    %7 = vector.load %arg6[%c0_8, %c0_9] : memref<32x8xf32, #tpu.memory_space<vmem>>, vector<32x8xf32>
    tpu.vector_store %arg6[%c0_8, %c0_9], %6 {strides = array<i32>} : memref<32x8xf32, #tpu.memory_space<vmem>>, vector<32x8xf32>,
    %c1 = arith.constant 1 : index
    %c0_10 = arith.constant 0 : index
    %c0_11 = arith.constant 0 : index
    %8 = vector.load %arg1[%c1, %c0_10, %c0_11] : memref<9x32x16xbf16, #tpu.memory_space<vmem>>, vector<1x32x16xbf16>
    %9 = vector.shape_cast %8 : vector<1x32x16xbf16> to vector<32x16xbf16>
    %c0_12 = arith.constant 0 : index
    %c1_13 = arith.constant 1 : index
    %c0_14 = arith.constant 0 : index
    %c0_15 = arith.constant 0 : index
    %10 = vector.load %arg2[%c0_12, %c1_13, %c0_14, %c0_15] : memref<4x4x16x8xbf16, #tpu.memory_space<vmem>>, vector<1x1x16x8xbf16>
    %11 = vector.shape_cast %10 : vector<1x1x16x8xbf16> to vector<16x8xbf16>
    %cst_16 = arith.constant dense<0.000000e+00> : vector<32x8xf32>
    %12 = tpu.matmul %9, %11, %cst_16 {dimension_numbers = #tpu.dot_dimension_numbers<[1], [0], [0], [1], [0, 0, 1, 1], [], []>} : vector<32x16xbf16>, vector<16x8xbf16>, vector<32x8xf32> -> vector<32x8xf32>
    %c0_17 = arith.constant 0 : index
    %c0_18 = arith.constant 0 : index
    %13 = vector.load %arg6[%c0_17, %c0_18] : memref<32x8xf32, #tpu.memory_space<vmem>>, vector<32x8xf32>
    %14 = arith.addf %13, %12 : vector<32x8xf32>
    %c0_19 = arith.constant 0 : index
    %c0_20 = arith.constant 0 : index
    %15 = vector.load %arg6[%c0_19, %c0_20] : memref<32x8xf32, #tpu.memory_space<vmem>>, vector<32x8xf32>
    tpu.vector_store %arg6[%c0_19, %c0_20], %14 {strides = array<i32>} : memref<32x8xf32, #tpu.memory_space<vmem>>, vector<32x8xf32>,
    %c3 = arith.constant 3 : index
    %c0_21 = arith.constant 0 : index
    %c0_22 = arith.constant 0 : index
    %16 = vector.load %arg1[%c3, %c0_21, %c0_22] : memref<9x32x16xbf16, #tpu.memory_space<vmem>>, vector<1x32x16xbf16>
    %17 = vector.shape_cast %16 : vector<1x32x16xbf16> to vector<32x16xbf16>
    %c0_23 = arith.constant 0 : index
    %c2 = arith.constant 2 : index
    %c0_24 = arith.constant 0 : index
    %c0_25 = arith.constant 0 : index
    %18 = vector.load %arg2[%c0_23, %c2, %c0_24, %c0_25] : memref<4x4x16x8xbf16, #tpu.memory_space<vmem>>, vector<1x1x16x8xbf16>
    %19 = vector.shape_cast %18 : vector<1x1x16x8xbf16> to vector<16x8xbf16>
    %cst_26 = arith.constant dense<0.000000e+00> : vector<32x8xf32>
    %20 = tpu.matmul %17, %19, %cst_26 {dimension_numbers = #tpu.dot_dimension_numbers<[1], [0], [0], [1], [0, 0, 1, 1], [], []>} : vector<32x16xbf16>, vector<16x8xbf16>, vector<32x8xf32> -> vector<32x8xf32>
    %c0_27 = arith.constant 0 : index
    %c0_28 = arith.constant 0 : index
    %21 = vector.load %arg6[%c0_27, %c0_28] : memref<32x8xf32, #tpu.memory_space<vmem>>, vector<32x8xf32>
    %22 = arith.addf %21, %20 : vector<32x8xf32>
    %c0_29 = arith.constant 0 : index
    %c0_30 = arith.constant 0 : index
    %23 = vector.load %arg6[%c0_29, %c0_30] : memref<32x8xf32, #tpu.memory_space<vmem>>, vector<32x8xf32>
    tpu.vector_store %arg6[%c0_29, %c0_30], %22 {strides = array<i32>} : memref<32x8xf32, #tpu.memory_space<vmem>>, vector<32x8xf32>,
    %c4 = arith.constant 4 : index
    %c0_31 = arith.constant 0 : index
    %c0_32 = arith.constant 0 : index
    %24 = vector.load %arg1[%c4, %c0_31, %c0_32] : memref<9x32x16xbf16, #tpu.memory_space<vmem>>, vector<1x32x16xbf16>
    %25 = vector.shape_cast %24 : vector<1x32x16xbf16> to vector<32x16xbf16>
    %c0_33 = arith.constant 0 : index
    %c3_34 = arith.constant 3 : index
    %c0_35 = arith.constant 0 : index
    %c0_36 = arith.constant 0 : index
    %26 = vector.load %arg2[%c0_33, %c3_34, %c0_35, %c0_36] : memref<4x4x16x8xbf16, #tpu.memory_space<vmem>>, vector<1x1x16x8xbf16>
    %27 = vector.shape_cast %26 : vector<1x1x16x8xbf16> to vector<16x8xbf16>
    %cst_37 = arith.constant dense<0.000000e+00> : vector<32x8xf32>
    %28 = tpu.matmul %25, %27, %cst_37 {dimension_numbers = #tpu.dot_dimension_numbers<[1], [0], [0], [1], [0, 0, 1, 1], [], []>} : vector<32x16xbf16>, vector<16x8xbf16>, vector<32x8xf32> -> vector<32x8xf32>
    %c0_38 = arith.constant 0 : index
    %c0_39 = arith.constant 0 : index
    %29 = vector.load %arg6[%c0_38, %c0_39] : memref<32x8xf32, #tpu.memory_space<vmem>>, vector<32x8xf32>
    %30 = arith.addf %29, %28 : vector<32x8xf32>
    %c0_40 = arith.constant 0 : index
    %c0_41 = arith.constant 0 : index
    %31 = vector.load %arg6[%c0_40, %c0_41] : memref<32x8xf32, #tpu.memory_space<vmem>>, vector<32x8xf32>
    tpu.vector_store %arg6[%c0_40, %c0_41], %30 {strides = array<i32>} : memref<32x8xf32, #tpu.memory_space<vmem>>, vector<32x8xf32>,
    %c0_42 = arith.constant 0 : index
    %c0_43 = arith.constant 0 : index
    %32 = vector.load %arg6[%c0_42, %c0_43] : memref<32x8xf32, #tpu.memory_space<vmem>>, vector<32x8xf32>
    %33 = arith.truncf %32 : vector<32x8xf32> to vector<32x8xbf16>
    %c0_44 = arith.constant 0 : index
    %c0_45 = arith.constant 0 : index
    %c0_46 = arith.constant 0 : index
    %34 = vector.load %arg3[%c0_44, %c0_45, %c0_46] : memref<4x32x8xbf16, #tpu.memory_space<vmem>>, vector<1x32x8xbf16>
    %35 = vector.shape_cast %34 : vector<1x32x8xbf16> to vector<32x8xbf16>
    %36 = vector.shape_cast %33 : vector<32x8xbf16> to vector<1x32x8xbf16>
    tpu.vector_store %arg3[%c0_44, %c0_45, %c0_46], %36 {strides = array<i32>} : memref<4x32x8xbf16, #tpu.memory_space<vmem>>, vector<1x32x8xbf16>,
    %cst_47 = arith.constant dense<0.000000e+00> : vector<8xf32>
    %37 = vector.multi_reduction <add>, %32, %cst_47 [0] : vector<32x8xf32> to vector<8xf32>
    %38 = vector.shape_cast %37 : vector<8xf32> to vector<1x8xf32>
    %39 = arith.addf %0, %38 : vector<1x8xf32>
    %40 = arith.mulf %32, %32 : vector<32x8xf32>
    %cst_48 = arith.constant dense<0.000000e+00> : vector<8xf32>
    %41 = vector.multi_reduction <add>, %40, %cst_48 [0] : vector<32x8xf32> to vector<8xf32>
    %42 = vector.shape_cast %41 : vector<8xf32> to vector<1x8xf32>
    %43 = arith.addf %1, %42 : vector<1x8xf32>
    %c1_49 = arith.constant 1 : index
    %c0_50 = arith.constant 0 : index
    %c0_51 = arith.constant 0 : index
    %44 = vector.load %arg1[%c1_49, %c0_50, %c0_51] : memref<9x32x16xbf16, #tpu.memory_space<vmem>>, vector<1x32x16xbf16>
    %45 = vector.shape_cast %44 : vector<1x32x16xbf16> to vector<32x16xbf16>
    %c1_52 = arith.constant 1 : index
    %c0_53 = arith.constant 0 : index
    %c0_54 = arith.constant 0 : index
    %c0_55 = arith.constant 0 : index
    %46 = vector.load %arg2[%c1_52, %c0_53, %c0_54, %c0_55] : memref<4x4x16x8xbf16, #tpu.memory_space<vmem>>, vector<1x1x16x8xbf16>
    %47 = vector.shape_cast %46 : vector<1x1x16x8xbf16> to vector<16x8xbf16>
    %cst_56 = arith.constant dense<0.000000e+00> : vector<32x8xf32>
    %48 = tpu.matmul %45, %47, %cst_56 {dimension_numbers = #tpu.dot_dimension_numbers<[1], [0], [0], [1], [0, 0, 1, 1], [], []>} : vector<32x16xbf16>, vector<16x8xbf16>, vector<32x8xf32> -> vector<32x8xf32>
    %c0_57 = arith.constant 0 : index
    %c0_58 = arith.constant 0 : index
    %49 = vector.load %arg6[%c0_57, %c0_58] : memref<32x8xf32, #tpu.memory_space<vmem>>, vector<32x8xf32>
    tpu.vector_store %arg6[%c0_57, %c0_58], %48 {strides = array<i32>} : memref<32x8xf32, #tpu.memory_space<vmem>>, vector<32x8xf32>,
    %c2_59 = arith.constant 2 : index
    %c0_60 = arith.constant 0 : index
    %c0_61 = arith.constant 0 : index
    %50 = vector.load %arg1[%c2_59, %c0_60, %c0_61] : memref<9x32x16xbf16, #tpu.memory_space<vmem>>, vector<1x32x16xbf16>
    %51 = vector.shape_cast %50 : vector<1x32x16xbf16> to vector<32x16xbf16>
    %c1_62 = arith.constant 1 : index
    %c1_63 = arith.constant 1 : index
    %c0_64 = arith.constant 0 : index
    %c0_65 = arith.constant 0 : index
    %52 = vector.load %arg2[%c1_62, %c1_63, %c0_64, %c0_65] : memref<4x4x16x8xbf16, #tpu.memory_space<vmem>>, vector<1x1x16x8xbf16>
    %53 = vector.shape_cast %52 : vector<1x1x16x8xbf16> to vector<16x8xbf16>
    %cst_66 = arith.constant dense<0.000000e+00> : vector<32x8xf32>
    %54 = tpu.matmul %51, %53, %cst_66 {dimension_numbers = #tpu.dot_dimension_numbers<[1], [0], [0], [1], [0, 0, 1, 1], [], []>} : vector<32x16xbf16>, vector<16x8xbf16>, vector<32x8xf32> -> vector<32x8xf32>
    %c0_67 = arith.constant 0 : index
    %c0_68 = arith.constant 0 : index
    %55 = vector.load %arg6[%c0_67, %c0_68] : memref<32x8xf32, #tpu.memory_space<vmem>>, vector<32x8xf32>
    %56 = arith.addf %55, %54 : vector<32x8xf32>
    %c0_69 = arith.constant 0 : index
    %c0_70 = arith.constant 0 : index
    %57 = vector.load %arg6[%c0_69, %c0_70] : memref<32x8xf32, #tpu.memory_space<vmem>>, vector<32x8xf32>
    tpu.vector_store %arg6[%c0_69, %c0_70], %56 {strides = array<i32>} : memref<32x8xf32, #tpu.memory_space<vmem>>, vector<32x8xf32>,
    %c4_71 = arith.constant 4 : index
    %c0_72 = arith.constant 0 : index
    %c0_73 = arith.constant 0 : index
    %58 = vector.load %arg1[%c4_71, %c0_72, %c0_73] : memref<9x32x16xbf16, #tpu.memory_space<vmem>>, vector<1x32x16xbf16>
    %59 = vector.shape_cast %58 : vector<1x32x16xbf16> to vector<32x16xbf16>
    %c1_74 = arith.constant 1 : index
    %c2_75 = arith.constant 2 : index
    %c0_76 = arith.constant 0 : index
    %c0_77 = arith.constant 0 : index
    %60 = vector.load %arg2[%c1_74, %c2_75, %c0_76, %c0_77] : memref<4x4x16x8xbf16, #tpu.memory_space<vmem>>, vector<1x1x16x8xbf16>
    %61 = vector.shape_cast %60 : vector<1x1x16x8xbf16> to vector<16x8xbf16>
    %cst_78 = arith.constant dense<0.000000e+00> : vector<32x8xf32>
    %62 = tpu.matmul %59, %61, %cst_78 {dimension_numbers = #tpu.dot_dimension_numbers<[1], [0], [0], [1], [0, 0, 1, 1], [], []>} : vector<32x16xbf16>, vector<16x8xbf16>, vector<32x8xf32> -> vector<32x8xf32>
    %c0_79 = arith.constant 0 : index
    %c0_80 = arith.constant 0 : index
    %63 = vector.load %arg6[%c0_79, %c0_80] : memref<32x8xf32, #tpu.memory_space<vmem>>, vector<32x8xf32>
    %64 = arith.addf %63, %62 : vector<32x8xf32>
    %c0_81 = arith.constant 0 : index
    %c0_82 = arith.constant 0 : index
    %65 = vector.load %arg6[%c0_81, %c0_82] : memref<32x8xf32, #tpu.memory_space<vmem>>, vector<32x8xf32>
    tpu.vector_store %arg6[%c0_81, %c0_82], %64 {strides = array<i32>} : memref<32x8xf32, #tpu.memory_space<vmem>>, vector<32x8xf32>,
    %c5 = arith.constant 5 : index
    %c0_83 = arith.constant 0 : index
    %c0_84 = arith.constant 0 : index
    %66 = vector.load %arg1[%c5, %c0_83, %c0_84] : memref<9x32x16xbf16, #tpu.memory_space<vmem>>, vector<1x32x16xbf16>
    %67 = vector.shape_cast %66 : vector<1x32x16xbf16> to vector<32x16xbf16>
    %c1_85 = arith.constant 1 : index
    %c3_86 = arith.constant 3 : index
    %c0_87 = arith.constant 0 : index
    %c0_88 = arith.constant 0 : index
    %68 = vector.load %arg2[%c1_85, %c3_86, %c0_87, %c0_88] : memref<4x4x16x8xbf16, #tpu.memory_space<vmem>>, vector<1x1x16x8xbf16>
    %69 = vector.shape_cast %68 : vector<1x1x16x8xbf16> to vector<16x8xbf16>
    %cst_89 = arith.constant dense<0.000000e+00> : vector<32x8xf32>
    %70 = tpu.matmul %67, %69, %cst_89 {dimension_numbers = #tpu.dot_dimension_numbers<[1], [0], [0], [1], [0, 0, 1, 1], [], []>} : vector<32x16xbf16>, vector<16x8xbf16>, vector<32x8xf32> -> vector<32x8xf32>
    %c0_90 = arith.constant 0 : index
    %c0_91 = arith.constant 0 : index
    %71 = vector.load %arg6[%c0_90, %c0_91] : memref<32x8xf32, #tpu.memory_space<vmem>>, vector<32x8xf32>
    %72 = arith.addf %71, %70 : vector<32x8xf32>
    %c0_92 = arith.constant 0 : index
    %c0_93 = arith.constant 0 : index
    %73 = vector.load %arg6[%c0_92, %c0_93] : memref<32x8xf32, #tpu.memory_space<vmem>>, vector<32x8xf32>
    tpu.vector_store %arg6[%c0_92, %c0_93], %72 {strides = array<i32>} : memref<32x8xf32, #tpu.memory_space<vmem>>, vector<32x8xf32>,
    %c0_94 = arith.constant 0 : index
    %c0_95 = arith.constant 0 : index
    %74 = vector.load %arg6[%c0_94, %c0_95] : memref<32x8xf32, #tpu.memory_space<vmem>>, vector<32x8xf32>
    %75 = arith.truncf %74 : vector<32x8xf32> to vector<32x8xbf16>
    %c1_96 = arith.constant 1 : index
    %c0_97 = arith.constant 0 : index
    %c0_98 = arith.constant 0 : index
    %76 = vector.load %arg3[%c1_96, %c0_97, %c0_98] : memref<4x32x8xbf16, #tpu.memory_space<vmem>>, vector<1x32x8xbf16>
    %77 = vector.shape_cast %76 : vector<1x32x8xbf16> to vector<32x8xbf16>
    %78 = vector.shape_cast %75 : vector<32x8xbf16> to vector<1x32x8xbf16>
    tpu.vector_store %arg3[%c1_96, %c0_97, %c0_98], %78 {strides = array<i32>} : memref<4x32x8xbf16, #tpu.memory_space<vmem>>, vector<1x32x8xbf16>,
    %cst_99 = arith.constant dense<0.000000e+00> : vector<8xf32>
    %79 = vector.multi_reduction <add>, %74, %cst_99 [0] : vector<32x8xf32> to vector<8xf32>
    %80 = vector.shape_cast %79 : vector<8xf32> to vector<1x8xf32>
    %81 = arith.addf %39, %80 : vector<1x8xf32>
    %82 = arith.mulf %74, %74 : vector<32x8xf32>
    %cst_100 = arith.constant dense<0.000000e+00> : vector<8xf32>
    %83 = vector.multi_reduction <add>, %82, %cst_100 [0] : vector<32x8xf32> to vector<8xf32>
    %84 = vector.shape_cast %83 : vector<8xf32> to vector<1x8xf32>
    %85 = arith.addf %43, %84 : vector<1x8xf32>
    %c3_101 = arith.constant 3 : index
    %c0_102 = arith.constant 0 : index
    %c0_103 = arith.constant 0 : index
    %86 = vector.load %arg1[%c3_101, %c0_102, %c0_103] : memref<9x32x16xbf16, #tpu.memory_space<vmem>>, vector<1x32x16xbf16>
    %87 = vector.shape_cast %86 : vector<1x32x16xbf16> to vector<32x16xbf16>
    %c2_104 = arith.constant 2 : index
    %c0_105 = arith.constant 0 : index
    %c0_106 = arith.constant 0 : index
    %c0_107 = arith.constant 0 : index
    %88 = vector.load %arg2[%c2_104, %c0_105, %c0_106, %c0_107] : memref<4x4x16x8xbf16, #tpu.memory_space<vmem>>, vector<1x1x16x8xbf16>
    %89 = vector.shape_cast %88 : vector<1x1x16x8xbf16> to vector<16x8xbf16>
    %cst_108 = arith.constant dense<0.000000e+00> : vector<32x8xf32>
    %90 = tpu.matmul %87, %89, %cst_108 {dimension_numbers = #tpu.dot_dimension_numbers<[1], [0], [0], [1], [0, 0, 1, 1], [], []>} : vector<32x16xbf16>, vector<16x8xbf16>, vector<32x8xf32> -> vector<32x8xf32>
    %c0_109 = arith.constant 0 : index
    %c0_110 = arith.constant 0 : index
    %91 = vector.load %arg6[%c0_109, %c0_110] : memref<32x8xf32, #tpu.memory_space<vmem>>, vector<32x8xf32>
    tpu.vector_store %arg6[%c0_109, %c0_110], %90 {strides = array<i32>} : memref<32x8xf32, #tpu.memory_space<vmem>>, vector<32x8xf32>,
    %c4_111 = arith.constant 4 : index
    %c0_112 = arith.constant 0 : index
    %c0_113 = arith.constant 0 : index
    %92 = vector.load %arg1[%c4_111, %c0_112, %c0_113] : memref<9x32x16xbf16, #tpu.memory_space<vmem>>, vector<1x32x16xbf16>
    %93 = vector.shape_cast %92 : vector<1x32x16xbf16> to vector<32x16xbf16>
    %c2_114 = arith.constant 2 : index
    %c1_115 = arith.constant 1 : index
    %c0_116 = arith.constant 0 : index
    %c0_117 = arith.constant 0 : index
    %94 = vector.load %arg2[%c2_114, %c1_115, %c0_116, %c0_117] : memref<4x4x16x8xbf16, #tpu.memory_space<vmem>>, vector<1x1x16x8xbf16>
    %95 = vector.shape_cast %94 : vector<1x1x16x8xbf16> to vector<16x8xbf16>
    %cst_118 = arith.constant dense<0.000000e+00> : vector<32x8xf32>
    %96 = tpu.matmul %93, %95, %cst_118 {dimension_numbers = #tpu.dot_dimension_numbers<[1], [0], [0], [1], [0, 0, 1, 1], [], []>} : vector<32x16xbf16>, vector<16x8xbf16>, vector<32x8xf32> -> vector<32x8xf32>
    %c0_119 = arith.constant 0 : index
    %c0_120 = arith.constant 0 : index
    %97 = vector.load %arg6[%c0_119, %c0_120] : memref<32x8xf32, #tpu.memory_space<vmem>>, vector<32x8xf32>
    %98 = arith.addf %97, %96 : vector<32x8xf32>
    %c0_121 = arith.constant 0 : index
    %c0_122 = arith.constant 0 : index
    %99 = vector.load %arg6[%c0_121, %c0_122] : memref<32x8xf32, #tpu.memory_space<vmem>>, vector<32x8xf32>
    tpu.vector_store %arg6[%c0_121, %c0_122], %98 {strides = array<i32>} : memref<32x8xf32, #tpu.memory_space<vmem>>, vector<32x8xf32>,
    %c6 = arith.constant 6 : index
    %c0_123 = arith.constant 0 : index
    %c0_124 = arith.constant 0 : index
    %100 = vector.load %arg1[%c6, %c0_123, %c0_124] : memref<9x32x16xbf16, #tpu.memory_space<vmem>>, vector<1x32x16xbf16>
    %101 = vector.shape_cast %100 : vector<1x32x16xbf16> to vector<32x16xbf16>
    %c2_125 = arith.constant 2 : index
    %c2_126 = arith.constant 2 : index
    %c0_127 = arith.constant 0 : index
    %c0_128 = arith.constant 0 : index
    %102 = vector.load %arg2[%c2_125, %c2_126, %c0_127, %c0_128] : memref<4x4x16x8xbf16, #tpu.memory_space<vmem>>, vector<1x1x16x8xbf16>
    %103 = vector.shape_cast %102 : vector<1x1x16x8xbf16> to vector<16x8xbf16>
    %cst_129 = arith.constant dense<0.000000e+00> : vector<32x8xf32>
    %104 = tpu.matmul %101, %103, %cst_129 {dimension_numbers = #tpu.dot_dimension_numbers<[1], [0], [0], [1], [0, 0, 1, 1], [], []>} : vector<32x16xbf16>, vector<16x8xbf16>, vector<32x8xf32> -> vector<32x8xf32>
    %c0_130 = arith.constant 0 : index
    %c0_131 = arith.constant 0 : index
    %105 = vector.load %arg6[%c0_130, %c0_131] : memref<32x8xf32, #tpu.memory_space<vmem>>, vector<32x8xf32>
    %106 = arith.addf %105, %104 : vector<32x8xf32>
    %c0_132 = arith.constant 0 : index
    %c0_133 = arith.constant 0 : index
    %107 = vector.load %arg6[%c0_132, %c0_133] : memref<32x8xf32, #tpu.memory_space<vmem>>, vector<32x8xf32>
    tpu.vector_store %arg6[%c0_132, %c0_133], %106 {strides = array<i32>} : memref<32x8xf32, #tpu.memory_space<vmem>>, vector<32x8xf32>,
    %c7 = arith.constant 7 : index
    %c0_134 = arith.constant 0 : index
    %c0_135 = arith.constant 0 : index
    %108 = vector.load %arg1[%c7, %c0_134, %c0_135] : memref<9x32x16xbf16, #tpu.memory_space<vmem>>, vector<1x32x16xbf16>
    %109 = vector.shape_cast %108 : vector<1x32x16xbf16> to vector<32x16xbf16>
    %c2_136 = arith.constant 2 : index
    %c3_137 = arith.constant 3 : index
    %c0_138 = arith.constant 0 : index
    %c0_139 = arith.constant 0 : index
    %110 = vector.load %arg2[%c2_136, %c3_137, %c0_138, %c0_139] : memref<4x4x16x8xbf16, #tpu.memory_space<vmem>>, vector<1x1x16x8xbf16>
    %111 = vector.shape_cast %110 : vector<1x1x16x8xbf16> to vector<16x8xbf16>
    %cst_140 = arith.constant dense<0.000000e+00> : vector<32x8xf32>
    %112 = tpu.matmul %109, %111, %cst_140 {dimension_numbers = #tpu.dot_dimension_numbers<[1], [0], [0], [1], [0, 0, 1, 1], [], []>} : vector<32x16xbf16>, vector<16x8xbf16>, vector<32x8xf32> -> vector<32x8xf32>
    %c0_141 = arith.constant 0 : index
    %c0_142 = arith.constant 0 : index
    %113 = vector.load %arg6[%c0_141, %c0_142] : memref<32x8xf32, #tpu.memory_space<vmem>>, vector<32x8xf32>
    %114 = arith.addf %113, %112 : vector<32x8xf32>
    %c0_143 = arith.constant 0 : index
    %c0_144 = arith.constant 0 : index
    %115 = vector.load %arg6[%c0_143, %c0_144] : memref<32x8xf32, #tpu.memory_space<vmem>>, vector<32x8xf32>
    tpu.vector_store %arg6[%c0_143, %c0_144], %114 {strides = array<i32>} : memref<32x8xf32, #tpu.memory_space<vmem>>, vector<32x8xf32>,
    %c0_145 = arith.constant 0 : index
    %c0_146 = arith.constant 0 : index
    %116 = vector.load %arg6[%c0_145, %c0_146] : memref<32x8xf32, #tpu.memory_space<vmem>>, vector<32x8xf32>
    %117 = arith.truncf %116 : vector<32x8xf32> to vector<32x8xbf16>
    %c2_147 = arith.constant 2 : index
    %c0_148 = arith.constant 0 : index
    %c0_149 = arith.constant 0 : index
    %118 = vector.load %arg3[%c2_147, %c0_148, %c0_149] : memref<4x32x8xbf16, #tpu.memory_space<vmem>>, vector<1x32x8xbf16>
    %119 = vector.shape_cast %118 : vector<1x32x8xbf16> to vector<32x8xbf16>
    %120 = vector.shape_cast %117 : vector<32x8xbf16> to vector<1x32x8xbf16>
    tpu.vector_store %arg3[%c2_147, %c0_148, %c0_149], %120 {strides = array<i32>} : memref<4x32x8xbf16, #tpu.memory_space<vmem>>, vector<1x32x8xbf16>,
    %cst_150 = arith.constant dense<0.000000e+00> : vector<8xf32>
    %121 = vector.multi_reduction <add>, %116, %cst_150 [0] : vector<32x8xf32> to vector<8xf32>
    %122 = vector.shape_cast %121 : vector<8xf32> to vector<1x8xf32>
    %123 = arith.addf %81, %122 : vector<1x8xf32>
    %124 = arith.mulf %116, %116 : vector<32x8xf32>
    %cst_151 = arith.constant dense<0.000000e+00> : vector<8xf32>
    %125 = vector.multi_reduction <add>, %124, %cst_151 [0] : vector<32x8xf32> to vector<8xf32>
    %126 = vector.shape_cast %125 : vector<8xf32> to vector<1x8xf32>
    %127 = arith.addf %85, %126 : vector<1x8xf32>
    %c4_152 = arith.constant 4 : index
    %c0_153 = arith.constant 0 : index
    %c0_154 = arith.constant 0 : index
    %128 = vector.load %arg1[%c4_152, %c0_153, %c0_154] : memref<9x32x16xbf16, #tpu.memory_space<vmem>>, vector<1x32x16xbf16>
    %129 = vector.shape_cast %128 : vector<1x32x16xbf16> to vector<32x16xbf16>
    %c3_155 = arith.constant 3 : index
    %c0_156 = arith.constant 0 : index
    %c0_157 = arith.constant 0 : index
    %c0_158 = arith.constant 0 : index
    %130 = vector.load %arg2[%c3_155, %c0_156, %c0_157, %c0_158] : memref<4x4x16x8xbf16, #tpu.memory_space<vmem>>, vector<1x1x16x8xbf16>
    %131 = vector.shape_cast %130 : vector<1x1x16x8xbf16> to vector<16x8xbf16>
    %cst_159 = arith.constant dense<0.000000e+00> : vector<32x8xf32>
    %132 = tpu.matmul %129, %131, %cst_159 {dimension_numbers = #tpu.dot_dimension_numbers<[1], [0], [0], [1], [0, 0, 1, 1], [], []>} : vector<32x16xbf16>, vector<16x8xbf16>, vector<32x8xf32> -> vector<32x8xf32>
    %c0_160 = arith.constant 0 : index
    %c0_161 = arith.constant 0 : index
    %133 = vector.load %arg6[%c0_160, %c0_161] : memref<32x8xf32, #tpu.memory_space<vmem>>, vector<32x8xf32>
    tpu.vector_store %arg6[%c0_160, %c0_161], %132 {strides = array<i32>} : memref<32x8xf32, #tpu.memory_space<vmem>>, vector<32x8xf32>,
    %c5_162 = arith.constant 5 : index
    %c0_163 = arith.constant 0 : index
    %c0_164 = arith.constant 0 : index
    %134 = vector.load %arg1[%c5_162, %c0_163, %c0_164] : memref<9x32x16xbf16, #tpu.memory_space<vmem>>, vector<1x32x16xbf16>
    %135 = vector.shape_cast %134 : vector<1x32x16xbf16> to vector<32x16xbf16>
    %c3_165 = arith.constant 3 : index
    %c1_166 = arith.constant 1 : index
    %c0_167 = arith.constant 0 : index
    %c0_168 = arith.constant 0 : index
    %136 = vector.load %arg2[%c3_165, %c1_166, %c0_167, %c0_168] : memref<4x4x16x8xbf16, #tpu.memory_space<vmem>>, vector<1x1x16x8xbf16>
    %137 = vector.shape_cast %136 : vector<1x1x16x8xbf16> to vector<16x8xbf16>
    %cst_169 = arith.constant dense<0.000000e+00> : vector<32x8xf32>
    %138 = tpu.matmul %135, %137, %cst_169 {dimension_numbers = #tpu.dot_dimension_numbers<[1], [0], [0], [1], [0, 0, 1, 1], [], []>} : vector<32x16xbf16>, vector<16x8xbf16>, vector<32x8xf32> -> vector<32x8xf32>
    %c0_170 = arith.constant 0 : index
    %c0_171 = arith.constant 0 : index
    %139 = vector.load %arg6[%c0_170, %c0_171] : memref<32x8xf32, #tpu.memory_space<vmem>>, vector<32x8xf32>
    %140 = arith.addf %139, %138 : vector<32x8xf32>
    %c0_172 = arith.constant 0 : index
    %c0_173 = arith.constant 0 : index
    %141 = vector.load %arg6[%c0_172, %c0_173] : memref<32x8xf32, #tpu.memory_space<vmem>>, vector<32x8xf32>
    tpu.vector_store %arg6[%c0_172, %c0_173], %140 {strides = array<i32>} : memref<32x8xf32, #tpu.memory_space<vmem>>, vector<32x8xf32>,
    %c7_174 = arith.constant 7 : index
    %c0_175 = arith.constant 0 : index
    %c0_176 = arith.constant 0 : index
    %142 = vector.load %arg1[%c7_174, %c0_175, %c0_176] : memref<9x32x16xbf16, #tpu.memory_space<vmem>>, vector<1x32x16xbf16>
    %143 = vector.shape_cast %142 : vector<1x32x16xbf16> to vector<32x16xbf16>
    %c3_177 = arith.constant 3 : index
    %c2_178 = arith.constant 2 : index
    %c0_179 = arith.constant 0 : index
    %c0_180 = arith.constant 0 : index
    %144 = vector.load %arg2[%c3_177, %c2_178, %c0_179, %c0_180] : memref<4x4x16x8xbf16, #tpu.memory_space<vmem>>, vector<1x1x16x8xbf16>
    %145 = vector.shape_cast %144 : vector<1x1x16x8xbf16> to vector<16x8xbf16>
    %cst_181 = arith.constant dense<0.000000e+00> : vector<32x8xf32>
    %146 = tpu.matmul %143, %145, %cst_181 {dimension_numbers = #tpu.dot_dimension_numbers<[1], [0], [0], [1], [0, 0, 1, 1], [], []>} : vector<32x16xbf16>, vector<16x8xbf16>, vector<32x8xf32> -> vector<32x8xf32>
    %c0_182 = arith.constant 0 : index
    %c0_183 = arith.constant 0 : index
    %147 = vector.load %arg6[%c0_182, %c0_183] : memref<32x8xf32, #tpu.memory_space<vmem>>, vector<32x8xf32>
    %148 = arith.addf %147, %146 : vector<32x8xf32>
    %c0_184 = arith.constant 0 : index
    %c0_185 = arith.constant 0 : index
    %149 = vector.load %arg6[%c0_184, %c0_185] : memref<32x8xf32, #tpu.memory_space<vmem>>, vector<32x8xf32>
    tpu.vector_store %arg6[%c0_184, %c0_185], %148 {strides = array<i32>} : memref<32x8xf32, #tpu.memory_space<vmem>>, vector<32x8xf32>,
    %c8 = arith.constant 8 : index
    %c0_186 = arith.constant 0 : index
    %c0_187 = arith.constant 0 : index
    %150 = vector.load %arg1[%c8, %c0_186, %c0_187] : memref<9x32x16xbf16, #tpu.memory_space<vmem>>, vector<1x32x16xbf16>
    %151 = vector.shape_cast %150 : vector<1x32x16xbf16> to vector<32x16xbf16>
    %c3_188 = arith.constant 3 : index
    %c3_189 = arith.constant 3 : index
    %c0_190 = arith.constant 0 : index
    %c0_191 = arith.constant 0 : index
    %152 = vector.load %arg2[%c3_188, %c3_189, %c0_190, %c0_191] : memref<4x4x16x8xbf16, #tpu.memory_space<vmem>>, vector<1x1x16x8xbf16>
    %153 = vector.shape_cast %152 : vector<1x1x16x8xbf16> to vector<16x8xbf16>
    %cst_192 = arith.constant dense<0.000000e+00> : vector<32x8xf32>
    %154 = tpu.matmul %151, %153, %cst_192 {dimension_numbers = #tpu.dot_dimension_numbers<[1], [0], [0], [1], [0, 0, 1, 1], [], []>} : vector<32x16xbf16>, vector<16x8xbf16>, vector<32x8xf32> -> vector<32x8xf32>
    %c0_193 = arith.constant 0 : index
    %c0_194 = arith.constant 0 : index
    %155 = vector.load %arg6[%c0_193, %c0_194] : memref<32x8xf32, #tpu.memory_space<vmem>>, vector<32x8xf32>
    %156 = arith.addf %155, %154 : vector<32x8xf32>
    %c0_195 = arith.constant 0 : index
    %c0_196 = arith.constant 0 : index
    %157 = vector.load %arg6[%c0_195, %c0_196] : memref<32x8xf32, #tpu.memory_space<vmem>>, vector<32x8xf32>
    tpu.vector_store %arg6[%c0_195, %c0_196], %156 {strides = array<i32>} : memref<32x8xf32, #tpu.memory_space<vmem>>, vector<32x8xf32>,
    %c0_197 = arith.constant 0 : index
    %c0_198 = arith.constant 0 : index
    %158 = vector.load %arg6[%c0_197, %c0_198] : memref<32x8xf32, #tpu.memory_space<vmem>>, vector<32x8xf32>
    %159 = arith.truncf %158 : vector<32x8xf32> to vector<32x8xbf16>
    %c3_199 = arith.constant 3 : index
    %c0_200 = arith.constant 0 : index
    %c0_201 = arith.constant 0 : index
    %160 = vector.load %arg3[%c3_199, %c0_200, %c0_201] : memref<4x32x8xbf16, #tpu.memory_space<vmem>>, vector<1x32x8xbf16>
    %161 = vector.shape_cast %160 : vector<1x32x8xbf16> to vector<32x8xbf16>
    %162 = vector.shape_cast %159 : vector<32x8xbf16> to vector<1x32x8xbf16>
    tpu.vector_store %arg3[%c3_199, %c0_200, %c0_201], %162 {strides = array<i32>} : memref<4x32x8xbf16, #tpu.memory_space<vmem>>, vector<1x32x8xbf16>,
    %cst_202 = arith.constant dense<0.000000e+00> : vector<8xf32>
    %163 = vector.multi_reduction <add>, %158, %cst_202 [0] : vector<32x8xf32> to vector<8xf32>
    %164 = vector.shape_cast %163 : vector<8xf32> to vector<1x8xf32>
    %165 = arith.addf %123, %164 : vector<1x8xf32>
    %166 = arith.mulf %158, %158 : vector<32x8xf32>
    %cst_203 = arith.constant dense<0.000000e+00> : vector<8xf32>
    %167 = vector.multi_reduction <add>, %166, %cst_203 [0] : vector<32x8xf32> to vector<8xf32>
    %168 = vector.shape_cast %167 : vector<8xf32> to vector<1x8xf32>
    %169 = arith.addf %127, %168 : vector<1x8xf32>
    %170 = vector.shape_cast %165 : vector<1x8xf32> to vector<1x1x8xf32>
    %171 = vector.shape_cast %170 : vector<1x1x8xf32> to vector<1x1x8xf32>
    %172 = vector.broadcast %171 : vector<1x1x8xf32> to vector<1x8x8xf32>
    %c0_204 = arith.constant 0 : index
    %c0_205 = arith.constant 0 : index
    %c0_206 = arith.constant 0 : index
    %173 = vector.load %arg4[%c0_204, %c0_205, %c0_206] : memref<1x8x8xf32, #tpu.memory_space<vmem>>, vector<1x8x8xf32>
    tpu.vector_store %arg4[%c0_204, %c0_205, %c0_206], %172 {strides = array<i32>} : memref<1x8x8xf32, #tpu.memory_space<vmem>>, vector<1x8x8xf32>,
    %174 = vector.shape_cast %169 : vector<1x8xf32> to vector<1x1x8xf32>
    %175 = vector.shape_cast %174 : vector<1x1x8xf32> to vector<1x1x8xf32>
    %176 = vector.broadcast %175 : vector<1x1x8xf32> to vector<1x8x8xf32>
    %c0_207 = arith.constant 0 : index
    %c0_208 = arith.constant 0 : index
    %c0_209 = arith.constant 0 : index
    %177 = vector.load %arg5[%c0_207, %c0_208, %c0_209] : memref<1x8x8xf32, #tpu.memory_space<vmem>>, vector<1x8x8xf32>
    tpu.vector_store %arg5[%c0_207, %c0_208, %c0_209], %176 {strides = array<i32>} : memref<1x8x8xf32, #tpu.memory_space<vmem>>, vector<1x8x8xf32>,
    return
  }
  func.func @transform_0(%arg0: i32) -> (i32, i32, i32) {
    %c0_i32 = arith.constant 0 : i32
    %c0_i32_0 = arith.constant 0 : i32
    %c0_i32_1 = arith.constant 0 : i32
    return %c0_i32, %arg0, %c0_i32_0 : i32, i32, i32
  }
  func.func @transform_1(%arg0: i32) -> (i32, i32, i32, i32) {
    %c0_i32 = arith.constant 0 : i32
    %c0_i32_0 = arith.constant 0 : i32
    %c0_i32_1 = arith.constant 0 : i32
    %c0_i32_2 = arith.constant 0 : i32
    %c0_i32_3 = arith.constant 0 : i32
    return %c0_i32, %c0_i32_0, %c0_i32_1, %c0_i32_2 : i32, i32, i32, i32
  }
  func.func @transform_2(%arg0: i32) -> (i32, i32, i32) {
    %c0_i32 = arith.constant 0 : i32
    %c0_i32_0 = arith.constant 0 : i32
    %c0_i32_1 = arith.constant 0 : i32
    return %c0_i32, %arg0, %c0_i32_0 : i32, i32, i32
  }
  func.func @transform_3(%arg0: i32) -> (i32, i32, i32) {
    %c0_i32 = arith.constant 0 : i32
    %c0_i32_0 = arith.constant 0 : i32
    %c0_i32_1 = arith.constant 0 : i32
    return %arg0, %c0_i32, %c0_i32_0 : i32, i32, i32
  }
  func.func @transform_4(%arg0: i32) -> (i32, i32, i32) {
    %c0_i32 = arith.constant 0 : i32
    %c0_i32_0 = arith.constant 0 : i32
    %c0_i32_1 = arith.constant 0 : i32
    return %arg0, %c0_i32, %c0_i32_0 : i32, i32, i32
  }
}

module attributes {stable_mosaic.version = 11 : i64} {
  func.func @_convt_tanh_kernel(%arg0: i32, %arg1: memref<9x128x8xbf16, #tpu.memory_space<vmem>>, %arg2: memref<4x4x8x3xbf16, #tpu.memory_space<vmem>>, %arg3: memref<4x128x3xf32, #tpu.memory_space<vmem>>, %arg4: memref<128x3xf32, #tpu.memory_space<vmem>>) attributes {dimension_semantics = [#tpu.dimension_semantics<parallel>], iteration_bounds = array<i64: 1>, scalar_prefetch = 0 : i64, scratch_operands = 1 : i64, tpu.core_type = #tpu.core_type<tc>, window_params = [{transform_indices = @transform_0, window_bounds = array<i64: 9, 128, 8>}, {pipeline_mode = #tpu.pipeline_mode<synchronous>, transform_indices = @transform_1, window_bounds = array<i64: 4, 4, 8, 3>}, {transform_indices = @transform_2, window_bounds = array<i64: 4, 128, 3>}]} {
    %c0 = arith.constant 0 : index
    %c0_0 = arith.constant 0 : index
    %c0_1 = arith.constant 0 : index
    %0 = vector.load %arg1[%c0, %c0_0, %c0_1] : memref<9x128x8xbf16, #tpu.memory_space<vmem>>, vector<1x128x8xbf16>
    %1 = vector.shape_cast %0 : vector<1x128x8xbf16> to vector<128x8xbf16>
    %c0_2 = arith.constant 0 : index
    %c0_3 = arith.constant 0 : index
    %c0_4 = arith.constant 0 : index
    %c0_5 = arith.constant 0 : index
    %2 = vector.load %arg2[%c0_2, %c0_3, %c0_4, %c0_5] : memref<4x4x8x3xbf16, #tpu.memory_space<vmem>>, vector<1x1x8x3xbf16>
    %3 = vector.shape_cast %2 : vector<1x1x8x3xbf16> to vector<8x3xbf16>
    %cst = arith.constant dense<0.000000e+00> : vector<128x3xf32>
    %4 = tpu.matmul %1, %3, %cst {dimension_numbers = #tpu.dot_dimension_numbers<[1], [0], [0], [1], [0, 0, 1, 1], [], []>} : vector<128x8xbf16>, vector<8x3xbf16>, vector<128x3xf32> -> vector<128x3xf32>
    %c0_6 = arith.constant 0 : index
    %c0_7 = arith.constant 0 : index
    %5 = vector.load %arg4[%c0_6, %c0_7] : memref<128x3xf32, #tpu.memory_space<vmem>>, vector<128x3xf32>
    tpu.vector_store %arg4[%c0_6, %c0_7], %4 {strides = array<i32>} : memref<128x3xf32, #tpu.memory_space<vmem>>, vector<128x3xf32>,
    %c1 = arith.constant 1 : index
    %c0_8 = arith.constant 0 : index
    %c0_9 = arith.constant 0 : index
    %6 = vector.load %arg1[%c1, %c0_8, %c0_9] : memref<9x128x8xbf16, #tpu.memory_space<vmem>>, vector<1x128x8xbf16>
    %7 = vector.shape_cast %6 : vector<1x128x8xbf16> to vector<128x8xbf16>
    %c0_10 = arith.constant 0 : index
    %c1_11 = arith.constant 1 : index
    %c0_12 = arith.constant 0 : index
    %c0_13 = arith.constant 0 : index
    %8 = vector.load %arg2[%c0_10, %c1_11, %c0_12, %c0_13] : memref<4x4x8x3xbf16, #tpu.memory_space<vmem>>, vector<1x1x8x3xbf16>
    %9 = vector.shape_cast %8 : vector<1x1x8x3xbf16> to vector<8x3xbf16>
    %cst_14 = arith.constant dense<0.000000e+00> : vector<128x3xf32>
    %10 = tpu.matmul %7, %9, %cst_14 {dimension_numbers = #tpu.dot_dimension_numbers<[1], [0], [0], [1], [0, 0, 1, 1], [], []>} : vector<128x8xbf16>, vector<8x3xbf16>, vector<128x3xf32> -> vector<128x3xf32>
    %c0_15 = arith.constant 0 : index
    %c0_16 = arith.constant 0 : index
    %11 = vector.load %arg4[%c0_15, %c0_16] : memref<128x3xf32, #tpu.memory_space<vmem>>, vector<128x3xf32>
    %12 = arith.addf %11, %10 : vector<128x3xf32>
    %c0_17 = arith.constant 0 : index
    %c0_18 = arith.constant 0 : index
    %13 = vector.load %arg4[%c0_17, %c0_18] : memref<128x3xf32, #tpu.memory_space<vmem>>, vector<128x3xf32>
    tpu.vector_store %arg4[%c0_17, %c0_18], %12 {strides = array<i32>} : memref<128x3xf32, #tpu.memory_space<vmem>>, vector<128x3xf32>,
    %c3 = arith.constant 3 : index
    %c0_19 = arith.constant 0 : index
    %c0_20 = arith.constant 0 : index
    %14 = vector.load %arg1[%c3, %c0_19, %c0_20] : memref<9x128x8xbf16, #tpu.memory_space<vmem>>, vector<1x128x8xbf16>
    %15 = vector.shape_cast %14 : vector<1x128x8xbf16> to vector<128x8xbf16>
    %c0_21 = arith.constant 0 : index
    %c2 = arith.constant 2 : index
    %c0_22 = arith.constant 0 : index
    %c0_23 = arith.constant 0 : index
    %16 = vector.load %arg2[%c0_21, %c2, %c0_22, %c0_23] : memref<4x4x8x3xbf16, #tpu.memory_space<vmem>>, vector<1x1x8x3xbf16>
    %17 = vector.shape_cast %16 : vector<1x1x8x3xbf16> to vector<8x3xbf16>
    %cst_24 = arith.constant dense<0.000000e+00> : vector<128x3xf32>
    %18 = tpu.matmul %15, %17, %cst_24 {dimension_numbers = #tpu.dot_dimension_numbers<[1], [0], [0], [1], [0, 0, 1, 1], [], []>} : vector<128x8xbf16>, vector<8x3xbf16>, vector<128x3xf32> -> vector<128x3xf32>
    %c0_25 = arith.constant 0 : index
    %c0_26 = arith.constant 0 : index
    %19 = vector.load %arg4[%c0_25, %c0_26] : memref<128x3xf32, #tpu.memory_space<vmem>>, vector<128x3xf32>
    %20 = arith.addf %19, %18 : vector<128x3xf32>
    %c0_27 = arith.constant 0 : index
    %c0_28 = arith.constant 0 : index
    %21 = vector.load %arg4[%c0_27, %c0_28] : memref<128x3xf32, #tpu.memory_space<vmem>>, vector<128x3xf32>
    tpu.vector_store %arg4[%c0_27, %c0_28], %20 {strides = array<i32>} : memref<128x3xf32, #tpu.memory_space<vmem>>, vector<128x3xf32>,
    %c4 = arith.constant 4 : index
    %c0_29 = arith.constant 0 : index
    %c0_30 = arith.constant 0 : index
    %22 = vector.load %arg1[%c4, %c0_29, %c0_30] : memref<9x128x8xbf16, #tpu.memory_space<vmem>>, vector<1x128x8xbf16>
    %23 = vector.shape_cast %22 : vector<1x128x8xbf16> to vector<128x8xbf16>
    %c0_31 = arith.constant 0 : index
    %c3_32 = arith.constant 3 : index
    %c0_33 = arith.constant 0 : index
    %c0_34 = arith.constant 0 : index
    %24 = vector.load %arg2[%c0_31, %c3_32, %c0_33, %c0_34] : memref<4x4x8x3xbf16, #tpu.memory_space<vmem>>, vector<1x1x8x3xbf16>
    %25 = vector.shape_cast %24 : vector<1x1x8x3xbf16> to vector<8x3xbf16>
    %cst_35 = arith.constant dense<0.000000e+00> : vector<128x3xf32>
    %26 = tpu.matmul %23, %25, %cst_35 {dimension_numbers = #tpu.dot_dimension_numbers<[1], [0], [0], [1], [0, 0, 1, 1], [], []>} : vector<128x8xbf16>, vector<8x3xbf16>, vector<128x3xf32> -> vector<128x3xf32>
    %c0_36 = arith.constant 0 : index
    %c0_37 = arith.constant 0 : index
    %27 = vector.load %arg4[%c0_36, %c0_37] : memref<128x3xf32, #tpu.memory_space<vmem>>, vector<128x3xf32>
    %28 = arith.addf %27, %26 : vector<128x3xf32>
    %c0_38 = arith.constant 0 : index
    %c0_39 = arith.constant 0 : index
    %29 = vector.load %arg4[%c0_38, %c0_39] : memref<128x3xf32, #tpu.memory_space<vmem>>, vector<128x3xf32>
    tpu.vector_store %arg4[%c0_38, %c0_39], %28 {strides = array<i32>} : memref<128x3xf32, #tpu.memory_space<vmem>>, vector<128x3xf32>,
    %c0_40 = arith.constant 0 : index
    %c0_41 = arith.constant 0 : index
    %30 = vector.load %arg4[%c0_40, %c0_41] : memref<128x3xf32, #tpu.memory_space<vmem>>, vector<128x3xf32>
    %31 = math.tanh %30 : vector<128x3xf32>
    %c0_42 = arith.constant 0 : index
    %c0_43 = arith.constant 0 : index
    %c0_44 = arith.constant 0 : index
    %32 = vector.load %arg3[%c0_42, %c0_43, %c0_44] : memref<4x128x3xf32, #tpu.memory_space<vmem>>, vector<1x128x3xf32>
    %33 = vector.shape_cast %32 : vector<1x128x3xf32> to vector<128x3xf32>
    %34 = vector.shape_cast %31 : vector<128x3xf32> to vector<1x128x3xf32>
    tpu.vector_store %arg3[%c0_42, %c0_43, %c0_44], %34 {strides = array<i32>} : memref<4x128x3xf32, #tpu.memory_space<vmem>>, vector<1x128x3xf32>,
    %c1_45 = arith.constant 1 : index
    %c0_46 = arith.constant 0 : index
    %c0_47 = arith.constant 0 : index
    %35 = vector.load %arg1[%c1_45, %c0_46, %c0_47] : memref<9x128x8xbf16, #tpu.memory_space<vmem>>, vector<1x128x8xbf16>
    %36 = vector.shape_cast %35 : vector<1x128x8xbf16> to vector<128x8xbf16>
    %c1_48 = arith.constant 1 : index
    %c0_49 = arith.constant 0 : index
    %c0_50 = arith.constant 0 : index
    %c0_51 = arith.constant 0 : index
    %37 = vector.load %arg2[%c1_48, %c0_49, %c0_50, %c0_51] : memref<4x4x8x3xbf16, #tpu.memory_space<vmem>>, vector<1x1x8x3xbf16>
    %38 = vector.shape_cast %37 : vector<1x1x8x3xbf16> to vector<8x3xbf16>
    %cst_52 = arith.constant dense<0.000000e+00> : vector<128x3xf32>
    %39 = tpu.matmul %36, %38, %cst_52 {dimension_numbers = #tpu.dot_dimension_numbers<[1], [0], [0], [1], [0, 0, 1, 1], [], []>} : vector<128x8xbf16>, vector<8x3xbf16>, vector<128x3xf32> -> vector<128x3xf32>
    %c0_53 = arith.constant 0 : index
    %c0_54 = arith.constant 0 : index
    %40 = vector.load %arg4[%c0_53, %c0_54] : memref<128x3xf32, #tpu.memory_space<vmem>>, vector<128x3xf32>
    tpu.vector_store %arg4[%c0_53, %c0_54], %39 {strides = array<i32>} : memref<128x3xf32, #tpu.memory_space<vmem>>, vector<128x3xf32>,
    %c2_55 = arith.constant 2 : index
    %c0_56 = arith.constant 0 : index
    %c0_57 = arith.constant 0 : index
    %41 = vector.load %arg1[%c2_55, %c0_56, %c0_57] : memref<9x128x8xbf16, #tpu.memory_space<vmem>>, vector<1x128x8xbf16>
    %42 = vector.shape_cast %41 : vector<1x128x8xbf16> to vector<128x8xbf16>
    %c1_58 = arith.constant 1 : index
    %c1_59 = arith.constant 1 : index
    %c0_60 = arith.constant 0 : index
    %c0_61 = arith.constant 0 : index
    %43 = vector.load %arg2[%c1_58, %c1_59, %c0_60, %c0_61] : memref<4x4x8x3xbf16, #tpu.memory_space<vmem>>, vector<1x1x8x3xbf16>
    %44 = vector.shape_cast %43 : vector<1x1x8x3xbf16> to vector<8x3xbf16>
    %cst_62 = arith.constant dense<0.000000e+00> : vector<128x3xf32>
    %45 = tpu.matmul %42, %44, %cst_62 {dimension_numbers = #tpu.dot_dimension_numbers<[1], [0], [0], [1], [0, 0, 1, 1], [], []>} : vector<128x8xbf16>, vector<8x3xbf16>, vector<128x3xf32> -> vector<128x3xf32>
    %c0_63 = arith.constant 0 : index
    %c0_64 = arith.constant 0 : index
    %46 = vector.load %arg4[%c0_63, %c0_64] : memref<128x3xf32, #tpu.memory_space<vmem>>, vector<128x3xf32>
    %47 = arith.addf %46, %45 : vector<128x3xf32>
    %c0_65 = arith.constant 0 : index
    %c0_66 = arith.constant 0 : index
    %48 = vector.load %arg4[%c0_65, %c0_66] : memref<128x3xf32, #tpu.memory_space<vmem>>, vector<128x3xf32>
    tpu.vector_store %arg4[%c0_65, %c0_66], %47 {strides = array<i32>} : memref<128x3xf32, #tpu.memory_space<vmem>>, vector<128x3xf32>,
    %c4_67 = arith.constant 4 : index
    %c0_68 = arith.constant 0 : index
    %c0_69 = arith.constant 0 : index
    %49 = vector.load %arg1[%c4_67, %c0_68, %c0_69] : memref<9x128x8xbf16, #tpu.memory_space<vmem>>, vector<1x128x8xbf16>
    %50 = vector.shape_cast %49 : vector<1x128x8xbf16> to vector<128x8xbf16>
    %c1_70 = arith.constant 1 : index
    %c2_71 = arith.constant 2 : index
    %c0_72 = arith.constant 0 : index
    %c0_73 = arith.constant 0 : index
    %51 = vector.load %arg2[%c1_70, %c2_71, %c0_72, %c0_73] : memref<4x4x8x3xbf16, #tpu.memory_space<vmem>>, vector<1x1x8x3xbf16>
    %52 = vector.shape_cast %51 : vector<1x1x8x3xbf16> to vector<8x3xbf16>
    %cst_74 = arith.constant dense<0.000000e+00> : vector<128x3xf32>
    %53 = tpu.matmul %50, %52, %cst_74 {dimension_numbers = #tpu.dot_dimension_numbers<[1], [0], [0], [1], [0, 0, 1, 1], [], []>} : vector<128x8xbf16>, vector<8x3xbf16>, vector<128x3xf32> -> vector<128x3xf32>
    %c0_75 = arith.constant 0 : index
    %c0_76 = arith.constant 0 : index
    %54 = vector.load %arg4[%c0_75, %c0_76] : memref<128x3xf32, #tpu.memory_space<vmem>>, vector<128x3xf32>
    %55 = arith.addf %54, %53 : vector<128x3xf32>
    %c0_77 = arith.constant 0 : index
    %c0_78 = arith.constant 0 : index
    %56 = vector.load %arg4[%c0_77, %c0_78] : memref<128x3xf32, #tpu.memory_space<vmem>>, vector<128x3xf32>
    tpu.vector_store %arg4[%c0_77, %c0_78], %55 {strides = array<i32>} : memref<128x3xf32, #tpu.memory_space<vmem>>, vector<128x3xf32>,
    %c5 = arith.constant 5 : index
    %c0_79 = arith.constant 0 : index
    %c0_80 = arith.constant 0 : index
    %57 = vector.load %arg1[%c5, %c0_79, %c0_80] : memref<9x128x8xbf16, #tpu.memory_space<vmem>>, vector<1x128x8xbf16>
    %58 = vector.shape_cast %57 : vector<1x128x8xbf16> to vector<128x8xbf16>
    %c1_81 = arith.constant 1 : index
    %c3_82 = arith.constant 3 : index
    %c0_83 = arith.constant 0 : index
    %c0_84 = arith.constant 0 : index
    %59 = vector.load %arg2[%c1_81, %c3_82, %c0_83, %c0_84] : memref<4x4x8x3xbf16, #tpu.memory_space<vmem>>, vector<1x1x8x3xbf16>
    %60 = vector.shape_cast %59 : vector<1x1x8x3xbf16> to vector<8x3xbf16>
    %cst_85 = arith.constant dense<0.000000e+00> : vector<128x3xf32>
    %61 = tpu.matmul %58, %60, %cst_85 {dimension_numbers = #tpu.dot_dimension_numbers<[1], [0], [0], [1], [0, 0, 1, 1], [], []>} : vector<128x8xbf16>, vector<8x3xbf16>, vector<128x3xf32> -> vector<128x3xf32>
    %c0_86 = arith.constant 0 : index
    %c0_87 = arith.constant 0 : index
    %62 = vector.load %arg4[%c0_86, %c0_87] : memref<128x3xf32, #tpu.memory_space<vmem>>, vector<128x3xf32>
    %63 = arith.addf %62, %61 : vector<128x3xf32>
    %c0_88 = arith.constant 0 : index
    %c0_89 = arith.constant 0 : index
    %64 = vector.load %arg4[%c0_88, %c0_89] : memref<128x3xf32, #tpu.memory_space<vmem>>, vector<128x3xf32>
    tpu.vector_store %arg4[%c0_88, %c0_89], %63 {strides = array<i32>} : memref<128x3xf32, #tpu.memory_space<vmem>>, vector<128x3xf32>,
    %c0_90 = arith.constant 0 : index
    %c0_91 = arith.constant 0 : index
    %65 = vector.load %arg4[%c0_90, %c0_91] : memref<128x3xf32, #tpu.memory_space<vmem>>, vector<128x3xf32>
    %66 = math.tanh %65 : vector<128x3xf32>
    %c1_92 = arith.constant 1 : index
    %c0_93 = arith.constant 0 : index
    %c0_94 = arith.constant 0 : index
    %67 = vector.load %arg3[%c1_92, %c0_93, %c0_94] : memref<4x128x3xf32, #tpu.memory_space<vmem>>, vector<1x128x3xf32>
    %68 = vector.shape_cast %67 : vector<1x128x3xf32> to vector<128x3xf32>
    %69 = vector.shape_cast %66 : vector<128x3xf32> to vector<1x128x3xf32>
    tpu.vector_store %arg3[%c1_92, %c0_93, %c0_94], %69 {strides = array<i32>} : memref<4x128x3xf32, #tpu.memory_space<vmem>>, vector<1x128x3xf32>,
    %c3_95 = arith.constant 3 : index
    %c0_96 = arith.constant 0 : index
    %c0_97 = arith.constant 0 : index
    %70 = vector.load %arg1[%c3_95, %c0_96, %c0_97] : memref<9x128x8xbf16, #tpu.memory_space<vmem>>, vector<1x128x8xbf16>
    %71 = vector.shape_cast %70 : vector<1x128x8xbf16> to vector<128x8xbf16>
    %c2_98 = arith.constant 2 : index
    %c0_99 = arith.constant 0 : index
    %c0_100 = arith.constant 0 : index
    %c0_101 = arith.constant 0 : index
    %72 = vector.load %arg2[%c2_98, %c0_99, %c0_100, %c0_101] : memref<4x4x8x3xbf16, #tpu.memory_space<vmem>>, vector<1x1x8x3xbf16>
    %73 = vector.shape_cast %72 : vector<1x1x8x3xbf16> to vector<8x3xbf16>
    %cst_102 = arith.constant dense<0.000000e+00> : vector<128x3xf32>
    %74 = tpu.matmul %71, %73, %cst_102 {dimension_numbers = #tpu.dot_dimension_numbers<[1], [0], [0], [1], [0, 0, 1, 1], [], []>} : vector<128x8xbf16>, vector<8x3xbf16>, vector<128x3xf32> -> vector<128x3xf32>
    %c0_103 = arith.constant 0 : index
    %c0_104 = arith.constant 0 : index
    %75 = vector.load %arg4[%c0_103, %c0_104] : memref<128x3xf32, #tpu.memory_space<vmem>>, vector<128x3xf32>
    tpu.vector_store %arg4[%c0_103, %c0_104], %74 {strides = array<i32>} : memref<128x3xf32, #tpu.memory_space<vmem>>, vector<128x3xf32>,
    %c4_105 = arith.constant 4 : index
    %c0_106 = arith.constant 0 : index
    %c0_107 = arith.constant 0 : index
    %76 = vector.load %arg1[%c4_105, %c0_106, %c0_107] : memref<9x128x8xbf16, #tpu.memory_space<vmem>>, vector<1x128x8xbf16>
    %77 = vector.shape_cast %76 : vector<1x128x8xbf16> to vector<128x8xbf16>
    %c2_108 = arith.constant 2 : index
    %c1_109 = arith.constant 1 : index
    %c0_110 = arith.constant 0 : index
    %c0_111 = arith.constant 0 : index
    %78 = vector.load %arg2[%c2_108, %c1_109, %c0_110, %c0_111] : memref<4x4x8x3xbf16, #tpu.memory_space<vmem>>, vector<1x1x8x3xbf16>
    %79 = vector.shape_cast %78 : vector<1x1x8x3xbf16> to vector<8x3xbf16>
    %cst_112 = arith.constant dense<0.000000e+00> : vector<128x3xf32>
    %80 = tpu.matmul %77, %79, %cst_112 {dimension_numbers = #tpu.dot_dimension_numbers<[1], [0], [0], [1], [0, 0, 1, 1], [], []>} : vector<128x8xbf16>, vector<8x3xbf16>, vector<128x3xf32> -> vector<128x3xf32>
    %c0_113 = arith.constant 0 : index
    %c0_114 = arith.constant 0 : index
    %81 = vector.load %arg4[%c0_113, %c0_114] : memref<128x3xf32, #tpu.memory_space<vmem>>, vector<128x3xf32>
    %82 = arith.addf %81, %80 : vector<128x3xf32>
    %c0_115 = arith.constant 0 : index
    %c0_116 = arith.constant 0 : index
    %83 = vector.load %arg4[%c0_115, %c0_116] : memref<128x3xf32, #tpu.memory_space<vmem>>, vector<128x3xf32>
    tpu.vector_store %arg4[%c0_115, %c0_116], %82 {strides = array<i32>} : memref<128x3xf32, #tpu.memory_space<vmem>>, vector<128x3xf32>,
    %c6 = arith.constant 6 : index
    %c0_117 = arith.constant 0 : index
    %c0_118 = arith.constant 0 : index
    %84 = vector.load %arg1[%c6, %c0_117, %c0_118] : memref<9x128x8xbf16, #tpu.memory_space<vmem>>, vector<1x128x8xbf16>
    %85 = vector.shape_cast %84 : vector<1x128x8xbf16> to vector<128x8xbf16>
    %c2_119 = arith.constant 2 : index
    %c2_120 = arith.constant 2 : index
    %c0_121 = arith.constant 0 : index
    %c0_122 = arith.constant 0 : index
    %86 = vector.load %arg2[%c2_119, %c2_120, %c0_121, %c0_122] : memref<4x4x8x3xbf16, #tpu.memory_space<vmem>>, vector<1x1x8x3xbf16>
    %87 = vector.shape_cast %86 : vector<1x1x8x3xbf16> to vector<8x3xbf16>
    %cst_123 = arith.constant dense<0.000000e+00> : vector<128x3xf32>
    %88 = tpu.matmul %85, %87, %cst_123 {dimension_numbers = #tpu.dot_dimension_numbers<[1], [0], [0], [1], [0, 0, 1, 1], [], []>} : vector<128x8xbf16>, vector<8x3xbf16>, vector<128x3xf32> -> vector<128x3xf32>
    %c0_124 = arith.constant 0 : index
    %c0_125 = arith.constant 0 : index
    %89 = vector.load %arg4[%c0_124, %c0_125] : memref<128x3xf32, #tpu.memory_space<vmem>>, vector<128x3xf32>
    %90 = arith.addf %89, %88 : vector<128x3xf32>
    %c0_126 = arith.constant 0 : index
    %c0_127 = arith.constant 0 : index
    %91 = vector.load %arg4[%c0_126, %c0_127] : memref<128x3xf32, #tpu.memory_space<vmem>>, vector<128x3xf32>
    tpu.vector_store %arg4[%c0_126, %c0_127], %90 {strides = array<i32>} : memref<128x3xf32, #tpu.memory_space<vmem>>, vector<128x3xf32>,
    %c7 = arith.constant 7 : index
    %c0_128 = arith.constant 0 : index
    %c0_129 = arith.constant 0 : index
    %92 = vector.load %arg1[%c7, %c0_128, %c0_129] : memref<9x128x8xbf16, #tpu.memory_space<vmem>>, vector<1x128x8xbf16>
    %93 = vector.shape_cast %92 : vector<1x128x8xbf16> to vector<128x8xbf16>
    %c2_130 = arith.constant 2 : index
    %c3_131 = arith.constant 3 : index
    %c0_132 = arith.constant 0 : index
    %c0_133 = arith.constant 0 : index
    %94 = vector.load %arg2[%c2_130, %c3_131, %c0_132, %c0_133] : memref<4x4x8x3xbf16, #tpu.memory_space<vmem>>, vector<1x1x8x3xbf16>
    %95 = vector.shape_cast %94 : vector<1x1x8x3xbf16> to vector<8x3xbf16>
    %cst_134 = arith.constant dense<0.000000e+00> : vector<128x3xf32>
    %96 = tpu.matmul %93, %95, %cst_134 {dimension_numbers = #tpu.dot_dimension_numbers<[1], [0], [0], [1], [0, 0, 1, 1], [], []>} : vector<128x8xbf16>, vector<8x3xbf16>, vector<128x3xf32> -> vector<128x3xf32>
    %c0_135 = arith.constant 0 : index
    %c0_136 = arith.constant 0 : index
    %97 = vector.load %arg4[%c0_135, %c0_136] : memref<128x3xf32, #tpu.memory_space<vmem>>, vector<128x3xf32>
    %98 = arith.addf %97, %96 : vector<128x3xf32>
    %c0_137 = arith.constant 0 : index
    %c0_138 = arith.constant 0 : index
    %99 = vector.load %arg4[%c0_137, %c0_138] : memref<128x3xf32, #tpu.memory_space<vmem>>, vector<128x3xf32>
    tpu.vector_store %arg4[%c0_137, %c0_138], %98 {strides = array<i32>} : memref<128x3xf32, #tpu.memory_space<vmem>>, vector<128x3xf32>,
    %c0_139 = arith.constant 0 : index
    %c0_140 = arith.constant 0 : index
    %100 = vector.load %arg4[%c0_139, %c0_140] : memref<128x3xf32, #tpu.memory_space<vmem>>, vector<128x3xf32>
    %101 = math.tanh %100 : vector<128x3xf32>
    %c2_141 = arith.constant 2 : index
    %c0_142 = arith.constant 0 : index
    %c0_143 = arith.constant 0 : index
    %102 = vector.load %arg3[%c2_141, %c0_142, %c0_143] : memref<4x128x3xf32, #tpu.memory_space<vmem>>, vector<1x128x3xf32>
    %103 = vector.shape_cast %102 : vector<1x128x3xf32> to vector<128x3xf32>
    %104 = vector.shape_cast %101 : vector<128x3xf32> to vector<1x128x3xf32>
    tpu.vector_store %arg3[%c2_141, %c0_142, %c0_143], %104 {strides = array<i32>} : memref<4x128x3xf32, #tpu.memory_space<vmem>>, vector<1x128x3xf32>,
    %c4_144 = arith.constant 4 : index
    %c0_145 = arith.constant 0 : index
    %c0_146 = arith.constant 0 : index
    %105 = vector.load %arg1[%c4_144, %c0_145, %c0_146] : memref<9x128x8xbf16, #tpu.memory_space<vmem>>, vector<1x128x8xbf16>
    %106 = vector.shape_cast %105 : vector<1x128x8xbf16> to vector<128x8xbf16>
    %c3_147 = arith.constant 3 : index
    %c0_148 = arith.constant 0 : index
    %c0_149 = arith.constant 0 : index
    %c0_150 = arith.constant 0 : index
    %107 = vector.load %arg2[%c3_147, %c0_148, %c0_149, %c0_150] : memref<4x4x8x3xbf16, #tpu.memory_space<vmem>>, vector<1x1x8x3xbf16>
    %108 = vector.shape_cast %107 : vector<1x1x8x3xbf16> to vector<8x3xbf16>
    %cst_151 = arith.constant dense<0.000000e+00> : vector<128x3xf32>
    %109 = tpu.matmul %106, %108, %cst_151 {dimension_numbers = #tpu.dot_dimension_numbers<[1], [0], [0], [1], [0, 0, 1, 1], [], []>} : vector<128x8xbf16>, vector<8x3xbf16>, vector<128x3xf32> -> vector<128x3xf32>
    %c0_152 = arith.constant 0 : index
    %c0_153 = arith.constant 0 : index
    %110 = vector.load %arg4[%c0_152, %c0_153] : memref<128x3xf32, #tpu.memory_space<vmem>>, vector<128x3xf32>
    tpu.vector_store %arg4[%c0_152, %c0_153], %109 {strides = array<i32>} : memref<128x3xf32, #tpu.memory_space<vmem>>, vector<128x3xf32>,
    %c5_154 = arith.constant 5 : index
    %c0_155 = arith.constant 0 : index
    %c0_156 = arith.constant 0 : index
    %111 = vector.load %arg1[%c5_154, %c0_155, %c0_156] : memref<9x128x8xbf16, #tpu.memory_space<vmem>>, vector<1x128x8xbf16>
    %112 = vector.shape_cast %111 : vector<1x128x8xbf16> to vector<128x8xbf16>
    %c3_157 = arith.constant 3 : index
    %c1_158 = arith.constant 1 : index
    %c0_159 = arith.constant 0 : index
    %c0_160 = arith.constant 0 : index
    %113 = vector.load %arg2[%c3_157, %c1_158, %c0_159, %c0_160] : memref<4x4x8x3xbf16, #tpu.memory_space<vmem>>, vector<1x1x8x3xbf16>
    %114 = vector.shape_cast %113 : vector<1x1x8x3xbf16> to vector<8x3xbf16>
    %cst_161 = arith.constant dense<0.000000e+00> : vector<128x3xf32>
    %115 = tpu.matmul %112, %114, %cst_161 {dimension_numbers = #tpu.dot_dimension_numbers<[1], [0], [0], [1], [0, 0, 1, 1], [], []>} : vector<128x8xbf16>, vector<8x3xbf16>, vector<128x3xf32> -> vector<128x3xf32>
    %c0_162 = arith.constant 0 : index
    %c0_163 = arith.constant 0 : index
    %116 = vector.load %arg4[%c0_162, %c0_163] : memref<128x3xf32, #tpu.memory_space<vmem>>, vector<128x3xf32>
    %117 = arith.addf %116, %115 : vector<128x3xf32>
    %c0_164 = arith.constant 0 : index
    %c0_165 = arith.constant 0 : index
    %118 = vector.load %arg4[%c0_164, %c0_165] : memref<128x3xf32, #tpu.memory_space<vmem>>, vector<128x3xf32>
    tpu.vector_store %arg4[%c0_164, %c0_165], %117 {strides = array<i32>} : memref<128x3xf32, #tpu.memory_space<vmem>>, vector<128x3xf32>,
    %c7_166 = arith.constant 7 : index
    %c0_167 = arith.constant 0 : index
    %c0_168 = arith.constant 0 : index
    %119 = vector.load %arg1[%c7_166, %c0_167, %c0_168] : memref<9x128x8xbf16, #tpu.memory_space<vmem>>, vector<1x128x8xbf16>
    %120 = vector.shape_cast %119 : vector<1x128x8xbf16> to vector<128x8xbf16>
    %c3_169 = arith.constant 3 : index
    %c2_170 = arith.constant 2 : index
    %c0_171 = arith.constant 0 : index
    %c0_172 = arith.constant 0 : index
    %121 = vector.load %arg2[%c3_169, %c2_170, %c0_171, %c0_172] : memref<4x4x8x3xbf16, #tpu.memory_space<vmem>>, vector<1x1x8x3xbf16>
    %122 = vector.shape_cast %121 : vector<1x1x8x3xbf16> to vector<8x3xbf16>
    %cst_173 = arith.constant dense<0.000000e+00> : vector<128x3xf32>
    %123 = tpu.matmul %120, %122, %cst_173 {dimension_numbers = #tpu.dot_dimension_numbers<[1], [0], [0], [1], [0, 0, 1, 1], [], []>} : vector<128x8xbf16>, vector<8x3xbf16>, vector<128x3xf32> -> vector<128x3xf32>
    %c0_174 = arith.constant 0 : index
    %c0_175 = arith.constant 0 : index
    %124 = vector.load %arg4[%c0_174, %c0_175] : memref<128x3xf32, #tpu.memory_space<vmem>>, vector<128x3xf32>
    %125 = arith.addf %124, %123 : vector<128x3xf32>
    %c0_176 = arith.constant 0 : index
    %c0_177 = arith.constant 0 : index
    %126 = vector.load %arg4[%c0_176, %c0_177] : memref<128x3xf32, #tpu.memory_space<vmem>>, vector<128x3xf32>
    tpu.vector_store %arg4[%c0_176, %c0_177], %125 {strides = array<i32>} : memref<128x3xf32, #tpu.memory_space<vmem>>, vector<128x3xf32>,
    %c8 = arith.constant 8 : index
    %c0_178 = arith.constant 0 : index
    %c0_179 = arith.constant 0 : index
    %127 = vector.load %arg1[%c8, %c0_178, %c0_179] : memref<9x128x8xbf16, #tpu.memory_space<vmem>>, vector<1x128x8xbf16>
    %128 = vector.shape_cast %127 : vector<1x128x8xbf16> to vector<128x8xbf16>
    %c3_180 = arith.constant 3 : index
    %c3_181 = arith.constant 3 : index
    %c0_182 = arith.constant 0 : index
    %c0_183 = arith.constant 0 : index
    %129 = vector.load %arg2[%c3_180, %c3_181, %c0_182, %c0_183] : memref<4x4x8x3xbf16, #tpu.memory_space<vmem>>, vector<1x1x8x3xbf16>
    %130 = vector.shape_cast %129 : vector<1x1x8x3xbf16> to vector<8x3xbf16>
    %cst_184 = arith.constant dense<0.000000e+00> : vector<128x3xf32>
    %131 = tpu.matmul %128, %130, %cst_184 {dimension_numbers = #tpu.dot_dimension_numbers<[1], [0], [0], [1], [0, 0, 1, 1], [], []>} : vector<128x8xbf16>, vector<8x3xbf16>, vector<128x3xf32> -> vector<128x3xf32>
    %c0_185 = arith.constant 0 : index
    %c0_186 = arith.constant 0 : index
    %132 = vector.load %arg4[%c0_185, %c0_186] : memref<128x3xf32, #tpu.memory_space<vmem>>, vector<128x3xf32>
    %133 = arith.addf %132, %131 : vector<128x3xf32>
    %c0_187 = arith.constant 0 : index
    %c0_188 = arith.constant 0 : index
    %134 = vector.load %arg4[%c0_187, %c0_188] : memref<128x3xf32, #tpu.memory_space<vmem>>, vector<128x3xf32>
    tpu.vector_store %arg4[%c0_187, %c0_188], %133 {strides = array<i32>} : memref<128x3xf32, #tpu.memory_space<vmem>>, vector<128x3xf32>,
    %c0_189 = arith.constant 0 : index
    %c0_190 = arith.constant 0 : index
    %135 = vector.load %arg4[%c0_189, %c0_190] : memref<128x3xf32, #tpu.memory_space<vmem>>, vector<128x3xf32>
    %136 = math.tanh %135 : vector<128x3xf32>
    %c3_191 = arith.constant 3 : index
    %c0_192 = arith.constant 0 : index
    %c0_193 = arith.constant 0 : index
    %137 = vector.load %arg3[%c3_191, %c0_192, %c0_193] : memref<4x128x3xf32, #tpu.memory_space<vmem>>, vector<1x128x3xf32>
    %138 = vector.shape_cast %137 : vector<1x128x3xf32> to vector<128x3xf32>
    %139 = vector.shape_cast %136 : vector<128x3xf32> to vector<1x128x3xf32>
    tpu.vector_store %arg3[%c3_191, %c0_192, %c0_193], %139 {strides = array<i32>} : memref<4x128x3xf32, #tpu.memory_space<vmem>>, vector<1x128x3xf32>,
    return
  }
  func.func @transform_0(%arg0: i32) -> (i32, i32, i32) {
    %c0_i32 = arith.constant 0 : i32
    %c0_i32_0 = arith.constant 0 : i32
    %c0_i32_1 = arith.constant 0 : i32
    return %c0_i32, %arg0, %c0_i32_0 : i32, i32, i32
  }
  func.func @transform_1(%arg0: i32) -> (i32, i32, i32, i32) {
    %c0_i32 = arith.constant 0 : i32
    %c0_i32_0 = arith.constant 0 : i32
    %c0_i32_1 = arith.constant 0 : i32
    %c0_i32_2 = arith.constant 0 : i32
    %c0_i32_3 = arith.constant 0 : i32
    return %c0_i32, %c0_i32_0, %c0_i32_1, %c0_i32_2 : i32, i32, i32, i32
  }
  func.func @transform_2(%arg0: i32) -> (i32, i32, i32) {
    %c0_i32 = arith.constant 0 : i32
    %c0_i32_0 = arith.constant 0 : i32
    %c0_i32_1 = arith.constant 0 : i32
    return %c0_i32, %arg0, %c0_i32_0 : i32, i32, i32
  }
}

</mosaic_0001>

<bundles_post_ra>
// kernel: a_call__.3
= control target key start
LH: loop header
LB: loop body
LE: loop exit
PB: predicated region body
PF: predicated region fallthrough
CT: control target
= control target key end

     0   :  { %v208_v1 = vmov 0   ;;  %s278_s1 = inlined_call_operand.vmem [shape: bf16[128,256], index: 1, kind: input, shape index: {}]   ;;  %s279_s0 = inlined_call_operand.vmem [shape: bf16[2,128], index: 0, kind: input, shape index: {}]   ;;  %s280_s2 = inlined_call_operand.vmem [shape: f32[2,256], index: 2, kind: output, shape index: {}]  }
   0x1   :  { %v184_v0 = vld [vmem:[%s278_s1 + $0x4] ss:$8 sps:$4 sm:$0xff]   ;;  %141 = vmatprep.mubr.bf16.mxu0 %v208_v1  ;;  %v186_v2 = vld [vmem:[%s278_s1] ss:$8 sps:$4 sm:$0xff]   ;;  %v187_v3 = vld [vmem:[%s278_s1 + $0x14] ss:$8 sps:$4 sm:$0xff]  }
   0x2   :  { %109 = vmatprep.subr.bf16.mxu0 %v184_v0  ;;  %v189_v4 = vld [vmem:[%s278_s1 + $0x10] ss:$8 sps:$4 sm:$0xff]   ;;  %v190_v5 = vld [vmem:[%s278_s1 + $0x24] ss:$8 sps:$4 sm:$0xff]   ;;  %v192_v6 = vld [vmem:[%s278_s1 + $0x20] ss:$8 sps:$4 sm:$0xff]  }
   0x3   :  { %110 = vmatpush1.bf16.msra.mxu0 %v186_v2  ;;  %v193_v7 = vld [vmem:[%s278_s1 + $0x34] ss:$8 sps:$4 sm:$0xff]   ;;  %v195_v8 = vld [vmem:[%s278_s1 + $0x30] ss:$8 sps:$4 sm:$0xff]   ;;  %v196_v9 = vld [vmem:[%s278_s1 + $0x44] ss:$8 sps:$4 sm:$0xff]  }
   0x4   :  { %111 = vmatprep.subr.bf16.mxu0 %v187_v3  ;;  %v198_v10 = vld [vmem:[%s278_s1 + $0x40] ss:$8 sps:$4 sm:$0xff]   ;;  %v199_v11 = vld [vmem:[%s278_s1 + $0x54] ss:$8 sps:$4 sm:$0xff]   ;;  %v201_v12 = vld [vmem:[%s278_s1 + $0x50] ss:$8 sps:$4 sm:$0xff]  }
   0x5   :  { %v202_v13 = vld [vmem:[%s278_s1 + $0x64] ss:$8 sps:$4 sm:$0xff]   ;;  %v204_v14 = vld [vmem:[%s278_s1 + $0x60] ss:$8 sps:$4 sm:$0xff]   ;;  %v205_v15 = vld [vmem:[%s278_s1 + $0x74] ss:$8 sps:$4 sm:$0xff]  }
   0x6   :  { %v207_v16 = vld [vmem:[%s278_s1 + $0x70] ss:$8 sps:$4 sm:$0xff]   ;;  %v12_v17 = vld [vmem:[%s279_s0] sm:$0x1] }
   0x7   :  { %112 = vmatpush1.bf16.msra.mxu0 %v189_v4 }
   0x8   :  { %113 = vmatprep.subr.bf16.mxu0 %v190_v5 }
   0xb   :  { %114 = vmatpush1.bf16.msra.mxu0 %v192_v6 }
   0xc   :  { %115 = vmatprep.subr.bf16.mxu0 %v193_v7 }
   0xf   :  { %116 = vmatpush1.bf16.msra.mxu0 %v195_v8 }
  0x10   :  { %117 = vmatprep.subr.bf16.mxu0 %v196_v9 }
  0x13   :  { %118 = vmatpush1.bf16.msra.mxu0 %v198_v10 }
  0x14   :  { %119 = vmatprep.subr.bf16.mxu0 %v199_v11 }
  0x17   :  { %120 = vmatpush1.bf16.msra.mxu0 %v201_v12 }
  0x18   :  { %121 = vmatprep.subr.bf16.mxu0 %v202_v13 }
  0x1b   :  { %122 = vmatpush1.bf16.msra.mxu0 %v204_v14 }
  0x1c   :  { %123 = vmatprep.subr.bf16.mxu0 %v205_v15 }
  0x1f   :  { %124 = vmatpush1.bf16.msra.mxu0 %v207_v16 }
  0x22   :  { %142 = vmatmul.mubr.bf16.vlgmr.msra.gmra.mrb[0].mxu0 %v12_v17 }
  0xf5   :  { %v143_v18 = vpop.f32.mrb[0].mxu0 }
  0xf6   :  { %v145_v19 = vpop.f32.mrb[1].mxu0 }
  0xf7   :  { %v152_v20 = vcombine.low %v143_v18, %v145_v19  ;;  %v147_v21 = vpop.f32.mrb[2].mxu0 }
  0xf8   :  { %v148_v22 = vpop.f32.mrb[3].mxu0 }
  0xf9   :  { %182 = vst.sshfl [vmem:[%s280_s2] sm:$0x33 pattern:$0x76325410] %v152_v20 }

// kernel: a_call__.4
= control target key start
LH: loop header
LB: loop body
LE: loop exit
PB: predicated region body
PF: predicated region fallthrough
CT: control target
= control target key end

     0   :  { %vm37_vm0 = vcmask 130048   ;;  %vm93_vm1 = vcmask 64512   ;;  %vm391_vm2 = vcmask 60416   ;;  %s2598_s1 = inlined_call_operand.vmem [shape: bf16[4,4,16,8], index: 1, kind: input, shape index: {}]   ;;  %s2599_s0 = inlined_call_operand.vmem [shape: bf16[9,32,16], index: 0, kind: input, shape index: {}]   ;;  %s2600_s2 = inlined_call_operand.vmem [shape: bf16[4,32,8], index: 2, kind: output, shape index: {0}]   ;;  %s2601_s3 = inlined_call_operand.vmem [shape: f32[1,8,8], index: 3, kind: output, shape index: {1}]   ;;  %s2602_s4 = inlined_call_operand.vmem [shape: f32[1,8,8], index: 4, kind: output, shape index: {2}]  }
   0x1   :  { %v2032_v0 = vld [vmem:[%s2598_s1] sm:$0xff]   ;;  %v2034_v2 = vld [vmem:[%s2599_s0 + $0x8] sm:$0xff]   ;;  %v2036_v4 = vld [vmem:[%s2599_s0 + $0x10] sm:$0xff]  }
   0x2   :  { %v2033_v1 = vld [vmem:[%s2599_s0] sm:$0xff]   ;;  %1936 = vmatprep.subr.bf16.mxu0 %v2032_v0  ;;  %v2035_v3 = vld [vmem:[%s2598_s1 + $0x8] sm:$0xff]   ;;  %v2037_v5 = vld [vmem:[%s2599_s0 + $0x18] sm:$0xff]   ;;  %1944 = vmatprep.mubr.msk.bf16.mxu1 %vm37_vm0, %v2036_v4 }
   0x3   :  { %1937 = vmatpush3.bf16.msra.mxu0 %v2032_v0  ;;  %1938 = vmatprep.mubr.msk.bf16.mxu0 %vm37_vm0, %v2033_v1  ;;  %v2038_v6 = vld [vmem:[%s2598_s1 + $0x10] sm:$0xff]   ;;  %v2040_v8 = vld [vmem:[%s2599_s0 + $0x38] sm:$0xff]   ;;  %v2042_v10 = vld [vmem:[%s2599_s0 + $0x40] sm:$0xff]  }
   0x4   :  { %1942 = vmatprep.subr.bf16.mxu1 %v2035_v3  ;;  %v2039_v7 = vld [vmem:[%s2599_s0 + $0x30] sm:$0xff]   ;;  %1948 = vmatprep.subr.bf16.mxu0 %v2038_v6  ;;  %v2041_v9 = vld [vmem:[%s2598_s1 + $0x18] sm:$0xff]   ;;  %v2043_v11 = vld [vmem:[%s2599_s0 + $0x48] sm:$0xff]  }
   0x5   :  { %1943 = vmatpush3.bf16.msra.mxu1 %v2035_v3  ;;  %v2044_v12 = vld [vmem:[%s2598_s1 + $0x20] sm:$0xff]   ;;  %v2045_v13 = vld [vmem:[%s2599_s0 + $0x10] sm:$0xff]   ;;  %v2047_v14 = vld [vmem:[%s2598_s1 + $0x28] sm:$0xff]  }
   0x6   :  { %1939 = vmatmul.mubr.msk.bf16.vlgmr.msra.gmra.mrb[0].mxu0 %vm37_vm0, %v2034_v2  ;;  %1954 = vmatprep.subr.bf16.mxu1 %v2041_v9  ;;  %v2048_v15 = vld [vmem:[%s2599_s0 + $0x20] sm:$0xff]   ;;  %v2046_v16 = vld [vmem:[%s2599_s0 + $0x18] sm:$0xff]   ;;  %v2050_v17 = vld [vmem:[%s2598_s1 + $0x30] sm:$0xff]  }
   0x7   :  { %1949 = vmatpush3.bf16.msra.mxu0 %v2038_v6  ;;  %1950 = vmatprep.mubr.msk.bf16.mxu0 %vm37_vm0, %v2039_v7  ;;  %v2051_v18 = vld [vmem:[%s2599_s0 + $0x40] sm:$0xff]   ;;  %v2049_v19 = vld [vmem:[%s2599_s0 + $0x28] sm:$0xff]   ;;  %v2053_v20 = vld [vmem:[%s2598_s1 + $0x38] sm:$0xff]  }
   0x8   :  { %1945 = vmatmul.mubr.msk.bf16.vlgmr.msra.gmra.mrb[0].mxu1 %vm37_vm0, %v2037_v5  ;;  %1960 = vmatprep.subr.bf16.mxu0 %v2044_v12  ;;  %v2054_v21 = vld [vmem:[%s2599_s0 + $0x50] sm:$0xff]   ;;  %v2056_v22 = vld [vmem:[%s2598_s1 + $0x40] sm:$0xff]   ;;  %v2052_v23 = vld [vmem:[%s2599_s0 + $0x48] sm:$0xff]  }
   0x9   :  { %1955 = vmatpush3.bf16.msra.mxu1 %v2041_v9  ;;  %1956 = vmatprep.mubr.msk.bf16.mxu1 %vm37_vm0, %v2042_v10  ;;  %v2057_v24 = vld [vmem:[%s2599_s0 + $0x30] sm:$0xff]   ;;  %v2059_v25 = vld [vmem:[%s2598_s1 + $0x48] sm:$0xff]   ;;  %v2055_v26 = vld [vmem:[%s2599_s0 + $0x58] sm:$0xff]  }
   0xa   :  { %1966 = vmatprep.subr.bf16.mxu1 %v2047_v14  ;;  %v2060_v27 = vld [vmem:[%s2599_s0 + $0x40] sm:$0xff]   ;;  %v2062_v28 = vld [vmem:[%s2598_s1 + $0x50] sm:$0xff]   ;;  %v2065_v29 = vld [vmem:[%s2598_s1 + $0x58] sm:$0xff]  }
   0xb   :  { %v2058_v30 = vld [vmem:[%s2599_s0 + $0x38] sm:$0xff]   ;;  %v2063_v31 = vld [vmem:[%s2599_s0 + $0x60] sm:$0xff]   ;;  %v2061_v33 = vld [vmem:[%s2599_s0 + $0x48] sm:$0xff]  }
   0xc   :  { %v2068_v32 = vld [vmem:[%s2598_s1 + $0x60] sm:$0xff]   ;;  %v2066_v34 = vld [vmem:[%s2599_s0 + $0x70] sm:$0xff]   ;;  %v2071_v35 = vld [vmem:[%s2598_s1 + $0x68] sm:$0xff]  }
   0xd   :  { %v2064_v36 = vld [vmem:[%s2599_s0 + $0x68] sm:$0xff]   ;;  %v2069_v37 = vld [vmem:[%s2599_s0 + $0x40] sm:$0xff]   ;;  %v2074_v38 = vld [vmem:[%s2598_s1 + $0x70] sm:$0xff]  }
   0xe   :  { %1951 = vmatmul.mubr.msk.bf16.vlgmr.msra.gmra.mrb[4].mxu0 %vm37_vm0, %v2040_v8  ;;  %v2067_v39 = vld [vmem:[%s2599_s0 + $0x78] sm:$0xff]   ;;  %v2072_v40 = vld [vmem:[%s2599_s0 + $0x50] sm:$0xff]   ;;  %v2070_v42 = vld [vmem:[%s2599_s0 + $0x48] sm:$0xff]  }
   0xf   :  { %1961 = vmatpush3.bf16.msra.mxu0 %v2044_v12  ;;  %1962 = vmatprep.mubr.msk.bf16.mxu0 %vm37_vm0, %v2045_v13  ;;  %v2077_v41 = vld [vmem:[%s2598_s1 + $0x78] sm:$0xff]   ;;  %v2075_v43 = vld [vmem:[%s2599_s0 + $0x70] sm:$0xff]   ;;  %v2078_v45 = vld [vmem:[%s2599_s0 + $0x80] sm:$0xff]  }
  0x10   :  { %1957 = vmatmul.mubr.msk.bf16.vlgmr.msra.gmra.mrb[4].mxu1 %vm37_vm0, %v2043_v11  ;;  %1972 = vmatprep.subr.bf16.mxu0 %v2050_v17  ;;  %v2073_v44 = vld [vmem:[%s2599_s0 + $0x58] sm:$0xff]   ;;  %v2079_v47 = vld [vmem:[%s2599_s0 + $0x88] sm:$0xff]  }
  0x11   :  { %1967 = vmatpush3.bf16.msra.mxu1 %v2047_v14  ;;  %1968 = vmatprep.mubr.msk.bf16.mxu1 %vm37_vm0, %v2048_v15  ;;  %v2076_v46 = vld [vmem:[%s2599_s0 + $0x78] sm:$0xff]  }
  0x12   :  { %1978 = vmatprep.subr.bf16.mxu1 %v2053_v20 }
  0x16   :  { %1963 = vmatmul.mubr.msk.bf16.vlgmr.msra.gmra.mrb[8].mxu0 %vm37_vm0, %v2046_v16 }
  0x17   :  { %1973 = vmatpush3.bf16.msra.mxu0 %v2050_v17  ;;  %1974 = vmatprep.mubr.msk.bf16.mxu0 %vm37_vm0, %v2051_v18 }
  0x18   :  { %1969 = vmatmul.mubr.msk.bf16.vlgmr.msra.gmra.mrb[8].mxu1 %vm37_vm0, %v2049_v19  ;;  %1984 = vmatprep.subr.bf16.mxu0 %v2056_v22 }
  0x19   :  { %1979 = vmatpush3.bf16.msra.mxu1 %v2053_v20  ;;  %1980 = vmatprep.mubr.msk.bf16.mxu1 %vm37_vm0, %v2054_v21 }
  0x1a   :  { %1990 = vmatprep.subr.bf16.mxu1 %v2059_v25 }
  0x1e   :  { %1975 = vmatmul.mubr.msk.bf16.vlgmr.msra.gmra.mrb[12].mxu0 %vm37_vm0, %v2052_v23 }
  0x1f   :  { %1985 = vmatpush3.bf16.msra.mxu0 %v2056_v22  ;;  %1986 = vmatprep.mubr.msk.bf16.mxu0 %vm37_vm0, %v2057_v24 }
  0x20   :  { %1996 = vmatprep.subr.bf16.mxu0 %v2062_v28  ;;  %1981 = vmatmul.mubr.msk.bf16.vlgmr.msra.gmra.mrb[12].mxu1 %vm37_vm0, %v2055_v26 }
  0x21   :  { %1991 = vmatpush3.bf16.msra.mxu1 %v2059_v25  ;;  %1992 = vmatprep.mubr.msk.bf16.mxu1 %vm37_vm0, %v2060_v27 }
  0x22   :  { %2002 = vmatprep.subr.bf16.mxu1 %v2065_v29 }
  0x26   :  { %1987 = vmatmul.mubr.msk.bf16.vlgmr.msra.gmra.mrb[16].mxu0 %vm37_vm0, %v2058_v30 }
  0x27   :  { %1997 = vmatpush3.bf16.msra.mxu0 %v2062_v28  ;;  %1998 = vmatprep.mubr.msk.bf16.mxu0 %vm37_vm0, %v2063_v31 }
  0x28   :  { %2008 = vmatprep.subr.bf16.mxu0 %v2068_v32  ;;  %1993 = vmatmul.mubr.msk.bf16.vlgmr.msra.gmra.mrb[16].mxu1 %vm37_vm0, %v2061_v33 }
  0x29   :  { %2003 = vmatpush3.bf16.msra.mxu1 %v2065_v29  ;;  %2004 = vmatprep.mubr.msk.bf16.mxu1 %vm37_vm0, %v2066_v34 }
  0x2a   :  { %2014 = vmatprep.subr.bf16.mxu1 %v2071_v35 }
  0x2e   :  { %1999 = vmatmul.mubr.msk.bf16.vlgmr.msra.gmra.mrb[20].mxu0 %vm37_vm0, %v2064_v36 }
  0x2f   :  { %2009 = vmatpush3.bf16.msra.mxu0 %v2068_v32  ;;  %2010 = vmatprep.mubr.msk.bf16.mxu0 %vm37_vm0, %v2069_v37 }
  0x30   :  { %2020 = vmatprep.subr.bf16.mxu0 %v2074_v38  ;;  %2005 = vmatmul.mubr.msk.bf16.vlgmr.msra.gmra.mrb[20].mxu1 %vm37_vm0, %v2067_v39 }
  0x31   :  { %2015 = vmatpush3.bf16.msra.mxu1 %v2071_v35  ;;  %2016 = vmatprep.mubr.msk.bf16.mxu1 %vm37_vm0, %v2072_v40 }
  0x32   :  { %2026 = vmatprep.subr.bf16.mxu1 %v2077_v41 }
  0x36   :  { %2011 = vmatmul.mubr.msk.bf16.vlgmr.msra.gmra.mrb[24].mxu0 %vm37_vm0, %v2070_v42 }
  0x37   :  { %2021 = vmatpush3.bf16.msra.mxu0 %v2074_v38  ;;  %2022 = vmatprep.mubr.msk.bf16.mxu0 %vm37_vm0, %v2075_v43 }
  0x38   :  { %2017 = vmatmul.mubr.msk.bf16.vlgmr.msra.gmra.mrb[24].mxu1 %vm37_vm0, %v2073_v44 }
  0x39   :  { %2027 = vmatpush3.bf16.msra.mxu1 %v2077_v41  ;;  %2028 = vmatprep.mubr.msk.bf16.mxu1 %vm37_vm0, %v2078_v45 }
  0x3e   :  { %2023 = vmatmul.mubr.msk.bf16.vlgmr.msra.gmra.mrb[28].mxu0 %vm37_vm0, %v2076_v46 }
  0x40   :  { %2029 = vmatmul.mubr.msk.bf16.vlgmr.msra.gmra.mrb[28].mxu1 %vm37_vm0, %v2079_v47 }
  0xd9   :  { %v1940_v48 = vpop.f32.mrb[0].mxu0 }
  0xda   :  { %96 = vst.msk [vmem:[#allocation2 + $0x10] sm:$0xff] %vm93_vm1, %v1940_v48  ;;  %v78_v49 = vpop.f32.mrb[1].mxu0 }
  0xdb   :  { %94 = vst.msk [vmem:[#allocation2] sm:$0xff] %vm93_vm1, %v78_v49  ;;  %v1941_v50 = vpop.f32.mrb[2].mxu0  ;;  %v1946_v52 = vpop.f32.mrb[0].mxu1 }
  0xdc   :  { %97 = vst.msk [vmem:[#allocation2 + $0x18] sm:$0xff] %vm93_vm1, %v1941_v50  ;;  %v81_v51 = vpop.f32.mrb[3].mxu0  ;;  %v162_v53 = vpop.f32.mrb[1].mxu1 }
  0xdd   :  { %95 = vst.msk [vmem:[#allocation2 + $0x8] sm:$0xff] %vm93_vm1, %v81_v51  ;;  %v1947_v54 = vpop.f32.mrb[2].mxu1 }
  0xde   :  { %v165_v55 = vpop.f32.mrb[3].mxu1 }
  0xe1   :  { %v179_v56 = vld [vmem:[#allocation2 + $0x10] sm:$0xff]  ;;  %v1952_v57 = vpop.f32.mrb[4].mxu0 }
  0xe2   :  { %v183_v58 = vadd.f32 %v1946_v52, %v179_v56  ;;  %v177_v59 = vld [vmem:[#allocation2] sm:$0xff]  ;;  %v253_v60 = vpop.f32.mrb[5].mxu0 }
  0xe3   :  { %v181_v61 = vadd.f32 %v177_v59, %v162_v53  ;;  %v180_v62 = vld [vmem:[#allocation2 + $0x18] sm:$0xff]  ;;  %v1953_v63 = vpop.f32.mrb[6].mxu0  ;;  %v1958_v3 = vpop.f32.mrb[4].mxu1 }
  0xe4   :  { %187 = vst.msk [vmem:[#allocation2 + $0x10] sm:$0xff] %vm93_vm1, %v183_v58  ;;  %v184_v0 = vadd.f32 %v1947_v54, %v180_v62  ;;  %v178_v1 = vld [vmem:[#allocation2 + $0x8] sm:$0xff]  ;;  %v256_v2 = vpop.f32.mrb[7].mxu0  ;;  %v344_v5 = vpop.f32.mrb[5].mxu1 }
  0xe5   :  { %185 = vst.msk [vmem:[#allocation2] sm:$0xff] %vm93_vm1, %v181_v61  ;;  %v182_v4 = vadd.f32 %v178_v1, %v165_v55  ;;  %v1959_v6 = vpop.f32.mrb[6].mxu1 }
  0xe6   :  { %188 = vst.msk [vmem:[#allocation2 + $0x18] sm:$0xff] %vm93_vm1, %v184_v0  ;;  %v347_v7 = vpop.f32.mrb[7].mxu1 }
  0xe7   :  { %186 = vst.msk [vmem:[#allocation2 + $0x8] sm:$0xff] %vm93_vm1, %v182_v4 }
  0xe9   :  { %v1964_v8 = vpop.f32.mrb[8].mxu0 }
  0xea   :  { %v491_v9 = vpop.f32.mrb[9].mxu0 }
  0xeb   :  { %v270_v10 = vld [vmem:[#allocation2 + $0x10] sm:$0xff]  ;;  %v1965_v11 = vpop.f32.mrb[10].mxu0  ;;  %v2291_v15 = vpop.f32.mrb[8].mxu1 }
  0xec   :  { %v274_v12 = vadd.f32 %v1952_v57, %v270_v10  ;;  %v268_v13 = vld [vmem:[#allocation2] sm:$0xff]  ;;  %v2289_v14 = vpop.f32.mrb[11].mxu0  ;;  %v2293_v18 = vpop.f32.mrb[9].mxu1 }
  0xed   :  { %v272_v16 = vadd.f32 %v268_v13, %v253_v60  ;;  %v271_v17 = vld [vmem:[#allocation2 + $0x18] sm:$0xff]  ;;  %v2296_v21 = vpop.f32.mrb[10].mxu1 }
  0xee   :  { %278 = vst.msk [vmem:[#allocation2 + $0x10] sm:$0xff] %vm93_vm1, %v274_v12  ;;  %v275_v19 = vadd.f32 %v1953_v63, %v271_v17  ;;  %v269_v20 = vld [vmem:[#allocation2 + $0x8] sm:$0xff]  ;;  %v2299_v23 = vpop.f32.mrb[11].mxu1 }
  0xef   :  { %276 = vst.msk [vmem:[#allocation2] sm:$0xff] %vm93_vm1, %v272_v16  ;;  %v273_v22 = vadd.f32 %v269_v20, %v256_v2 }
  0xf0   :  { %279 = vst.msk [vmem:[#allocation2 + $0x18] sm:$0xff] %vm93_vm1, %v275_v19 }
  0xf1   :  { %277 = vst.msk [vmem:[#allocation2 + $0x8] sm:$0xff] %vm93_vm1, %v273_v22  ;;  %v2303_v24 = vpop.f32.mrb[12].mxu0 }
  0xf2   :  { %v2305_v25 = vpop.f32.mrb[13].mxu0 }
  0xf3   :  { %v2307_v26 = vpop.f32.mrb[14].mxu0  ;;  %v2311_v28 = vpop.f32.mrb[12].mxu1 }
  0xf4   :  { %v2309_v27 = vpop.f32.mrb[15].mxu0  ;;  %v2313_v30 = vpop.f32.mrb[13].mxu1 }
  0xf5   :  { %v361_v29 = vld [vmem:[#allocation2 + $0x10] sm:$0xff]  ;;  %v2315_v33 = vpop.f32.mrb[14].mxu1 }
  0xf6   :  { %v365_v31 = vadd.f32 %v1958_v3, %v361_v29  ;;  %v359_v32 = vld [vmem:[#allocation2] sm:$0xff]  ;;  %v2317_v36 = vpop.f32.mrb[15].mxu1 }
  0xf7   :  { %v363_v34 = vadd.f32 %v359_v32, %v344_v5  ;;  %v362_v35 = vld [vmem:[#allocation2 + $0x18] sm:$0xff] }
  0xf8   :  { %369 = vst.msk [vmem:[#allocation2 + $0x10] sm:$0xff] %vm93_vm1, %v365_v31  ;;  %v366_v37 = vadd.f32 %v1959_v6, %v362_v35  ;;  %v360_v38 = vld [vmem:[#allocation2 + $0x8] sm:$0xff] }
  0xf9   :  { %367 = vst.msk [vmem:[#allocation2] sm:$0xff] %vm93_vm1, %v363_v34  ;;  %v364_v39 = vadd.f32 %v360_v38, %v347_v7  ;;  %v2321_v40 = vpop.f32.mrb[16].mxu0 }
  0xfa   :  { %370 = vst.msk [vmem:[#allocation2 + $0x18] sm:$0xff] %vm93_vm1, %v366_v37  ;;  %v2324_v41 = vpop.f32.mrb[17].mxu0 }
  0xfb   :  { %368 = vst.msk [vmem:[#allocation2 + $0x8] sm:$0xff] %vm93_vm1, %v364_v39  ;;  %v2327_v42 = vpop.f32.mrb[18].mxu0  ;;  %v2331_v44 = vpop.f32.mrb[16].mxu1 }
  0xfc   :  { %v2329_v43 = vpop.f32.mrb[19].mxu0  ;;  %v2333_v45 = vpop.f32.mrb[17].mxu1 }
  0xfd   :  { %v2335_v46 = vpop.f32.mrb[18].mxu1 }
  0xfe   :  { %v2337_v48 = vpop.f32.mrb[19].mxu1 }
  0xff   :  { %v373_v47 = vld [vmem:[#allocation2 + $0x10] sm:$0xff] }
 0x100   :  { %v1874_v49 = vpack.c.bf16 %v373_v47, %v373_v47  ;;  %508 = vst.msk [vmem:[#allocation2 + $0x10] sm:$0xff] %vm93_vm1, %v1964_v8  ;;  %v371_v50 = vld [vmem:[#allocation2] sm:$0xff]  ;;  %v412_v55 = vmul.f32 %v373_v47, %v373_v47  ;;  %v399_v3 = vsel %vm93_vm1, %v373_v47, 0.0 }
 0x101   :  { %v1872_v51 = vpack.c.bf16 %v371_v50, %v371_v50  ;;  %v410_v52 = vmul.f32 %v371_v50, %v371_v50  ;;  %506 = vst.msk [vmem:[#allocation2] sm:$0xff] %vm93_vm1, %v491_v9  ;;  %v374_v53 = vld [vmem:[#allocation2 + $0x18] sm:$0xff]  ;;  %v2341_v54 = vpop.f32.mrb[20].mxu0  ;;  %v396_v59 = vsel %vm93_vm1, %v371_v50, 0.0 }
 0x102   :  { %394 = vst.msk [vmem:[%s2600_s2 + $0x8] sm:$0xf] %vm391_vm2, %v1874_v49  ;;  %v1875_v56 = vpack.c.bf16 %v374_v53, %v374_v53  ;;  %v372_v57 = vld [vmem:[#allocation2 + $0x8] sm:$0xff]  ;;  %v2348_v58 = vpop.f32.mrb[21].mxu0  ;;  %v413_v5 = vmul.f32 %v374_v53, %v374_v53  ;;  %v401_v12 = vsel %vm93_vm1, %v374_v53, 0.0 }
 0x103   :  { %509 = vst.msk [vmem:[#allocation2 + $0x18] sm:$0xff] %vm93_vm1, %v1965_v11  ;;  %v1873_v60 = vpack.c.bf16 %v372_v57, %v372_v57  ;;  %v397_v61 = vsel %vm93_vm1, %v372_v57, 0.0  ;;  %v411_v62 = vmul.f32 %v372_v57, %v372_v57  ;;  %507 = vst.msk [vmem:[#allocation2 + $0x8] sm:$0xff] %vm93_vm1, %v2289_v14  ;;  %v2358_v63 = vpop.f32.mrb[22].mxu0  ;;  %v2366_v2 = vpop.f32.mrb[20].mxu1  ;;  %v414_v4 = vsel %vm93_vm1, %v410_v52, 0.0 }
 0x104   :  { %392 = vst.msk [vmem:[%s2600_s2] sm:$0xf] %vm391_vm2, %v1872_v51  ;;  %395 = vst.msk [vmem:[%s2600_s2 + $0xc] sm:$0xf] %vm391_vm2, %v1875_v56  ;;  %v398_v0 = vadd.f32 %v397_v61, %v396_v59  ;;  %v2364_v1 = vpop.f32.mrb[23].mxu0  ;;  %v2375_v7 = vpop.f32.mrb[21].mxu1 }
 0x105   :  { %393 = vst.msk [vmem:[%s2600_s2 + $0x4] sm:$0xf] %vm391_vm2, %v1873_v60  ;;  %v415_v6 = vsel %vm93_vm1, %v411_v62, 0.0  ;;  %v2377_v10 = vpop.f32.mrb[22].mxu1  ;;  %v417_v11 = vsel %vm93_vm1, %v412_v55, 0.0  ;;  %v419_v22 = vsel %vm93_vm1, %v413_v5, 0.0 }
 0x106   :  { %v400_v8 = vadd.f32 %v399_v3, %v398_v0  ;;  %v416_v9 = vadd.f32 %v415_v6, %v414_v4  ;;  %v2381_v14 = vpop.f32.mrb[23].mxu1 }
 0x107   :  { %v591_v13 = vld [vmem:[#allocation2 + $0x10] sm:$0xff] }
 0x108   :  { %v2383_v16 = vadd.f32 %v401_v12, %v400_v8  ;;  %v418_v17 = vadd.f32 %v417_v11, %v416_v9  ;;  %v595_v19 = vadd.f32 %v2291_v15, %v591_v13  ;;  %v589_v20 = vld [vmem:[#allocation2] sm:$0xff] }
 0x109   :  { %v593_v29 = vadd.f32 %v589_v20, %v2293_v18  ;;  %v2388_v32 = vpop.f32.mrb[24].mxu0 }
 0x10a   :  { %v592_v31 = vld [vmem:[#allocation2 + $0x18] sm:$0xff]  ;;  %v2390_v34 = vadd.f32 %v419_v22, %v418_v17  ;;  %599 = vst.msk [vmem:[#allocation2 + $0x10] sm:$0xff] %vm93_vm1, %v595_v19  ;;  %v590_v37 = vld [vmem:[#allocation2 + $0x8] sm:$0xff]  ;;  %v2394_v38 = vpop.f32.mrb[25].mxu0 }
 0x10b   :  { %v596_v35 = vadd.f32 %v2296_v21, %v592_v31  ;;  %597 = vst.msk [vmem:[#allocation2] sm:$0xff] %vm93_vm1, %v593_v29  ;;  %v594_v15 = vadd.f32 %v590_v37, %v2299_v23  ;;  %v2398_v39 = vpop.f32.mrb[26].mxu0  ;;  %v2403_v47 = vpop.f32.mrb[24].mxu1 }
 0x10c   :  { %v2401_v18 = vpop.f32.mrb[27].mxu0  ;;  %v2406_v49 = vpop.f32.mrb[25].mxu1 }
 0x10d   :  { %600 = vst.msk [vmem:[#allocation2 + $0x18] sm:$0xff] %vm93_vm1, %v596_v35  ;;  %598 = vst.msk [vmem:[#allocation2 + $0x8] sm:$0xff] %vm93_vm1, %v594_v15  ;;  %v2408_v21 = vpop.f32.mrb[26].mxu1 }
 0x10e   :  { %v2410_v50 = vpop.f32.mrb[27].mxu1 }
 0x111   :  { %v681_v51 = vld [vmem:[#allocation2 + $0x10] sm:$0xff]  ;;  %v2412_v52 = vpop.f32.mrb[28].mxu0 }
 0x112   :  { %v685_v23 = vadd.f32 %v2303_v24, %v681_v51  ;;  %v679_v53 = vld [vmem:[#allocation2] sm:$0xff]  ;;  %v2415_v55 = vpop.f32.mrb[29].mxu0 }
 0x113   :  { %v683_v56 = vadd.f32 %v679_v53, %v2305_v25  ;;  %v2418_v59 = vpop.f32.mrb[30].mxu0  ;;  %v2424_v0 = vpop.f32.mrb[28].mxu1 }
 0x114   :  { %v682_v57 = vld [vmem:[#allocation2 + $0x18] sm:$0xff]  ;;  %689 = vst.msk [vmem:[#allocation2 + $0x10] sm:$0xff] %vm93_vm1, %v685_v23  ;;  %v680_v61 = vld [vmem:[#allocation2 + $0x8] sm:$0xff]  ;;  %v2422_v62 = vpop.f32.mrb[31].mxu0  ;;  %v2428_v3 = vpop.f32.mrb[29].mxu1 }
 0x115   :  { %v686_v60 = vadd.f32 %v2307_v26, %v682_v57  ;;  %687 = vst.msk [vmem:[#allocation2] sm:$0xff] %vm93_vm1, %v683_v56  ;;  %v684_v24 = vadd.f32 %v680_v61, %v2309_v27  ;;  %v2431_v25 = vpop.f32.mrb[30].mxu1 }
 0x116   :  { %v2434_v4 = vpop.f32.mrb[31].mxu1 }
 0x117   :  { %690 = vst.msk [vmem:[#allocation2 + $0x18] sm:$0xff] %vm93_vm1, %v686_v60  ;;  %688 = vst.msk [vmem:[#allocation2 + $0x8] sm:$0xff] %vm93_vm1, %v684_v24 }
 0x11b   :  { %v772_v26 = vld [vmem:[#allocation2 + $0x10] sm:$0xff] }
 0x11c   :  { %v776_v5 = vadd.f32 %v2311_v28, %v772_v26  ;;  %v770_v6 = vld [vmem:[#allocation2] sm:$0xff]  ;;  %v403_v28 = vrot.slane %v2383_v16, 4 }
 0x11d   :  { %v774_v8 = vadd.f32 %v770_v6, %v2313_v30 }
 0x11e   :  { %v773_v9 = vld [vmem:[#allocation2 + $0x18] sm:$0xff]  ;;  %780 = vst.msk [vmem:[#allocation2 + $0x10] sm:$0xff] %vm93_vm1, %v776_v5  ;;  %v771_v11 = vld [vmem:[#allocation2 + $0x8] sm:$0xff]  ;;  %v404_v15 = vadd.f32 %v403_v28, %v2383_v16 }
 0x11f   :  { %v777_v27 = vadd.f32 %v2315_v33, %v773_v9  ;;  %778 = vst.msk [vmem:[#allocation2] sm:$0xff] %vm93_vm1, %v774_v8  ;;  %v775_v12 = vadd.f32 %v771_v11, %v2317_v36  ;;  %v421_v36 = vrot.slane %v2390_v34, 4 }
 0x120   :  { %v405_v26 = vrot.slane %v404_v15, 2 }
 0x121   :  { %781 = vst.msk [vmem:[#allocation2 + $0x18] sm:$0xff] %vm93_vm1, %v777_v27  ;;  %779 = vst.msk [vmem:[#allocation2 + $0x8] sm:$0xff] %vm93_vm1, %v775_v12  ;;  %v422_v16 = vadd.f32 %v421_v36, %v2390_v34 }
 0x125   :  { %v784_v13 = vld [vmem:[#allocation2 + $0x10] sm:$0xff] }
 0x126   :  { %v1878_v17 = vpack.c.bf16 %v784_v13, %v784_v13  ;;  %919 = vst.msk [vmem:[#allocation2 + $0x10] sm:$0xff] %vm93_vm1, %v2321_v40  ;;  %v782_v30 = vld [vmem:[#allocation2] sm:$0xff]  ;;  %v823_v22 = vmul.f32 %v784_v13, %v784_v13  ;;  %v810_v51 = vsel %vm93_vm1, %v784_v13, 0.0  ;;  %v423_v13 = vrot.slane %v422_v16, 2 }
 0x127   :  { %v1876_v19 = vpack.c.bf16 %v782_v30, %v782_v30  ;;  %v821_v20 = vmul.f32 %v782_v30, %v782_v30  ;;  %917 = vst.msk [vmem:[#allocation2] sm:$0xff] %vm93_vm1, %v2324_v41  ;;  %v807_v41 = vsel %vm93_vm1, %v782_v30, 0.0 }
 0x128   :  { %v785_v33 = vld [vmem:[#allocation2 + $0x18] sm:$0xff]  ;;  %1766 = vst.msk [vmem:[%s2600_s2 + $0x18] sm:$0xf] %vm391_vm2, %v1878_v17  ;;  %v783_v40 = vld [vmem:[#allocation2 + $0x8] sm:$0xff]  ;;  %v828_v60 = vsel %vm93_vm1, %v823_v22, 0.0 }
 0x129   :  { %v1879_v29 = vpack.c.bf16 %v785_v33, %v785_v33  ;;  %920 = vst.msk [vmem:[#allocation2 + $0x18] sm:$0xff] %vm93_vm1, %v2327_v42  ;;  %v1877_v31 = vpack.c.bf16 %v783_v40, %v783_v40  ;;  %v808_v35 = vsel %vm93_vm1, %v783_v40, 0.0  ;;  %v822_v37 = vmul.f32 %v783_v40, %v783_v40  ;;  %918 = vst.msk [vmem:[#allocation2 + $0x8] sm:$0xff] %vm93_vm1, %v2329_v43 }
 0x12a   :  { %1764 = vst.msk [vmem:[%s2600_s2 + $0x10] sm:$0xf] %vm391_vm2, %v1876_v19  ;;  %v809_v42 = vadd.f32 %v808_v35, %v807_v41  ;;  %v825_v23 = vsel %vm93_vm1, %v821_v20, 0.0  ;;  %v824_v53 = vmul.f32 %v785_v33, %v785_v33  ;;  %v812_v61 = vsel %vm93_vm1, %v785_v33, 0.0 }
 0x12b   :  { %1767 = vst.msk [vmem:[%s2600_s2 + $0x1c] sm:$0xf] %vm391_vm2, %v1879_v29  ;;  %1765 = vst.msk [vmem:[%s2600_s2 + $0x14] sm:$0xf] %vm391_vm2, %v1877_v31  ;;  %v826_v43 = vsel %vm93_vm1, %v822_v37, 0.0  ;;  %v406_v20 = vadd.f32 %v405_v26, %v404_v15 }
 0x12c   :  { %v811_v56 = vadd.f32 %v810_v51, %v809_v42  ;;  %v827_v57 = vadd.f32 %v826_v43, %v825_v23  ;;  %v830_v27 = vsel %vm93_vm1, %v824_v53, 0.0 }
 0x12d   :  { %v1001_v24 = vld [vmem:[#allocation2 + $0x10] sm:$0xff]  ;;  %v407_v29 = vrot.slane %v406_v20, 1 }
 0x12e   :  { %v813_v5 = vadd.f32 %v812_v61, %v811_v56  ;;  %v829_v6 = vadd.f32 %v828_v60, %v827_v57  ;;  %v1005_v8 = vadd.f32 %v2331_v44, %v1001_v24  ;;  %v999_v9 = vld [vmem:[#allocation2] sm:$0xff] }
 0x12f   :  { %v1003_v11 = vadd.f32 %v999_v9, %v2333_v45  ;;  %v424_v45 = vadd.f32 %v423_v13, %v422_v16  ;;  %v408_v23 = vadd.f32 %v407_v29, %v406_v20 }
 0x130   :  { %v1002_v12 = vld [vmem:[#allocation2 + $0x18] sm:$0xff]  ;;  %v814_v34 = vrot.slane %v813_v5, 4  ;;  %v831_v28 = vadd.f32 %v830_v27, %v829_v6  ;;  %1009 = vst.msk [vmem:[#allocation2 + $0x10] sm:$0xff] %vm93_vm1, %v1005_v8  ;;  %v1000_v30 = vld [vmem:[#allocation2 + $0x8] sm:$0xff] }
 0x131   :  { %v1006_v17 = vadd.f32 %v2335_v46, %v1002_v12  ;;  %1007 = vst.msk [vmem:[#allocation2] sm:$0xff] %vm93_vm1, %v1003_v11  ;;  %v1004_v19 = vadd.f32 %v1000_v30, %v2337_v48  ;;  %v425_v46 = vrot.slane %v424_v45, 1 }
 0x132   :  { %v815_v44 = vadd.f32 %v814_v34, %v813_v5  ;;  %v832_v33 = vrot.slane %v831_v28, 4 }
 0x133   :  { %1010 = vst.msk [vmem:[#allocation2 + $0x18] sm:$0xff] %vm93_vm1, %v1006_v17  ;;  %1008 = vst.msk [vmem:[#allocation2 + $0x8] sm:$0xff] %vm93_vm1, %v1004_v19  ;;  %v426_v60 = vadd.f32 %v425_v46, %v424_v45 }
 0x134   :  { %v816_v36 = vrot.slane %v815_v44, 2  ;;  %v833_v22 = vadd.f32 %v832_v33, %v831_v28 }
 0x136   :  { %v817_v40 = vadd.f32 %v816_v36, %v815_v44  ;;  %v834_v41 = vrot.slane %v833_v22, 2 }
 0x137   :  { %v1092_v31 = vld [vmem:[#allocation2 + $0x10] sm:$0xff] }
 0x138   :  { %v818_v35 = vrot.slane %v817_v40, 1  ;;  %v835_v37 = vadd.f32 %v834_v41, %v833_v22  ;;  %v1096_v42 = vadd.f32 %v2341_v54, %v1092_v31  ;;  %v1090_v48 = vld [vmem:[#allocation2] sm:$0xff] }
 0x139   :  { %v1094_v15 = vadd.f32 %v1090_v48, %v2348_v58 }
 0x13a   :  { %v1093_v51 = vld [vmem:[#allocation2 + $0x18] sm:$0xff]  ;;  %v819_v53 = vadd.f32 %v818_v35, %v817_v40  ;;  %v836_v43 = vrot.slane %v835_v37, 1  ;;  %1100 = vst.msk [vmem:[#allocation2 + $0x10] sm:$0xff] %vm93_vm1, %v1096_v42  ;;  %v1091_v56 = vld [vmem:[#allocation2 + $0x8] sm:$0xff] }
 0x13b   :  { %v1097_v16 = vadd.f32 %v2358_v63, %v1093_v51  ;;  %1098 = vst.msk [vmem:[#allocation2] sm:$0xff] %vm93_vm1, %v1094_v15  ;;  %v1095_v57 = vadd.f32 %v1091_v56, %v2364_v1 }
 0x13c   :  { %v2494_v61 = vadd.f32 %v819_v53, %v408_v23  ;;  %v837_v54 = vadd.f32 %v836_v43, %v835_v37 }
 0x13d   :  { %1101 = vst.msk [vmem:[#allocation2 + $0x18] sm:$0xff] %vm93_vm1, %v1097_v16  ;;  %1099 = vst.msk [vmem:[#allocation2 + $0x8] sm:$0xff] %vm93_vm1, %v1095_v57 }
 0x13e   :  { %v2498_v58 = vadd.f32 %v837_v54, %v426_v60 }
 0x141   :  { %v1183_v24 = vld [vmem:[#allocation2 + $0x10] sm:$0xff] }
 0x142   :  { %v1187_v26 = vadd.f32 %v2366_v2, %v1183_v24  ;;  %v1181_v5 = vld [vmem:[#allocation2] sm:$0xff] }
 0x143   :  { %v1185_v63 = vadd.f32 %v1181_v5, %v2375_v7 }
 0x144   :  { %v1184_v6 = vld [vmem:[#allocation2 + $0x18] sm:$0xff]  ;;  %1191 = vst.msk [vmem:[#allocation2 + $0x10] sm:$0xff] %vm93_vm1, %v1187_v26  ;;  %v1182_v8 = vld [vmem:[#allocation2 + $0x8] sm:$0xff] }
 0x145   :  { %v1188_v1 = vadd.f32 %v2377_v10, %v1184_v6  ;;  %1189 = vst.msk [vmem:[#allocation2] sm:$0xff] %vm93_vm1, %v1185_v63  ;;  %v1186_v9 = vadd.f32 %v1182_v8, %v2381_v14 }
 0x147   :  { %1192 = vst.msk [vmem:[#allocation2 + $0x18] sm:$0xff] %vm93_vm1, %v1188_v1  ;;  %1190 = vst.msk [vmem:[#allocation2 + $0x8] sm:$0xff] %vm93_vm1, %v1186_v9 }
 0x14b   :  { %v1195_v27 = vld [vmem:[#allocation2 + $0x10] sm:$0xff] }
 0x14c   :  { %v1882_v11 = vpack.c.bf16 %v1195_v27, %v1195_v27  ;;  %1330 = vst.msk [vmem:[#allocation2 + $0x10] sm:$0xff] %vm93_vm1, %v2388_v32  ;;  %v1193_v2 = vld [vmem:[#allocation2] sm:$0xff]  ;;  %v1234_v41 = vmul.f32 %v1195_v27, %v1195_v27 }
 0x14d   :  { %v1880_v7 = vpack.c.bf16 %v1193_v2, %v1193_v2  ;;  %1328 = vst.msk [vmem:[#allocation2] sm:$0xff] %vm93_vm1, %v2394_v38  ;;  %v1218_v22 = vsel %vm93_vm1, %v1193_v2, 0.0 }
 0x14e   :  { %v1196_v10 = vld [vmem:[#allocation2 + $0x18] sm:$0xff]  ;;  %1818 = vst.msk [vmem:[%s2600_s2 + $0x28] sm:$0xf] %vm391_vm2, %v1882_v11  ;;  %v1194_v12 = vld [vmem:[#allocation2 + $0x8] sm:$0xff]  ;;  %v1239_v35 = vsel %vm93_vm1, %v1234_v41, 0.0 }
 0x14f   :  { %v1883_v14 = vpack.c.bf16 %v1196_v10, %v1196_v10  ;;  %1331 = vst.msk [vmem:[#allocation2 + $0x18] sm:$0xff] %vm93_vm1, %v2398_v39  ;;  %v1881_v32 = vpack.c.bf16 %v1194_v12, %v1194_v12  ;;  %1329 = vst.msk [vmem:[#allocation2 + $0x8] sm:$0xff] %vm93_vm1, %v2401_v18  ;;  %v1233_v19 = vmul.f32 %v1194_v12, %v1194_v12  ;;  %v1219_v33 = vsel %vm93_vm1, %v1194_v12, 0.0 }
 0x150   :  { %1816 = vst.msk [vmem:[%s2600_s2 + $0x20] sm:$0xf] %vm391_vm2, %v1880_v7  ;;  %v1220_v40 = vadd.f32 %v1219_v33, %v1218_v22  ;;  %v1235_v37 = vmul.f32 %v1196_v10, %v1196_v10  ;;  %v1223_v51 = vsel %vm93_vm1, %v1196_v10, 0.0 }
 0x151   :  { %1819 = vst.msk [vmem:[%s2600_s2 + $0x2c] sm:$0xf] %vm391_vm2, %v1883_v14  ;;  %1817 = vst.msk [vmem:[%s2600_s2 + $0x24] sm:$0xf] %vm391_vm2, %v1881_v32  ;;  %v1237_v29 = vsel %vm93_vm1, %v1233_v19, 0.0 }
 0x152   :  { %v1241_v57 = vsel %vm93_vm1, %v1235_v37, 0.0 }
 0x153   :  { %v1412_v38 = vld [vmem:[#allocation2 + $0x10] sm:$0xff] }
 0x154   :  { %v1416_v39 = vadd.f32 %v2403_v47, %v1412_v38  ;;  %v1410_v13 = vld [vmem:[#allocation2] sm:$0xff] }
 0x155   :  { %v1414_v34 = vadd.f32 %v1410_v13, %v2406_v49  ;;  %v1232_v49 = vmul.f32 %v1193_v2, %v1193_v2 }
 0x156   :  { %v1413_v28 = vld [vmem:[#allocation2 + $0x18] sm:$0xff]  ;;  %1420 = vst.msk [vmem:[#allocation2 + $0x10] sm:$0xff] %vm93_vm1, %v1416_v39  ;;  %v1411_v17 = vld [vmem:[#allocation2 + $0x8] sm:$0xff] }
 0x157   :  { %v1417_v18 = vadd.f32 %v2408_v21, %v1413_v28  ;;  %1418 = vst.msk [vmem:[#allocation2] sm:$0xff] %vm93_vm1, %v1414_v34  ;;  %v1415_v30 = vadd.f32 %v1411_v17, %v2410_v50 }
 0x159   :  { %1421 = vst.msk [vmem:[#allocation2 + $0x18] sm:$0xff] %vm93_vm1, %v1417_v18  ;;  %1419 = vst.msk [vmem:[#allocation2 + $0x8] sm:$0xff] %vm93_vm1, %v1415_v30 }
 0x15d   :  { %v1502_v20 = vld [vmem:[#allocation2 + $0x10] sm:$0xff] }
 0x15e   :  { %v1506_v47 = vadd.f32 %v2412_v52, %v1502_v20  ;;  %v1500_v44 = vld [vmem:[#allocation2] sm:$0xff] }
 0x15f   :  { %v1504_v45 = vadd.f32 %v1500_v44, %v2415_v55  ;;  %v1236_v55 = vsel %vm93_vm1, %v1232_v49, 0.0 }
 0x160   :  { %v1503_v21 = vld [vmem:[#allocation2 + $0x18] sm:$0xff]  ;;  %1510 = vst.msk [vmem:[#allocation2 + $0x10] sm:$0xff] %vm93_vm1, %v1506_v47  ;;  %v1501_v50 = vld [vmem:[#allocation2 + $0x8] sm:$0xff]  ;;  %v1238_v31 = vadd.f32 %v1237_v29, %v1236_v55 }
 0x161   :  { %v1507_v36 = vadd.f32 %v2418_v59, %v1503_v21  ;;  %1508 = vst.msk [vmem:[#allocation2] sm:$0xff] %vm93_vm1, %v1504_v45  ;;  %v1505_v52 = vadd.f32 %v1501_v50, %v2422_v62  ;;  %v1221_v59 = vsel %vm93_vm1, %v1195_v27, 0.0 }
 0x162   :  { %v1222_v46 = vadd.f32 %v1221_v59, %v1220_v40  ;;  %v1240_v48 = vadd.f32 %v1239_v35, %v1238_v31 }
 0x163   :  { %1511 = vst.msk [vmem:[#allocation2 + $0x18] sm:$0xff] %vm93_vm1, %v1507_v36  ;;  %1509 = vst.msk [vmem:[#allocation2 + $0x8] sm:$0xff] %vm93_vm1, %v1505_v52 }
 0x164   :  { %v1224_v43 = vadd.f32 %v1223_v51, %v1222_v46  ;;  %v1242_v54 = vadd.f32 %v1241_v57, %v1240_v48 }
 0x167   :  { %v1593_v42 = vld [vmem:[#allocation2 + $0x10] sm:$0xff] }
 0x168   :  { %v1597_v15 = vadd.f32 %v2424_v0, %v1593_v42  ;;  %v1591_v62 = vld [vmem:[#allocation2] sm:$0xff]  ;;  %v1225_v0 = vrot.slane %v1224_v43, 4 }
 0x169   :  { %v1595_v23 = vadd.f32 %v1591_v62, %v2428_v3  ;;  %v1243_v3 = vrot.slane %v1242_v54, 4 }
 0x16a   :  { %v1594_v53 = vld [vmem:[#allocation2 + $0x18] sm:$0xff]  ;;  %1601 = vst.msk [vmem:[#allocation2 + $0x10] sm:$0xff] %vm93_vm1, %v1597_v15  ;;  %v1592_v56 = vld [vmem:[#allocation2 + $0x8] sm:$0xff]  ;;  %v1226_v26 = vadd.f32 %v1225_v0, %v1224_v43 }
 0x16b   :  { %v1598_v16 = vadd.f32 %v2431_v25, %v1594_v53  ;;  %1599 = vst.msk [vmem:[#allocation2] sm:$0xff] %vm93_vm1, %v1595_v23  ;;  %v1596_v60 = vadd.f32 %v1592_v56, %v2434_v4  ;;  %v1244_v8 = vadd.f32 %v1243_v3, %v1242_v54 }
 0x16c   :  { %v1227_v14 = vrot.slane %v1226_v26, 2 }
 0x16d   :  { %1602 = vst.msk [vmem:[#allocation2 + $0x18] sm:$0xff] %vm93_vm1, %v1598_v16  ;;  %1600 = vst.msk [vmem:[#allocation2 + $0x8] sm:$0xff] %vm93_vm1, %v1596_v60  ;;  %v1245_v34 = vrot.slane %v1244_v8, 2 }
 0x16e   :  { %v1228_v19 = vadd.f32 %v1227_v14, %v1226_v26 }
 0x16f   :  { %v1246_v49 = vadd.f32 %v1245_v34, %v1244_v8 }
 0x170   :  { %v1229_v21 = vrot.slane %v1228_v19, 1 }
 0x171   :  { %v1605_v24 = vld [vmem:[#allocation2 + $0x10] sm:$0xff]  ;;  %v1247_v22 = vrot.slane %v1246_v49, 1 }
 0x172   :  { %v1886_v5 = vpack.c.bf16 %v1605_v24, %v1605_v24  ;;  %v1603_v63 = vld [vmem:[#allocation2] sm:$0xff]  ;;  %v1644_v4 = vmul.f32 %v1605_v24, %v1605_v24  ;;  %v1631_v32 = vsel %vm93_vm1, %v1605_v24, 0.0  ;;  %v1230_v40 = vadd.f32 %v1229_v21, %v1228_v19 }
 0x173   :  { %v1884_v6 = vpack.c.bf16 %v1603_v63, %v1603_v63  ;;  %v1642_v25 = vmul.f32 %v1603_v63, %v1603_v63  ;;  %v1628_v11 = vsel %vm93_vm1, %v1603_v63, 0.0  ;;  %v1248_v31 = vadd.f32 %v1247_v22, %v1246_v49 }
 0x174   :  { %v1606_v1 = vld [vmem:[#allocation2 + $0x18] sm:$0xff]  ;;  %1870 = vst.msk [vmem:[%s2600_s2 + $0x38] sm:$0xf] %vm391_vm2, %v1886_v5  ;;  %v1604_v27 = vld [vmem:[#allocation2 + $0x8] sm:$0xff]  ;;  %v1649_v17 = vsel %vm93_vm1, %v1644_v4, 0.0  ;;  %v1231_v35 = vadd.f32 %v1230_v40, %v2494_v61 }
 0x175   :  { %v1887_v9 = vpack.c.bf16 %v1606_v1, %v1606_v1  ;;  %1868 = vst.msk [vmem:[%s2600_s2 + $0x30] sm:$0xf] %vm391_vm2, %v1884_v6  ;;  %v1885_v2 = vpack.c.bf16 %v1604_v27, %v1604_v27  ;;  %v1629_v7 = vsel %vm93_vm1, %v1604_v27, 0.0  ;;  %v1643_v10 = vmul.f32 %v1604_v27, %v1604_v27 }
 0x176   :  { %v1630_v12 = vadd.f32 %v1629_v7, %v1628_v11  ;;  %v1646_v38 = vsel %vm93_vm1, %v1642_v25, 0.0  ;;  %v1645_v39 = vmul.f32 %v1606_v1, %v1606_v1  ;;  %v1633_v30 = vsel %vm93_vm1, %v1606_v1, 0.0 }
 0x177   :  { %1871 = vst.msk [vmem:[%s2600_s2 + $0x3c] sm:$0xf] %vm391_vm2, %v1887_v9  ;;  %1869 = vst.msk [vmem:[%s2600_s2 + $0x34] sm:$0xf] %vm391_vm2, %v1885_v2  ;;  %v1647_v13 = vsel %vm93_vm1, %v1643_v10, 0.0  ;;  %v1249_v48 = vadd.f32 %v1248_v31, %v2498_v58 }
 0x178   :  { %v1632_v28 = vadd.f32 %v1631_v32, %v1630_v12  ;;  %v1648_v18 = vadd.f32 %v1647_v13, %v1646_v38  ;;  %v1651_v44 = vsel %vm93_vm1, %v1645_v39, 0.0 }
 0x17a   :  { %v1634_v20 = vadd.f32 %v1633_v30, %v1632_v28  ;;  %v1650_v47 = vadd.f32 %v1649_v17, %v1648_v18 }
 0x17c   :  { %v1635_v33 = vrot.slane %v1634_v20, 4  ;;  %v1652_v45 = vadd.f32 %v1651_v44, %v1650_v47 }
 0x17e   :  { %v1636_v36 = vadd.f32 %v1635_v33, %v1634_v20  ;;  %v1653_v50 = vrot.slane %v1652_v45, 4 }
 0x180   :  { %v1637_v29 = vrot.slane %v1636_v36, 2  ;;  %v1654_v52 = vadd.f32 %v1653_v50, %v1652_v45 }
 0x182   :  { %v1638_v41 = vadd.f32 %v1637_v29, %v1636_v36  ;;  %v1655_v55 = vrot.slane %v1654_v52, 2 }
 0x184   :  { %v1639_v59 = vrot.slane %v1638_v41, 1  ;;  %v1656_v46 = vadd.f32 %v1655_v55, %v1654_v52 }
 0x186   :  { %v1640_v37 = vadd.f32 %v1639_v59, %v1638_v41  ;;  %v1657_v42 = vrot.slane %v1656_v46, 1 }
 0x188   :  { %v1641_v15 = vadd.f32 %v1640_v37, %v1231_v35  ;;  %v1658_v62 = vadd.f32 %v1657_v42, %v1656_v46 }
 0x18a   :  { %v1659_v51 = vadd.f32 %v1658_v62, %v1249_v48  ;;  %1660 = vst.msk [vmem:[%s2601_s3] sm:$0xff] %vm93_vm1, %v1641_v15 }
 0x18c   :  { %1661 = vst.msk [vmem:[%s2602_s4] sm:$0xff] %vm93_vm1, %v1659_v51 }

// kernel: a_call__.5
= control target key start
LH: loop header
LB: loop body
LE: loop exit
PB: predicated region body
PF: predicated region fallthrough
CT: control target
= control target key end

     0   :  { %vm94_vm0 = vcmask 1043456   ;;  %vm69_vm1 = vcmask 64512   ;;  %vm195_vm2 = vcmask 23552   ;;  %s6155_s1 = inlined_call_operand.vmem [shape: bf16[4,4,8,3], index: 1, kind: input, shape index: {}]   ;;  %s6156_s0 = inlined_call_operand.vmem [shape: bf16[9,128,8], index: 0, kind: input, shape index: {}]   ;;  %s6157_s2 = inlined_call_operand.vmem [shape: f32[4,128,3], index: 2, kind: output, shape index: {}]  }
   0x1   :  { %v28_v0 = vld [vmem:[%s6155_s1] sm:$0xf]  ;;  %v4781_v3 = vld [vmem:[%s6156_s0 + $0x8] sm:$0xff]   ;;  %v3805_v5 = vld [vmem:[%s6155_s1 + $0x4] sm:$0xf] }
   0x2   :  { %4764 = vmatprep.subr.msk.bf16.mxu0 %vm94_vm0, %v28_v0  ;;  %v96_v1 = vsel %vm94_vm0, %v28_v0, 0  ;;  %v4780_v2 = vld [vmem:[%s6156_s0] sm:$0xff]   ;;  %v3838_v4 = vld [vmem:[%s6155_s1 + $0x8] sm:$0xf]  ;;  %v296_v7 = vsel %vm94_vm0, %v3805_v5, 0  ;;  %4765 = vmatprep.subr.msk.bf16.mxu1 %vm94_vm0, %v3805_v5  ;;  %v4782_v8 = vld [vmem:[%s6156_s0 + $0x10] sm:$0xff]  }
   0x3   :  { %4477 = vmatpush3.bf16.msra.mxu0 %v96_v1  ;;  %4478 = vmatprep.mubr.msk.bf16.mxu0 %vm69_vm1, %v4780_v2  ;;  %v527_v6 = vsel %vm94_vm0, %v3838_v4, 0  ;;  %v4783_v9 = vld [vmem:[%s6156_s0 + $0x40] sm:$0xff]   ;;  %v4785_v10 = vld [vmem:[%s6156_s0 + $0x48] sm:$0xff]   ;;  %v4784_v12 = vld [vmem:[%s6156_s0 + $0x18] sm:$0xff]  }
   0x4   :  { %4766 = vmatprep.subr.msk.bf16.mxu0 %vm94_vm0, %v3838_v4  ;;  %4495 = vmatpush3.bf16.msra.mxu1 %v296_v7  ;;  %v3871_v11 = vld [vmem:[%s6155_s1 + $0xc] sm:$0xf]  ;;  %v4787_v14 = vld [vmem:[%s6156_s0 + $0x50] sm:$0xff]   ;;  %v4786_v15 = vld [vmem:[%s6156_s0 + $0x20] sm:$0xff]  }
   0x5   :  { %4496 = vmatprep.mubr.msk.bf16.mxu1 %vm69_vm1, %v4783_v9  ;;  %4767 = vmatprep.subr.msk.bf16.mxu1 %vm94_vm0, %v3871_v11  ;;  %v758_v13 = vsel %vm94_vm0, %v3871_v11, 0  ;;  %v4789_v16 = vld [vmem:[%s6156_s0 + $0x58] sm:$0xff]   ;;  %v4791_v17 = vld [vmem:[%s6156_s0 + $0x60] sm:$0xff]   ;;  %v4788_v18 = vld [vmem:[%s6156_s0 + $0x28] sm:$0xff]  }
   0x6   :  { %4479 = vmatmul.mubr.msk.bf16.vlgmr.msra.gmra.mrb[0].mxu0 %vm69_vm1, %v4781_v3  ;;  %v4790_v19 = vld [vmem:[%s6156_s0 + $0x30] sm:$0xff]   ;;  %v4793_v21 = vld [vmem:[%s6156_s0 + $0x68] sm:$0xff]   ;;  %v4792_v24 = vld [vmem:[%s6156_s0 + $0x38] sm:$0xff]  }
   0x7   :  { %4513 = vmatpush3.bf16.msra.mxu0 %v527_v6  ;;  %4482 = vmatprep.mubr.msk.bf16.mxu0 %vm69_vm1, %v4782_v8  ;;  %v3904_v20 = vld [vmem:[%s6155_s1 + $0x10] sm:$0xf]  ;;  %v3937_v23 = vld [vmem:[%s6155_s1 + $0x14] sm:$0xf]  ;;  %v4795_v25 = vld [vmem:[%s6156_s0 + $0xc0] sm:$0xff]  }
   0x8   :  { %4497 = vmatmul.mubr.msk.bf16.vlgmr.msra.gmra.mrb[0].mxu1 %vm69_vm1, %v4785_v10  ;;  %4768 = vmatprep.subr.msk.bf16.mxu0 %vm94_vm0, %v3904_v20  ;;  %v4794_v22 = vld [vmem:[%s6156_s0 + $0x70] sm:$0xff]   ;;  %v4796_v26 = vld [vmem:[%s6156_s0 + $0x78] sm:$0xff]   ;;  %v4799_v27 = vld [vmem:[%s6156_s0 + $0x100] sm:$0xff]   ;;  %v1036_v30 = vsel %vm94_vm0, %v3904_v20, 0  ;;  %v1235_v34 = vsel %vm94_vm0, %v3937_v23, 0 }
   0x9   :  { %4531 = vmatpush3.bf16.msra.mxu1 %v758_v13  ;;  %4500 = vmatprep.mubr.msk.bf16.mxu1 %vm69_vm1, %v4787_v14  ;;  %v4797_v28 = vld [vmem:[%s6156_s0 + $0xc8] sm:$0xff]   ;;  %v4798_v29 = vld [vmem:[%s6156_s0 + $0xd0] sm:$0xff]   ;;  %v3970_v31 = vld [vmem:[%s6155_s1 + $0x18] sm:$0xf] }
   0xa   :  { %4769 = vmatprep.subr.msk.bf16.mxu1 %vm94_vm0, %v3937_v23  ;;  %v4801_v32 = vld [vmem:[%s6156_s0 + $0x108] sm:$0xff]   ;;  %v4803_v33 = vld [vmem:[%s6156_s0 + $0x110] sm:$0xff]   ;;  %v4003_v35 = vld [vmem:[%s6155_s1 + $0x1c] sm:$0xf]  ;;  %v1465_v50 = vsel %vm94_vm0, %v3970_v31, 0 }
   0xb   :  { %v4800_v36 = vld [vmem:[%s6156_s0 + $0xd8] sm:$0xff]   ;;  %v4802_v37 = vld [vmem:[%s6156_s0 + $0xe0] sm:$0xff]   ;;  %v4804_v40 = vld [vmem:[%s6156_s0 + $0xe8] sm:$0xff]   ;;  %v1696_v54 = vsel %vm94_vm0, %v4003_v35, 0 }
   0xc   :  { %v4805_v38 = vld [vmem:[%s6156_s0 + $0x118] sm:$0xff]   ;;  %v4807_v39 = vld [vmem:[%s6156_s0 + $0x120] sm:$0xff]   ;;  %v4806_v41 = vld [vmem:[%s6156_s0 + $0xf0] sm:$0xff]  }
   0xd   :  { %v4809_v42 = vld [vmem:[%s6156_s0 + $0x128] sm:$0xff]   ;;  %v4810_v43 = vld [vmem:[%s6156_s0 + $0x130] sm:$0xff]   ;;  %v4808_v44 = vld [vmem:[%s6156_s0 + $0xf8] sm:$0xff]  }
   0xe   :  { %4483 = vmatmul.mubr.msk.bf16.gmra.mrb[4].mxu0 %vm69_vm1, %v4784_v12  ;;  %v4811_v45 = vld [vmem:[%s6156_s0 + $0x40] sm:$0xff]   ;;  %v4812_v46 = vld [vmem:[%s6156_s0 + $0x138] sm:$0xff]   ;;  %v4813_v48 = vld [vmem:[%s6156_s0 + $0x48] sm:$0xff]  }
   0xf   :  { %4486 = vmatprep.mubr.msk.bf16.mxu0 %vm69_vm1, %v4786_v15  ;;  %v4815_v47 = vld [vmem:[%s6156_s0 + $0x80] sm:$0xff]   ;;  %v4814_v49 = vld [vmem:[%s6156_s0 + $0x50] sm:$0xff]   ;;  %v4817_v52 = vld [vmem:[%s6156_s0 + $0x88] sm:$0xff]  }
  0x10   :  { %4501 = vmatmul.mubr.msk.bf16.gmra.mrb[4].mxu1 %vm69_vm1, %v4789_v16  ;;  %v4052_v51 = vld [vmem:[%s6155_s1 + $0x20] sm:$0xf]  ;;  %v4819_v53 = vld [vmem:[%s6156_s0 + $0x90] sm:$0xff]   ;;  %v4085_v55 = vld [vmem:[%s6155_s1 + $0x24] sm:$0xf] }
  0x11   :  { %4504 = vmatprep.mubr.msk.bf16.mxu1 %vm69_vm1, %v4791_v17  ;;  %v4816_v56 = vld [vmem:[%s6156_s0 + $0x58] sm:$0xff]   ;;  %v4818_v57 = vld [vmem:[%s6156_s0 + $0x60] sm:$0xff]   ;;  %v4820_v60 = vld [vmem:[%s6156_s0 + $0x68] sm:$0xff]   ;;  %v1975_v6 = vsel %vm94_vm0, %v4052_v51, 0  ;;  %v2173_v10 = vsel %vm94_vm0, %v4085_v55, 0 }
  0x12   :  { %v4821_v58 = vld [vmem:[%s6156_s0 + $0x98] sm:$0xff]   ;;  %v4823_v59 = vld [vmem:[%s6156_s0 + $0xa0] sm:$0xff]   ;;  %v4822_v61 = vld [vmem:[%s6156_s0 + $0x70] sm:$0xff]  }
  0x13   :  { %v4825_v62 = vld [vmem:[%s6156_s0 + $0xa8] sm:$0xff]   ;;  %v4826_v63 = vld [vmem:[%s6156_s0 + $0xb0] sm:$0xff]   ;;  %v4824_v0 = vld [vmem:[%s6156_s0 + $0x78] sm:$0xff]  }
  0x14   :  { %v4827_v1 = vld [vmem:[%s6156_s0 + $0x100] sm:$0xff]   ;;  %v4828_v2 = vld [vmem:[%s6156_s0 + $0xb8] sm:$0xff]   ;;  %v4829_v4 = vld [vmem:[%s6156_s0 + $0x108] sm:$0xff]  }
  0x15   :  { %v4831_v3 = vld [vmem:[%s6156_s0 + $0x140] sm:$0xff]   ;;  %v4830_v5 = vld [vmem:[%s6156_s0 + $0x110] sm:$0xff]   ;;  %v4118_v7 = vld [vmem:[%s6155_s1 + $0x28] sm:$0xf] }
  0x16   :  { %4487 = vmatmul.mubr.msk.bf16.gmra.mrb[8].mxu0 %vm69_vm1, %v4788_v18  ;;  %v4833_v8 = vld [vmem:[%s6156_s0 + $0x148] sm:$0xff]   ;;  %v4835_v9 = vld [vmem:[%s6156_s0 + $0x150] sm:$0xff]   ;;  %v4832_v12 = vld [vmem:[%s6156_s0 + $0x118] sm:$0xff]  }
  0x17   :  { %4490 = vmatprep.mubr.msk.bf16.mxu0 %vm69_vm1, %v4790_v19  ;;  %v4151_v11 = vld [vmem:[%s6155_s1 + $0x2c] sm:$0xf]  ;;  %v4834_v13 = vld [vmem:[%s6156_s0 + $0x120] sm:$0xff]   ;;  %v4837_v14 = vld [vmem:[%s6156_s0 + $0x158] sm:$0xff]  }
  0x18   :  { %4505 = vmatmul.mubr.msk.bf16.gmra.mrb[8].mxu1 %vm69_vm1, %v4793_v21  ;;  %v4839_v15 = vld [vmem:[%s6156_s0 + $0x160] sm:$0xff]   ;;  %v4836_v16 = vld [vmem:[%s6156_s0 + $0x128] sm:$0xff]   ;;  %v4838_v17 = vld [vmem:[%s6156_s0 + $0x130] sm:$0xff]  }
  0x19   :  { %4508 = vmatprep.mubr.msk.bf16.mxu1 %vm69_vm1, %v4794_v22  ;;  %v4841_v18 = vld [vmem:[%s6156_s0 + $0x168] sm:$0xff]   ;;  %v4842_v19 = vld [vmem:[%s6156_s0 + $0x170] sm:$0xff]   ;;  %v4840_v20 = vld [vmem:[%s6156_s0 + $0x138] sm:$0xff]  }
  0x1a   :  { %v4843_v21 = vld [vmem:[%s6156_s0 + $0xc0] sm:$0xff]   ;;  %v4844_v22 = vld [vmem:[%s6156_s0 + $0x178] sm:$0xff]  }
  0x1b   :  { %v4847_v23 = vld [vmem:[%s6156_s0 + $0x100] sm:$0xff]  }
  0x1e   :  { %4491 = vmatmul.mubr.msk.bf16.gmra.mrb[12].mxu0 %vm69_vm1, %v4792_v24  ;;  %v4845_v24 = vld [vmem:[%s6156_s0 + $0xc8] sm:$0xff]  }
  0x1f   :  { %4514 = vmatprep.mubr.msk.bf16.mxu0 %vm69_vm1, %v4795_v25  ;;  %v4846_v25 = vld [vmem:[%s6156_s0 + $0xd0] sm:$0xff]  }
  0x20   :  { %4509 = vmatmul.mubr.msk.bf16.gmra.mrb[12].mxu1 %vm69_vm1, %v4796_v26  ;;  %v2404_v26 = vsel %vm94_vm0, %v4118_v7, 0 }
  0x21   :  { %4532 = vmatprep.mubr.msk.bf16.mxu1 %vm69_vm1, %v4799_v27  ;;  %v4200_v27 = vld [vmem:[%s6155_s1 + $0x30] sm:$0xf] }
  0x26   :  { %4515 = vmatmul.mubr.msk.bf16.vlgmr.msra.gmra.mrb[16].mxu0 %vm69_vm1, %v4797_v28  ;;  %v4849_v28 = vld [vmem:[%s6156_s0 + $0x108] sm:$0xff]  }
  0x27   :  { %4549 = vmatpush3.bf16.msra.mxu0 %v1036_v30  ;;  %4518 = vmatprep.mubr.msk.bf16.mxu0 %vm69_vm1, %v4798_v29  ;;  %v4851_v29 = vld [vmem:[%s6156_s0 + $0x110] sm:$0xff]   ;;  %v2635_v30 = vsel %vm94_vm0, %v4151_v11, 0 }
  0x28   :  { %4770 = vmatprep.subr.msk.bf16.mxu0 %vm94_vm0, %v3970_v31  ;;  %4533 = vmatmul.mubr.msk.bf16.vlgmr.msra.gmra.mrb[16].mxu1 %vm69_vm1, %v4801_v32  ;;  %v4233_v31 = vld [vmem:[%s6155_s1 + $0x34] sm:$0xf]  ;;  %v4848_v32 = vld [vmem:[%s6156_s0 + $0xd8] sm:$0xff]  }
  0x29   :  { %4567 = vmatpush3.bf16.msra.mxu1 %v1235_v34  ;;  %4536 = vmatprep.mubr.msk.bf16.mxu1 %vm69_vm1, %v4803_v33  ;;  %v4850_v33 = vld [vmem:[%s6156_s0 + $0xe0] sm:$0xff]   ;;  %v4853_v34 = vld [vmem:[%s6156_s0 + $0x118] sm:$0xff]  }
  0x2a   :  { %4771 = vmatprep.subr.msk.bf16.mxu1 %vm94_vm0, %v4003_v35  ;;  %v4855_v35 = vld [vmem:[%s6156_s0 + $0x120] sm:$0xff]  }
  0x2e   :  { %4519 = vmatmul.mubr.msk.bf16.gmra.mrb[20].mxu0 %vm69_vm1, %v4800_v36  ;;  %v4852_v36 = vld [vmem:[%s6156_s0 + $0xe8] sm:$0xff]  }
  0x2f   :  { %4522 = vmatprep.mubr.msk.bf16.mxu0 %vm69_vm1, %v4802_v37  ;;  %v4854_v37 = vld [vmem:[%s6156_s0 + $0xf0] sm:$0xff]  }
  0x30   :  { %4537 = vmatmul.mubr.msk.bf16.gmra.mrb[20].mxu1 %vm69_vm1, %v4805_v38  ;;  %v4857_v38 = vld [vmem:[%s6156_s0 + $0x128] sm:$0xff]  }
  0x31   :  { %4540 = vmatprep.mubr.msk.bf16.mxu1 %vm69_vm1, %v4807_v39  ;;  %v4858_v39 = vld [vmem:[%s6156_s0 + $0x130] sm:$0xff]  }
  0x36   :  { %4523 = vmatmul.mubr.msk.bf16.gmra.mrb[24].mxu0 %vm69_vm1, %v4804_v40  ;;  %v4856_v40 = vld [vmem:[%s6156_s0 + $0xf8] sm:$0xff]  }
  0x37   :  { %4526 = vmatprep.mubr.msk.bf16.mxu0 %vm69_vm1, %v4806_v41  ;;  %v4859_v41 = vld [vmem:[%s6156_s0 + $0x180] sm:$0xff]  }
  0x38   :  { %4541 = vmatmul.mubr.msk.bf16.gmra.mrb[24].mxu1 %vm69_vm1, %v4809_v42  ;;  %v4860_v42 = vld [vmem:[%s6156_s0 + $0x138] sm:$0xff]  }
  0x39   :  { %4544 = vmatprep.mubr.msk.bf16.mxu1 %vm69_vm1, %v4810_v43  ;;  %v4863_v43 = vld [vmem:[%s6156_s0 + $0x1c0] sm:$0xff]  }
  0x3e   :  { %4527 = vmatmul.mubr.msk.bf16.gmra.mrb[28].mxu0 %vm69_vm1, %v4808_v44  ;;  %v4861_v44 = vld [vmem:[%s6156_s0 + $0x188] sm:$0xff]  }
  0x3f   :  { %4550 = vmatprep.mubr.msk.bf16.mxu0 %vm69_vm1, %v4811_v45  ;;  %v4862_v45 = vld [vmem:[%s6156_s0 + $0x190] sm:$0xff]  }
  0x40   :  { %4545 = vmatmul.mubr.msk.bf16.gmra.mrb[28].mxu1 %vm69_vm1, %v4812_v46  ;;  %v2914_v46 = vsel %vm94_vm0, %v4200_v27, 0 }
  0x41   :  { %4568 = vmatprep.mubr.msk.bf16.mxu1 %vm69_vm1, %v4815_v47  ;;  %v4266_v47 = vld [vmem:[%s6155_s1 + $0x38] sm:$0xf] }
  0x46   :  { %4551 = vmatmul.mubr.msk.bf16.vlgmr.msra.gmra.mrb[32].mxu0 %vm69_vm1, %v4813_v48  ;;  %v4865_v48 = vld [vmem:[%s6156_s0 + $0x1c8] sm:$0xff]  }
  0x47   :  { %4585 = vmatpush3.bf16.msra.mxu0 %v1465_v50  ;;  %4554 = vmatprep.mubr.msk.bf16.mxu0 %vm69_vm1, %v4814_v49  ;;  %v4867_v49 = vld [vmem:[%s6156_s0 + $0x1d0] sm:$0xff]   ;;  %v3112_v50 = vsel %vm94_vm0, %v4233_v31, 0 }
  0x48   :  { %4772 = vmatprep.subr.msk.bf16.mxu0 %vm94_vm0, %v4052_v51  ;;  %4569 = vmatmul.mubr.msk.bf16.vlgmr.msra.gmra.mrb[32].mxu1 %vm69_vm1, %v4817_v52  ;;  %v4299_v51 = vld [vmem:[%s6155_s1 + $0x3c] sm:$0xf] }
  0x49   :  { %4603 = vmatpush3.bf16.msra.mxu1 %v1696_v54  ;;  %4572 = vmatprep.mubr.msk.bf16.mxu1 %vm69_vm1, %v4819_v53  ;;  %v4864_v52 = vld [vmem:[%s6156_s0 + $0x198] sm:$0xff]   ;;  %v4866_v53 = vld [vmem:[%s6156_s0 + $0x1a0] sm:$0xff]  }
  0x4a   :  { %4773 = vmatprep.subr.msk.bf16.mxu1 %vm94_vm0, %v4085_v55  ;;  %v4869_v54 = vld [vmem:[%s6156_s0 + $0x1d8] sm:$0xff]   ;;  %v4871_v55 = vld [vmem:[%s6156_s0 + $0x1e0] sm:$0xff]  }
  0x4e   :  { %4555 = vmatmul.mubr.msk.bf16.gmra.mrb[36].mxu0 %vm69_vm1, %v4816_v56  ;;  %v4868_v56 = vld [vmem:[%s6156_s0 + $0x1a8] sm:$0xff]  }
  0x4f   :  { %4558 = vmatprep.mubr.msk.bf16.mxu0 %vm69_vm1, %v4818_v57  ;;  %v4870_v57 = vld [vmem:[%s6156_s0 + $0x1b0] sm:$0xff]  }
  0x50   :  { %4573 = vmatmul.mubr.msk.bf16.gmra.mrb[36].mxu1 %vm69_vm1, %v4821_v58  ;;  %v4873_v58 = vld [vmem:[%s6156_s0 + $0x1e8] sm:$0xff]  }
  0x51   :  { %4576 = vmatprep.mubr.msk.bf16.mxu1 %vm69_vm1, %v4823_v59  ;;  %v4874_v59 = vld [vmem:[%s6156_s0 + $0x1f0] sm:$0xff]  }
  0x56   :  { %4559 = vmatmul.mubr.msk.bf16.gmra.mrb[40].mxu0 %vm69_vm1, %v4820_v60  ;;  %v4872_v60 = vld [vmem:[%s6156_s0 + $0x1b8] sm:$0xff]  }
  0x57   :  { %4562 = vmatprep.mubr.msk.bf16.mxu0 %vm69_vm1, %v4822_v61  ;;  %v4875_v61 = vld [vmem:[%s6156_s0 + $0x100] sm:$0xff]  }
  0x58   :  { %4577 = vmatmul.mubr.msk.bf16.gmra.mrb[40].mxu1 %vm69_vm1, %v4825_v62  ;;  %v4876_v62 = vld [vmem:[%s6156_s0 + $0x1f8] sm:$0xff]  }
  0x59   :  { %4580 = vmatprep.mubr.msk.bf16.mxu1 %vm69_vm1, %v4826_v63  ;;  %v4879_v63 = vld [vmem:[%s6156_s0 + $0x140] sm:$0xff]  }
  0x5e   :  { %4563 = vmatmul.mubr.msk.bf16.gmra.mrb[44].mxu0 %vm69_vm1, %v4824_v0  ;;  %v4877_v0 = vld [vmem:[%s6156_s0 + $0x108] sm:$0xff]  }
  0x5f   :  { %4586 = vmatprep.mubr.msk.bf16.mxu0 %vm69_vm1, %v4827_v1  ;;  %v4878_v1 = vld [vmem:[%s6156_s0 + $0x110] sm:$0xff]  }
  0x60   :  { %4581 = vmatmul.mubr.msk.bf16.gmra.mrb[44].mxu1 %vm69_vm1, %v4828_v2  ;;  %v3342_v2 = vsel %vm94_vm0, %v4266_v47, 0 }
  0x61   :  { %4604 = vmatprep.mubr.msk.bf16.mxu1 %vm69_vm1, %v4831_v3  ;;  %v4881_v3 = vld [vmem:[%s6156_s0 + $0x148] sm:$0xff]  }
  0x66   :  { %4587 = vmatmul.mubr.msk.bf16.vlgmr.msra.gmra.mrb[48].mxu0 %vm69_vm1, %v4829_v4  ;;  %v4883_v4 = vld [vmem:[%s6156_s0 + $0x150] sm:$0xff]  }
  0x67   :  { %4621 = vmatpush3.bf16.msra.mxu0 %v1975_v6  ;;  %4590 = vmatprep.mubr.msk.bf16.mxu0 %vm69_vm1, %v4830_v5  ;;  %v3573_v5 = vsel %vm94_vm0, %v4299_v51, 0  ;;  %v4880_v6 = vld [vmem:[%s6156_s0 + $0x118] sm:$0xff]  }
  0x68   :  { %4774 = vmatprep.subr.msk.bf16.mxu0 %vm94_vm0, %v4118_v7  ;;  %4605 = vmatmul.mubr.msk.bf16.vlgmr.msra.gmra.mrb[48].mxu1 %vm69_vm1, %v4833_v8  ;;  %v4882_v7 = vld [vmem:[%s6156_s0 + $0x120] sm:$0xff]   ;;  %v4885_v8 = vld [vmem:[%s6156_s0 + $0x158] sm:$0xff]  }
  0x69   :  { %4639 = vmatpush3.bf16.msra.mxu1 %v2173_v10  ;;  %4608 = vmatprep.mubr.msk.bf16.mxu1 %vm69_vm1, %v4835_v9  ;;  %v4887_v9 = vld [vmem:[%s6156_s0 + $0x160] sm:$0xff]   ;;  %v4884_v10 = vld [vmem:[%s6156_s0 + $0x128] sm:$0xff]  }
  0x6a   :  { %4775 = vmatprep.subr.msk.bf16.mxu1 %vm94_vm0, %v4151_v11  ;;  %v4886_v11 = vld [vmem:[%s6156_s0 + $0x130] sm:$0xff]  }
  0x6e   :  { %4591 = vmatmul.mubr.msk.bf16.gmra.mrb[52].mxu0 %vm69_vm1, %v4832_v12  ;;  %v4889_v12 = vld [vmem:[%s6156_s0 + $0x168] sm:$0xff]  }
  0x6f   :  { %4594 = vmatprep.mubr.msk.bf16.mxu0 %vm69_vm1, %v4834_v13  ;;  %v4890_v13 = vld [vmem:[%s6156_s0 + $0x170] sm:$0xff]  }
  0x70   :  { %4609 = vmatmul.mubr.msk.bf16.gmra.mrb[52].mxu1 %vm69_vm1, %v4837_v14 }
  0x71   :  { %4612 = vmatprep.mubr.msk.bf16.mxu1 %vm69_vm1, %v4839_v15 }
  0x76   :  { %4595 = vmatmul.mubr.msk.bf16.gmra.mrb[56].mxu0 %vm69_vm1, %v4836_v16  ;;  %v4888_v16 = vld [vmem:[%s6156_s0 + $0x138] sm:$0xff]  }
  0x77   :  { %4598 = vmatprep.mubr.msk.bf16.mxu0 %vm69_vm1, %v4838_v17 }
  0x78   :  { %4613 = vmatmul.mubr.msk.bf16.gmra.mrb[56].mxu1 %vm69_vm1, %v4841_v18  ;;  %v4891_v18 = vld [vmem:[%s6156_s0 + $0x1c0] sm:$0xff]  }
  0x79   :  { %4616 = vmatprep.mubr.msk.bf16.mxu1 %vm69_vm1, %v4842_v19 }
  0x7e   :  { %4599 = vmatmul.mubr.msk.bf16.gmra.mrb[60].mxu0 %vm69_vm1, %v4840_v20 }
  0x7f   :  { %4622 = vmatprep.mubr.msk.bf16.mxu0 %vm69_vm1, %v4843_v21 }
  0x80   :  { %4617 = vmatmul.mubr.msk.bf16.gmra.mrb[60].mxu1 %vm69_vm1, %v4844_v22  ;;  %v4892_v22 = vld [vmem:[%s6156_s0 + $0x178] sm:$0xff]  }
  0x81   :  { %4640 = vmatprep.mubr.msk.bf16.mxu1 %vm69_vm1, %v4847_v23 }
  0x86   :  { %4623 = vmatmul.mubr.msk.bf16.vlgmr.msra.gmra.mrb[64].mxu0 %vm69_vm1, %v4845_v24  ;;  %v4895_v24 = vld [vmem:[%s6156_s0 + $0x200] sm:$0xff]  }
  0x87   :  { %4657 = vmatpush3.bf16.msra.mxu0 %v2404_v26  ;;  %4626 = vmatprep.mubr.msk.bf16.mxu0 %vm69_vm1, %v4846_v25 }
  0x88   :  { %4776 = vmatprep.subr.msk.bf16.mxu0 %vm94_vm0, %v4200_v27  ;;  %4641 = vmatmul.mubr.msk.bf16.vlgmr.msra.gmra.mrb[64].mxu1 %vm69_vm1, %v4849_v28 }
  0x89   :  { %4675 = vmatpush3.bf16.msra.mxu1 %v2635_v30  ;;  %4644 = vmatprep.mubr.msk.bf16.mxu1 %vm69_vm1, %v4851_v29 }
  0x8a   :  { %4777 = vmatprep.subr.msk.bf16.mxu1 %vm94_vm0, %v4233_v31  ;;  %v4893_v31 = vld [vmem:[%s6156_s0 + $0x1c8] sm:$0xff]  }
  0x8e   :  { %4627 = vmatmul.mubr.msk.bf16.gmra.mrb[68].mxu0 %vm69_vm1, %v4848_v32 }
  0x8f   :  { %4630 = vmatprep.mubr.msk.bf16.mxu0 %vm69_vm1, %v4850_v33 }
  0x90   :  { %4645 = vmatmul.mubr.msk.bf16.gmra.mrb[68].mxu1 %vm69_vm1, %v4853_v34 }
  0x91   :  { %4648 = vmatprep.mubr.msk.bf16.mxu1 %vm69_vm1, %v4855_v35  ;;  %v4894_v35 = vld [vmem:[%s6156_s0 + $0x1d0] sm:$0xff]  }
  0x96   :  { %4631 = vmatmul.mubr.msk.bf16.gmra.mrb[72].mxu0 %vm69_vm1, %v4852_v36 }
  0x97   :  { %4634 = vmatprep.mubr.msk.bf16.mxu0 %vm69_vm1, %v4854_v37 }
  0x98   :  { %4649 = vmatmul.mubr.msk.bf16.gmra.mrb[72].mxu1 %vm69_vm1, %v4857_v38 }
  0x99   :  { %4652 = vmatprep.mubr.msk.bf16.mxu1 %vm69_vm1, %v4858_v39 }
  0x9e   :  { %4635 = vmatmul.mubr.msk.bf16.gmra.mrb[76].mxu0 %vm69_vm1, %v4856_v40 }
  0x9f   :  { %4658 = vmatprep.mubr.msk.bf16.mxu0 %vm69_vm1, %v4859_v41 }
  0xa0   :  { %4653 = vmatmul.mubr.msk.bf16.gmra.mrb[76].mxu1 %vm69_vm1, %v4860_v42  ;;  %v4897_v42 = vld [vmem:[%s6156_s0 + $0x208] sm:$0xff]  }
  0xa1   :  { %4676 = vmatprep.mubr.msk.bf16.mxu1 %vm69_vm1, %v4863_v43 }
  0xa6   :  { %4659 = vmatmul.mubr.msk.bf16.vlgmr.msra.gmra.mrb[80].mxu0 %vm69_vm1, %v4861_v44  ;;  %v4899_v44 = vld [vmem:[%s6156_s0 + $0x210] sm:$0xff]  }
  0xa7   :  { %4693 = vmatpush3.bf16.msra.mxu0 %v2914_v46  ;;  %4662 = vmatprep.mubr.msk.bf16.mxu0 %vm69_vm1, %v4862_v45 }
  0xa8   :  { %4778 = vmatprep.subr.msk.bf16.mxu0 %vm94_vm0, %v4266_v47  ;;  %4677 = vmatmul.mubr.msk.bf16.vlgmr.msra.gmra.mrb[80].mxu1 %vm69_vm1, %v4865_v48 }
  0xa9   :  { %4711 = vmatpush3.bf16.msra.mxu1 %v3112_v50  ;;  %4680 = vmatprep.mubr.msk.bf16.mxu1 %vm69_vm1, %v4867_v49 }
  0xaa   :  { %4779 = vmatprep.subr.msk.bf16.mxu1 %vm94_vm0, %v4299_v51  ;;  %v4896_v51 = vld [vmem:[%s6156_s0 + $0x1d8] sm:$0xff]  }
  0xae   :  { %4663 = vmatmul.mubr.msk.bf16.gmra.mrb[84].mxu0 %vm69_vm1, %v4864_v52 }
  0xaf   :  { %4666 = vmatprep.mubr.msk.bf16.mxu0 %vm69_vm1, %v4866_v53 }
  0xb0   :  { %4681 = vmatmul.mubr.msk.bf16.gmra.mrb[84].mxu1 %vm69_vm1, %v4869_v54 }
  0xb1   :  { %4684 = vmatprep.mubr.msk.bf16.mxu1 %vm69_vm1, %v4871_v55  ;;  %v4898_v55 = vld [vmem:[%s6156_s0 + $0x1e0] sm:$0xff]  }
  0xb6   :  { %4667 = vmatmul.mubr.msk.bf16.gmra.mrb[88].mxu0 %vm69_vm1, %v4868_v56 }
  0xb7   :  { %4670 = vmatprep.mubr.msk.bf16.mxu0 %vm69_vm1, %v4870_v57 }
  0xb8   :  { %4685 = vmatmul.mubr.msk.bf16.gmra.mrb[88].mxu1 %vm69_vm1, %v4873_v58 }
  0xb9   :  { %4688 = vmatprep.mubr.msk.bf16.mxu1 %vm69_vm1, %v4874_v59 }
  0xbe   :  { %4671 = vmatmul.mubr.msk.bf16.gmra.mrb[92].mxu0 %vm69_vm1, %v4872_v60 }
  0xbf   :  { %4694 = vmatprep.mubr.msk.bf16.mxu0 %vm69_vm1, %v4875_v61 }
  0xc0   :  { %4689 = vmatmul.mubr.msk.bf16.gmra.mrb[92].mxu1 %vm69_vm1, %v4876_v62  ;;  %v4901_v62 = vld [vmem:[%s6156_s0 + $0x218] sm:$0xff]  }
  0xc1   :  { %4712 = vmatprep.mubr.msk.bf16.mxu1 %vm69_vm1, %v4879_v63 }
  0xc6   :  { %4695 = vmatmul.mubr.msk.bf16.vlgmr.msra.gmra.mrb[96].mxu0 %vm69_vm1, %v4877_v0  ;;  %v4903_v0 = vld [vmem:[%s6156_s0 + $0x220] sm:$0xff]  }
  0xc7   :  { %4729 = vmatpush3.bf16.msra.mxu0 %v3342_v2  ;;  %4698 = vmatprep.mubr.msk.bf16.mxu0 %vm69_vm1, %v4878_v1 }
  0xc8   :  { %4713 = vmatmul.mubr.msk.bf16.vlgmr.msra.gmra.mrb[96].mxu1 %vm69_vm1, %v4881_v3 }
  0xc9   :  { %4747 = vmatpush3.bf16.msra.mxu1 %v3573_v5  ;;  %4716 = vmatprep.mubr.msk.bf16.mxu1 %vm69_vm1, %v4883_v4 }
  0xce   :  { %4699 = vmatmul.mubr.msk.bf16.gmra.mrb[100].mxu0 %vm69_vm1, %v4880_v6 }
  0xcf   :  { %4702 = vmatprep.mubr.msk.bf16.mxu0 %vm69_vm1, %v4882_v7  ;;  %v4900_v7 = vld [vmem:[%s6156_s0 + $0x1e8] sm:$0xff]  }
  0xd0   :  { %4717 = vmatmul.mubr.msk.bf16.gmra.mrb[100].mxu1 %vm69_vm1, %v4885_v8 }
  0xd1   :  { %4720 = vmatprep.mubr.msk.bf16.mxu1 %vm69_vm1, %v4887_v9 }
  0xd6   :  { %4703 = vmatmul.mubr.msk.bf16.gmra.mrb[104].mxu0 %vm69_vm1, %v4884_v10 }
  0xd7   :  { %4706 = vmatprep.mubr.msk.bf16.mxu0 %vm69_vm1, %v4886_v11  ;;  %v4902_v11 = vld [vmem:[%s6156_s0 + $0x1f0] sm:$0xff]  }
  0xd8   :  { %4721 = vmatmul.mubr.msk.bf16.gmra.mrb[104].mxu1 %vm69_vm1, %v4889_v12 }
  0xd9   :  { %v4480_v14 = vpop.f32.mrb[0].mxu0  ;;  %4724 = vmatprep.mubr.msk.bf16.mxu1 %vm69_vm1, %v4890_v13 }
  0xda   :  { %198 = vst.msk [vmem:[#allocation2 + $0x10] sm:$0xff] %vm195_vm2, %v4480_v14  ;;  %v132_v15 = vpop.f32.mrb[1].mxu0 }
  0xdb   :  { %196 = vst.msk [vmem:[#allocation2] sm:$0xff] %vm195_vm2, %v132_v15  ;;  %v4481_v17 = vpop.f32.mrb[2].mxu0  ;;  %v4498_v20 = vpop.f32.mrb[0].mxu1 }
  0xdc   :  { %199 = vst.msk [vmem:[#allocation2 + $0x18] sm:$0xff] %vm195_vm2, %v4481_v17  ;;  %v135_v19 = vpop.f32.mrb[3].mxu0  ;;  %v332_v21 = vpop.f32.mrb[1].mxu1 }
  0xdd   :  { %197 = vst.msk [vmem:[#allocation2 + $0x8] sm:$0xff] %vm195_vm2, %v135_v19  ;;  %v4499_v23 = vpop.f32.mrb[2].mxu1 }
  0xde   :  { %4707 = vmatmul.mubr.msk.bf16.gmra.mrb[108].mxu0 %vm69_vm1, %v4888_v16  ;;  %v335_v25 = vpop.f32.mrb[3].mxu1 }
  0xdf   :  { %4730 = vmatprep.mubr.msk.bf16.mxu0 %vm69_vm1, %v4891_v18  ;;  %v4905_v18 = vld [vmem:[%s6156_s0 + $0x228] sm:$0xff]  }
  0xe0   :  { %4725 = vmatmul.mubr.msk.bf16.gmra.mrb[108].mxu1 %vm69_vm1, %v4892_v22 }
  0xe1   :  { %v4484_v26 = vpop.f32.mrb[4].mxu0  ;;  %v397_v27 = vld [vmem:[#allocation2 + $0x10] sm:$0xff]  ;;  %4748 = vmatprep.mubr.msk.bf16.mxu1 %vm69_vm1, %v4895_v24 }
  0xe2   :  { %202 = vst.msk [vmem:[#allocation2 + $0x30] sm:$0xff] %vm195_vm2, %v4484_v26  ;;  %v413_v28 = vadd.f32 %v4498_v20, %v397_v27  ;;  %v148_v29 = vpop.f32.mrb[5].mxu0  ;;  %v395_v30 = vld [vmem:[#allocation2] sm:$0xff]  ;;  %v4906_v20 = vld [vmem:[%s6156_s0 + $0x230] sm:$0xff]  }
  0xe3   :  { %200 = vst.msk [vmem:[#allocation2 + $0x20] sm:$0xff] %vm195_vm2, %v148_v29  ;;  %v411_v32 = vadd.f32 %v395_v30, %v332_v21  ;;  %v4485_v33 = vpop.f32.mrb[6].mxu0  ;;  %v398_v34 = vld [vmem:[#allocation2 + $0x18] sm:$0xff]  ;;  %v4502_v40 = vpop.f32.mrb[4].mxu1 }
  0xe4   :  { %429 = vst.msk [vmem:[#allocation2 + $0x10] sm:$0xff] %vm195_vm2, %v413_v28  ;;  %203 = vst.msk [vmem:[#allocation2 + $0x38] sm:$0xff] %vm195_vm2, %v4485_v33  ;;  %v414_v36 = vadd.f32 %v4499_v23, %v398_v34  ;;  %v151_v37 = vpop.f32.mrb[7].mxu0  ;;  %v396_v38 = vld [vmem:[#allocation2 + $0x8] sm:$0xff]  ;;  %v348_v41 = vpop.f32.mrb[5].mxu1  ;;  %v4904_v30 = vld [vmem:[%s6156_s0 + $0x1f8] sm:$0xff]  }
  0xe5   :  { %427 = vst.msk [vmem:[#allocation2] sm:$0xff] %vm195_vm2, %v411_v32  ;;  %201 = vst.msk [vmem:[#allocation2 + $0x28] sm:$0xff] %vm195_vm2, %v151_v37  ;;  %v412_v39 = vadd.f32 %v396_v38, %v335_v25  ;;  %v4503_v43 = vpop.f32.mrb[6].mxu1 }
  0xe6   :  { %430 = vst.msk [vmem:[#allocation2 + $0x18] sm:$0xff] %vm195_vm2, %v414_v36  ;;  %4731 = vmatmul.mubr.msk.bf16.vlgmr.msra.gmra.mrb[112].mxu0 %vm69_vm1, %v4893_v31  ;;  %v351_v45 = vpop.f32.mrb[7].mxu1 }
  0xe7   :  { %428 = vst.msk [vmem:[#allocation2 + $0x8] sm:$0xff] %vm195_vm2, %v412_v39  ;;  %4734 = vmatprep.mubr.msk.bf16.mxu0 %vm69_vm1, %v4894_v35 }
  0xe8   :  { %4749 = vmatmul.mubr.msk.bf16.vlgmr.msra.gmra.mrb[112].mxu1 %vm69_vm1, %v4897_v42 }
  0xe9   :  { %v4488_v46 = vpop.f32.mrb[8].mxu0  ;;  %v401_v47 = vld [vmem:[#allocation2 + $0x30] sm:$0xff]  ;;  %4752 = vmatprep.mubr.msk.bf16.mxu1 %vm69_vm1, %v4899_v44 }
  0xea   :  { %206 = vst.msk [vmem:[#allocation2 + $0x50] sm:$0xff] %vm195_vm2, %v4488_v46  ;;  %v417_v48 = vadd.f32 %v4502_v40, %v401_v47  ;;  %v164_v49 = vpop.f32.mrb[9].mxu0  ;;  %v399_v50 = vld [vmem:[#allocation2 + $0x20] sm:$0xff] }
  0xeb   :  { %204 = vst.msk [vmem:[#allocation2 + $0x40] sm:$0xff] %vm195_vm2, %v164_v49  ;;  %v415_v52 = vadd.f32 %v399_v50, %v348_v41  ;;  %v4489_v53 = vpop.f32.mrb[10].mxu0  ;;  %v402_v54 = vld [vmem:[#allocation2 + $0x38] sm:$0xff]  ;;  %v4506_v60 = vpop.f32.mrb[8].mxu1  ;;  %v628_v24 = vld [vmem:[#allocation2 + $0x10] sm:$0xff] }
  0xec   :  { %433 = vst.msk [vmem:[#allocation2 + $0x30] sm:$0xff] %vm195_vm2, %v417_v48  ;;  %207 = vst.msk [vmem:[#allocation2 + $0x58] sm:$0xff] %vm195_vm2, %v4489_v53  ;;  %v418_v56 = vadd.f32 %v4503_v43, %v402_v54  ;;  %v167_v57 = vpop.f32.mrb[11].mxu0  ;;  %v400_v58 = vld [vmem:[#allocation2 + $0x28] sm:$0xff]  ;;  %v364_v61 = vpop.f32.mrb[9].mxu1  ;;  %v626_v29 = vld [vmem:[#allocation2] sm:$0xff] }
  0xed   :  { %431 = vst.msk [vmem:[#allocation2 + $0x20] sm:$0xff] %vm195_vm2, %v415_v52  ;;  %205 = vst.msk [vmem:[#allocation2 + $0x48] sm:$0xff] %vm195_vm2, %v167_v57  ;;  %v416_v59 = vadd.f32 %v400_v58, %v351_v45  ;;  %v4507_v63 = vpop.f32.mrb[10].mxu1  ;;  %v629_v35 = vld [vmem:[#allocation2 + $0x18] sm:$0xff] }
  0xee   :  { %434 = vst.msk [vmem:[#allocation2 + $0x38] sm:$0xff] %vm195_vm2, %v418_v56  ;;  %4735 = vmatmul.mubr.msk.bf16.gmra.mrb[116].mxu0 %vm69_vm1, %v4896_v51  ;;  %v367_v1 = vpop.f32.mrb[11].mxu1  ;;  %v627_v40 = vld [vmem:[#allocation2 + $0x8] sm:$0xff]  ;;  %v4907_v45 = vld [vmem:[%s6156_s0 + $0x238] sm:$0xff]  }
  0xef   :  { %432 = vst.msk [vmem:[#allocation2 + $0x28] sm:$0xff] %vm195_vm2, %v416_v59  ;;  %4738 = vmatprep.mubr.msk.bf16.mxu0 %vm69_vm1, %v4898_v55 }
  0xf0   :  { %4753 = vmatmul.mubr.msk.bf16.gmra.mrb[116].mxu1 %vm69_vm1, %v4901_v62 }
  0xf1   :  { %v4492_v2 = vpop.f32.mrb[12].mxu0  ;;  %v405_v3 = vld [vmem:[#allocation2 + $0x50] sm:$0xff]  ;;  %4756 = vmatprep.mubr.msk.bf16.mxu1 %vm69_vm1, %v4903_v0 }
  0xf2   :  { %210 = vst.msk [vmem:[#allocation2 + $0x70] sm:$0xff] %vm195_vm2, %v4492_v2  ;;  %v421_v4 = vadd.f32 %v4506_v60, %v405_v3  ;;  %v180_v5 = vpop.f32.mrb[13].mxu0  ;;  %v403_v6 = vld [vmem:[#allocation2 + $0x40] sm:$0xff] }
  0xf3   :  { %208 = vst.msk [vmem:[#allocation2 + $0x60] sm:$0xff] %vm195_vm2, %v180_v5  ;;  %v419_v8 = vadd.f32 %v403_v6, %v364_v61  ;;  %v4493_v9 = vpop.f32.mrb[14].mxu0  ;;  %v406_v10 = vld [vmem:[#allocation2 + $0x58] sm:$0xff]  ;;  %v4510_v16 = vpop.f32.mrb[12].mxu1  ;;  %v632_v49 = vld [vmem:[#allocation2 + $0x30] sm:$0xff] }
  0xf4   :  { %437 = vst.msk [vmem:[#allocation2 + $0x50] sm:$0xff] %vm195_vm2, %v421_v4  ;;  %211 = vst.msk [vmem:[#allocation2 + $0x78] sm:$0xff] %vm195_vm2, %v4493_v9  ;;  %v422_v12 = vadd.f32 %v4507_v63, %v406_v10  ;;  %v183_v13 = vpop.f32.mrb[15].mxu0  ;;  %v404_v14 = vld [vmem:[#allocation2 + $0x48] sm:$0xff]  ;;  %v380_v17 = vpop.f32.mrb[13].mxu1  ;;  %v630_v52 = vld [vmem:[#allocation2 + $0x20] sm:$0xff] }
  0xf5   :  { %435 = vst.msk [vmem:[#allocation2 + $0x40] sm:$0xff] %vm195_vm2, %v419_v8  ;;  %209 = vst.msk [vmem:[#allocation2 + $0x68] sm:$0xff] %vm195_vm2, %v183_v13  ;;  %v420_v15 = vadd.f32 %v404_v14, %v367_v1  ;;  %v4511_v19 = vpop.f32.mrb[14].mxu1  ;;  %v633_v56 = vld [vmem:[#allocation2 + $0x38] sm:$0xff] }
  0xf6   :  { %438 = vst.msk [vmem:[#allocation2 + $0x58] sm:$0xff] %vm195_vm2, %v422_v12  ;;  %4739 = vmatmul.mubr.msk.bf16.gmra.mrb[120].mxu0 %vm69_vm1, %v4900_v7  ;;  %v383_v21 = vpop.f32.mrb[15].mxu1  ;;  %v631_v61 = vld [vmem:[#allocation2 + $0x28] sm:$0xff] }
  0xf7   :  { %436 = vst.msk [vmem:[#allocation2 + $0x48] sm:$0xff] %vm195_vm2, %v420_v15  ;;  %4742 = vmatprep.mubr.msk.bf16.mxu0 %vm69_vm1, %v4902_v11 }
  0xf8   :  { %4757 = vmatmul.mubr.msk.bf16.gmra.mrb[120].mxu1 %vm69_vm1, %v4905_v18 }
  0xf9   :  { %v409_v22 = vld [vmem:[#allocation2 + $0x70] sm:$0xff]  ;;  %v4516_v23 = vpop.f32.mrb[16].mxu0  ;;  %4760 = vmatprep.mubr.msk.bf16.mxu1 %vm69_vm1, %v4906_v20 }
  0xfa   :  { %v425_v25 = vadd.f32 %v4510_v16, %v409_v22  ;;  %v644_v26 = vadd.f32 %v4516_v23, %v628_v24  ;;  %v407_v27 = vld [vmem:[#allocation2 + $0x60] sm:$0xff]  ;;  %v563_v28 = vpop.f32.mrb[17].mxu0 }
  0xfb   :  { %v423_v31 = vadd.f32 %v407_v27, %v380_v17  ;;  %v642_v32 = vadd.f32 %v626_v29, %v563_v28  ;;  %v410_v33 = vld [vmem:[#allocation2 + $0x78] sm:$0xff]  ;;  %v4517_v34 = vpop.f32.mrb[18].mxu0  ;;  %v4534_v43 = vpop.f32.mrb[16].mxu1  ;;  %v636_v9 = vld [vmem:[#allocation2 + $0x50] sm:$0xff] }
  0xfc   :  { %441 = vst.msk [vmem:[#allocation2 + $0x70] sm:$0xff] %vm195_vm2, %v425_v25  ;;  %660 = vst.msk [vmem:[#allocation2 + $0x10] sm:$0xff] %vm195_vm2, %v644_v26  ;;  %v426_v36 = vadd.f32 %v4511_v19, %v410_v33  ;;  %v645_v37 = vadd.f32 %v4517_v34, %v629_v35  ;;  %v408_v38 = vld [vmem:[#allocation2 + $0x68] sm:$0xff]  ;;  %v566_v39 = vpop.f32.mrb[19].mxu0  ;;  %v794_v44 = vpop.f32.mrb[17].mxu1  ;;  %v634_v12 = vld [vmem:[#allocation2 + $0x40] sm:$0xff] }
  0xfd   :  { %439 = vst.msk [vmem:[#allocation2 + $0x60] sm:$0xff] %vm195_vm2, %v423_v31  ;;  %658 = vst.msk [vmem:[#allocation2] sm:$0xff] %vm195_vm2, %v642_v32  ;;  %v424_v41 = vadd.f32 %v408_v38, %v383_v21  ;;  %v643_v42 = vadd.f32 %v627_v40, %v566_v39  ;;  %v4535_v46 = vpop.f32.mrb[18].mxu1  ;;  %v637_v16 = vld [vmem:[#allocation2 + $0x58] sm:$0xff] }
  0xfe   :  { %442 = vst.msk [vmem:[#allocation2 + $0x78] sm:$0xff] %vm195_vm2, %v426_v36  ;;  %661 = vst.msk [vmem:[#allocation2 + $0x18] sm:$0xff] %vm195_vm2, %v645_v37  ;;  %4743 = vmatmul.mubr.msk.bf16.gmra.mrb[124].mxu0 %vm69_vm1, %v4904_v30  ;;  %v797_v47 = vpop.f32.mrb[19].mxu1  ;;  %v635_v21 = vld [vmem:[#allocation2 + $0x48] sm:$0xff] }
  0xff   :  { %440 = vst.msk [vmem:[#allocation2 + $0x68] sm:$0xff] %vm195_vm2, %v424_v41  ;;  %659 = vst.msk [vmem:[#allocation2 + $0x8] sm:$0xff] %vm195_vm2, %v643_v42 }
 0x100   :  { %4761 = vmatmul.mubr.msk.bf16.gmra.mrb[124].mxu1 %vm69_vm1, %v4907_v45 }
 0x101   :  { %v4520_v48 = vpop.f32.mrb[20].mxu0 }
 0x102   :  { %v648_v50 = vadd.f32 %v4520_v48, %v632_v49  ;;  %v579_v51 = vpop.f32.mrb[21].mxu0 }
 0x103   :  { %v859_v53 = vld [vmem:[#allocation2 + $0x10] sm:$0xff]  ;;  %v646_v54 = vadd.f32 %v630_v52, %v579_v51  ;;  %v4521_v55 = vpop.f32.mrb[22].mxu0  ;;  %v4538_v1 = vpop.f32.mrb[20].mxu1 }
 0x104   :  { %664 = vst.msk [vmem:[#allocation2 + $0x30] sm:$0xff] %vm195_vm2, %v648_v50  ;;  %v875_v57 = vadd.f32 %v4534_v43, %v859_v53  ;;  %v857_v58 = vld [vmem:[#allocation2] sm:$0xff]  ;;  %v649_v59 = vadd.f32 %v4521_v55, %v633_v56  ;;  %v582_v60 = vpop.f32.mrb[23].mxu0  ;;  %v810_v4 = vpop.f32.mrb[21].mxu1  ;;  %v640_v37 = vld [vmem:[#allocation2 + $0x70] sm:$0xff] }
 0x105   :  { %662 = vst.msk [vmem:[#allocation2 + $0x20] sm:$0xff] %vm195_vm2, %v646_v54  ;;  %v873_v62 = vadd.f32 %v857_v58, %v794_v44  ;;  %v860_v63 = vld [vmem:[#allocation2 + $0x18] sm:$0xff]  ;;  %v647_v0 = vadd.f32 %v631_v61, %v582_v60  ;;  %v4539_v6 = vpop.f32.mrb[22].mxu1  ;;  %v638_v40 = vld [vmem:[#allocation2 + $0x60] sm:$0xff] }
 0x106   :  { %891 = vst.msk [vmem:[#allocation2 + $0x10] sm:$0xff] %vm195_vm2, %v875_v57  ;;  %665 = vst.msk [vmem:[#allocation2 + $0x38] sm:$0xff] %vm195_vm2, %v649_v59  ;;  %v876_v2 = vadd.f32 %v4535_v46, %v860_v63  ;;  %v858_v3 = vld [vmem:[#allocation2 + $0x8] sm:$0xff]  ;;  %v813_v7 = vpop.f32.mrb[23].mxu1  ;;  %v641_v44 = vld [vmem:[#allocation2 + $0x78] sm:$0xff] }
 0x107   :  { %889 = vst.msk [vmem:[#allocation2] sm:$0xff] %vm195_vm2, %v873_v62  ;;  %663 = vst.msk [vmem:[#allocation2 + $0x28] sm:$0xff] %vm195_vm2, %v647_v0  ;;  %v874_v5 = vadd.f32 %v858_v3, %v797_v47  ;;  %v639_v49 = vld [vmem:[#allocation2 + $0x68] sm:$0xff] }
 0x108   :  { %892 = vst.msk [vmem:[#allocation2 + $0x18] sm:$0xff] %vm195_vm2, %v876_v2 }
 0x109   :  { %890 = vst.msk [vmem:[#allocation2 + $0x8] sm:$0xff] %vm195_vm2, %v874_v5  ;;  %v4524_v8 = vpop.f32.mrb[24].mxu0 }
 0x10a   :  { %v652_v10 = vadd.f32 %v4524_v8, %v636_v9  ;;  %v595_v11 = vpop.f32.mrb[25].mxu0 }
 0x10b   :  { %v863_v13 = vld [vmem:[#allocation2 + $0x30] sm:$0xff]  ;;  %v650_v14 = vadd.f32 %v634_v12, %v595_v11  ;;  %v4525_v15 = vpop.f32.mrb[26].mxu0  ;;  %v4542_v25 = vpop.f32.mrb[24].mxu1 }
 0x10c   :  { %668 = vst.msk [vmem:[#allocation2 + $0x50] sm:$0xff] %vm195_vm2, %v652_v10  ;;  %v879_v17 = vadd.f32 %v4538_v1, %v863_v13  ;;  %v861_v18 = vld [vmem:[#allocation2 + $0x20] sm:$0xff]  ;;  %v653_v19 = vadd.f32 %v4525_v15, %v637_v16  ;;  %v598_v20 = vpop.f32.mrb[27].mxu0  ;;  %v826_v29 = vpop.f32.mrb[25].mxu1 }
 0x10d   :  { %666 = vst.msk [vmem:[#allocation2 + $0x40] sm:$0xff] %vm195_vm2, %v650_v14  ;;  %v877_v22 = vadd.f32 %v861_v18, %v810_v4  ;;  %v864_v23 = vld [vmem:[#allocation2 + $0x38] sm:$0xff]  ;;  %v651_v24 = vadd.f32 %v635_v21, %v598_v20  ;;  %v907_v26 = vld [vmem:[#allocation2 + $0x10] sm:$0xff]  ;;  %v4543_v32 = vpop.f32.mrb[26].mxu1 }
 0x10e   :  { %895 = vst.msk [vmem:[#allocation2 + $0x30] sm:$0xff] %vm195_vm2, %v879_v17  ;;  %669 = vst.msk [vmem:[#allocation2 + $0x58] sm:$0xff] %vm195_vm2, %v653_v19  ;;  %v880_v27 = vadd.f32 %v4539_v6, %v864_v23  ;;  %v862_v28 = vld [vmem:[#allocation2 + $0x28] sm:$0xff]  ;;  %4908 = vtanh.f32 %v907_v26  ;;  %v905_v30 = vld [vmem:[#allocation2] sm:$0xff]  ;;  %v829_v34 = vpop.f32.mrb[27].mxu1 }
 0x10f   :  { %893 = vst.msk [vmem:[#allocation2 + $0x20] sm:$0xff] %vm195_vm2, %v877_v22  ;;  %667 = vst.msk [vmem:[#allocation2 + $0x48] sm:$0xff] %vm195_vm2, %v651_v24  ;;  %v878_v31 = vadd.f32 %v862_v28, %v813_v7  ;;  %4910 = vtanh.f32 %v905_v30  ;;  %v908_v33 = vld [vmem:[#allocation2 + $0x18] sm:$0xff] }
 0x110   :  { %896 = vst.msk [vmem:[#allocation2 + $0x38] sm:$0xff] %vm195_vm2, %v880_v27  ;;  %4912 = vtanh.f32 %v908_v33  ;;  %v906_v35 = vld [vmem:[#allocation2 + $0x8] sm:$0xff] }
 0x111   :  { %894 = vst.msk [vmem:[#allocation2 + $0x28] sm:$0xff] %vm195_vm2, %v878_v31  ;;  %v4528_v36 = vpop.f32.mrb[28].mxu0  ;;  %4914 = vtanh.f32 %v906_v35 }
 0x112   :  { %v656_v38 = vadd.f32 %v4528_v36, %v640_v37  ;;  %v611_v39 = vpop.f32.mrb[29].mxu0 }
 0x113   :  { %v867_v41 = vld [vmem:[#allocation2 + $0x50] sm:$0xff]  ;;  %v654_v42 = vadd.f32 %v638_v40, %v611_v39  ;;  %v4529_v43 = vpop.f32.mrb[30].mxu0  ;;  %v4546_v53 = vpop.f32.mrb[28].mxu1 }
 0x114   :  { %672 = vst.msk [vmem:[#allocation2 + $0x70] sm:$0xff] %vm195_vm2, %v656_v38  ;;  %v883_v45 = vadd.f32 %v4542_v25, %v867_v41  ;;  %v865_v46 = vld [vmem:[#allocation2 + $0x40] sm:$0xff]  ;;  %v657_v47 = vadd.f32 %v4529_v43, %v641_v44  ;;  %v614_v48 = vpop.f32.mrb[31].mxu0  ;;  %v842_v57 = vpop.f32.mrb[29].mxu1 }
 0x115   :  { %670 = vst.msk [vmem:[#allocation2 + $0x60] sm:$0xff] %vm195_vm2, %v654_v42  ;;  %v881_v50 = vadd.f32 %v865_v46, %v826_v29  ;;  %v868_v51 = vld [vmem:[#allocation2 + $0x58] sm:$0xff]  ;;  %v655_v52 = vadd.f32 %v639_v49, %v614_v48  ;;  %v911_v54 = vld [vmem:[#allocation2 + $0x30] sm:$0xff]  ;;  %v4547_v60 = vpop.f32.mrb[30].mxu1 }
 0x116   :  { %899 = vst.msk [vmem:[#allocation2 + $0x50] sm:$0xff] %vm195_vm2, %v883_v45  ;;  %673 = vst.msk [vmem:[#allocation2 + $0x78] sm:$0xff] %vm195_vm2, %v657_v47  ;;  %v884_v55 = vadd.f32 %v4543_v32, %v868_v51  ;;  %v866_v56 = vld [vmem:[#allocation2 + $0x48] sm:$0xff]  ;;  %4916 = vtanh.f32 %v911_v54  ;;  %v909_v58 = vld [vmem:[#allocation2 + $0x20] sm:$0xff]  ;;  %v845_v63 = vpop.f32.mrb[31].mxu1 }
 0x117   :  { %897 = vst.msk [vmem:[#allocation2 + $0x40] sm:$0xff] %vm195_vm2, %v881_v50  ;;  %671 = vst.msk [vmem:[#allocation2 + $0x68] sm:$0xff] %vm195_vm2, %v655_v52  ;;  %v882_v59 = vadd.f32 %v866_v56, %v829_v34  ;;  %4918 = vtanh.f32 %v909_v58  ;;  %v912_v61 = vld [vmem:[#allocation2 + $0x38] sm:$0xff] }
 0x118   :  { %v4909_v62 = vpop.eup %4908  ;;  %900 = vst.msk [vmem:[#allocation2 + $0x58] sm:$0xff] %vm195_vm2, %v884_v55  ;;  %4920 = vtanh.f32 %v912_v61  ;;  %v910_v0 = vld [vmem:[#allocation2 + $0x28] sm:$0xff] }
 0x119   :  { %v4911_v1 = vpop.eup %4910  ;;  %898 = vst.msk [vmem:[#allocation2 + $0x48] sm:$0xff] %vm195_vm2, %v882_v59  ;;  %939 = vst.msk [vmem:[%s6157_s2 + $0x10] sm:$0xff] %vm195_vm2, %v4909_v62  ;;  %v4552_v2 = vpop.f32.mrb[32].mxu0  ;;  %4922 = vtanh.f32 %v910_v0 }
 0x11a   :  { %v4913_v3 = vpop.eup %4912  ;;  %1137 = vst.msk [vmem:[#allocation2 + $0x10] sm:$0xff] %vm195_vm2, %v4552_v2  ;;  %937 = vst.msk [vmem:[%s6157_s2] sm:$0xff] %vm195_vm2, %v4911_v1  ;;  %v1072_v4 = vpop.f32.mrb[33].mxu0 }
 0x11b   :  { %v4915_v5 = vpop.eup %4914  ;;  %v871_v6 = vld [vmem:[#allocation2 + $0x70] sm:$0xff]  ;;  %1135 = vst.msk [vmem:[#allocation2] sm:$0xff] %vm195_vm2, %v1072_v4  ;;  %940 = vst.msk [vmem:[%s6157_s2 + $0x18] sm:$0xff] %vm195_vm2, %v4913_v3  ;;  %v4553_v7 = vpop.f32.mrb[34].mxu0 }
 0x11c   :  { %v887_v8 = vadd.f32 %v4546_v53, %v871_v6  ;;  %v869_v9 = vld [vmem:[#allocation2 + $0x60] sm:$0xff]  ;;  %1138 = vst.msk [vmem:[#allocation2 + $0x18] sm:$0xff] %vm195_vm2, %v4553_v7  ;;  %938 = vst.msk [vmem:[%s6157_s2 + $0x8] sm:$0xff] %vm195_vm2, %v4915_v5  ;;  %v1075_v10 = vpop.f32.mrb[35].mxu0  ;;  %v4570_v13 = vpop.f32.mrb[32].mxu1 }
 0x11d   :  { %v885_v11 = vadd.f32 %v869_v9, %v842_v57  ;;  %v872_v12 = vld [vmem:[#allocation2 + $0x78] sm:$0xff]  ;;  %1136 = vst.msk [vmem:[#allocation2 + $0x8] sm:$0xff] %vm195_vm2, %v1075_v10  ;;  %v915_v14 = vld [vmem:[#allocation2 + $0x50] sm:$0xff]  ;;  %v1271_v17 = vpop.f32.mrb[33].mxu1 }
 0x11e   :  { %903 = vst.msk [vmem:[#allocation2 + $0x70] sm:$0xff] %vm195_vm2, %v887_v8  ;;  %v888_v15 = vadd.f32 %v4547_v60, %v872_v12  ;;  %v870_v16 = vld [vmem:[#allocation2 + $0x68] sm:$0xff]  ;;  %4924 = vtanh.f32 %v915_v14  ;;  %v913_v18 = vld [vmem:[#allocation2 + $0x40] sm:$0xff]  ;;  %v4571_v20 = vpop.f32.mrb[34].mxu1 }
 0x11f   :  { %901 = vst.msk [vmem:[#allocation2 + $0x60] sm:$0xff] %vm195_vm2, %v885_v11  ;;  %v886_v19 = vadd.f32 %v870_v16, %v845_v63  ;;  %4926 = vtanh.f32 %v913_v18  ;;  %v916_v21 = vld [vmem:[#allocation2 + $0x58] sm:$0xff]  ;;  %v1274_v23 = vpop.f32.mrb[35].mxu1 }
 0x120   :  { %v4917_v22 = vpop.eup %4916  ;;  %904 = vst.msk [vmem:[#allocation2 + $0x78] sm:$0xff] %vm195_vm2, %v888_v15  ;;  %4928 = vtanh.f32 %v916_v21  ;;  %v914_v24 = vld [vmem:[#allocation2 + $0x48] sm:$0xff] }
 0x121   :  { %v4919_v25 = vpop.eup %4918  ;;  %902 = vst.msk [vmem:[#allocation2 + $0x68] sm:$0xff] %vm195_vm2, %v886_v19  ;;  %943 = vst.msk [vmem:[%s6157_s2 + $0x30] sm:$0xff] %vm195_vm2, %v4917_v22  ;;  %v4556_v26 = vpop.f32.mrb[36].mxu0  ;;  %v1336_v27 = vld [vmem:[#allocation2 + $0x10] sm:$0xff]  ;;  %4930 = vtanh.f32 %v914_v24 }
 0x122   :  { %v4921_v28 = vpop.eup %4920  ;;  %1141 = vst.msk [vmem:[#allocation2 + $0x30] sm:$0xff] %vm195_vm2, %v4556_v26  ;;  %v1352_v29 = vadd.f32 %v4570_v13, %v1336_v27  ;;  %941 = vst.msk [vmem:[%s6157_s2 + $0x20] sm:$0xff] %vm195_vm2, %v4919_v25  ;;  %v1088_v30 = vpop.f32.mrb[37].mxu0  ;;  %v1334_v31 = vld [vmem:[#allocation2] sm:$0xff] }
 0x123   :  { %v4923_v32 = vpop.eup %4922  ;;  %1139 = vst.msk [vmem:[#allocation2 + $0x20] sm:$0xff] %vm195_vm2, %v1088_v30  ;;  %v1350_v33 = vadd.f32 %v1334_v31, %v1271_v17  ;;  %944 = vst.msk [vmem:[%s6157_s2 + $0x38] sm:$0xff] %vm195_vm2, %v4921_v28  ;;  %v4557_v34 = vpop.f32.mrb[38].mxu0  ;;  %v1337_v35 = vld [vmem:[#allocation2 + $0x18] sm:$0xff] }
 0x124   :  { %1368 = vst.msk [vmem:[#allocation2 + $0x10] sm:$0xff] %vm195_vm2, %v1352_v29  ;;  %1142 = vst.msk [vmem:[#allocation2 + $0x38] sm:$0xff] %vm195_vm2, %v4557_v34  ;;  %v1353_v36 = vadd.f32 %v4571_v20, %v1337_v35  ;;  %v1091_v37 = vpop.f32.mrb[39].mxu0  ;;  %v1335_v38 = vld [vmem:[#allocation2 + $0x8] sm:$0xff]  ;;  %v4574_v40 = vpop.f32.mrb[36].mxu1 }
 0x125   :  { %942 = vst.msk [vmem:[%s6157_s2 + $0x28] sm:$0xff] %vm195_vm2, %v4923_v32  ;;  %1366 = vst.msk [vmem:[#allocation2] sm:$0xff] %vm195_vm2, %v1350_v33  ;;  %v1351_v39 = vadd.f32 %v1335_v38, %v1274_v23  ;;  %v919_v41 = vld [vmem:[#allocation2 + $0x70] sm:$0xff]  ;;  %v1287_v42 = vpop.f32.mrb[37].mxu1 }
 0x126   :  { %1140 = vst.msk [vmem:[#allocation2 + $0x28] sm:$0xff] %vm195_vm2, %v1091_v37  ;;  %1369 = vst.msk [vmem:[#allocation2 + $0x18] sm:$0xff] %vm195_vm2, %v1353_v36  ;;  %4932 = vtanh.f32 %v919_v41  ;;  %v917_v43 = vld [vmem:[#allocation2 + $0x60] sm:$0xff]  ;;  %v4575_v44 = vpop.f32.mrb[38].mxu1 }
 0x127   :  { %1367 = vst.msk [vmem:[#allocation2 + $0x8] sm:$0xff] %vm195_vm2, %v1351_v39  ;;  %4934 = vtanh.f32 %v917_v43  ;;  %v920_v45 = vld [vmem:[#allocation2 + $0x78] sm:$0xff]  ;;  %v1290_v47 = vpop.f32.mrb[39].mxu1 }
 0x128   :  { %v4925_v46 = vpop.eup %4924  ;;  %4936 = vtanh.f32 %v920_v45  ;;  %v918_v48 = vld [vmem:[#allocation2 + $0x68] sm:$0xff] }
 0x129   :  { %v4927_v49 = vpop.eup %4926  ;;  %947 = vst.msk [vmem:[%s6157_s2 + $0x50] sm:$0xff] %vm195_vm2, %v4925_v46  ;;  %v4560_v50 = vpop.f32.mrb[40].mxu0  ;;  %v1340_v51 = vld [vmem:[#allocation2 + $0x30] sm:$0xff]  ;;  %4938 = vtanh.f32 %v918_v48 }
 0x12a   :  { %v4929_v52 = vpop.eup %4928  ;;  %1145 = vst.msk [vmem:[#allocation2 + $0x50] sm:$0xff] %vm195_vm2, %v4560_v50  ;;  %v1356_v53 = vadd.f32 %v4574_v40, %v1340_v51  ;;  %945 = vst.msk [vmem:[%s6157_s2 + $0x40] sm:$0xff] %vm195_vm2, %v4927_v49  ;;  %v1104_v54 = vpop.f32.mrb[41].mxu0  ;;  %v1338_v55 = vld [vmem:[#allocation2 + $0x20] sm:$0xff] }
 0x12b   :  { %v4931_v56 = vpop.eup %4930  ;;  %1143 = vst.msk [vmem:[#allocation2 + $0x40] sm:$0xff] %vm195_vm2, %v1104_v54  ;;  %v1354_v57 = vadd.f32 %v1338_v55, %v1287_v42  ;;  %948 = vst.msk [vmem:[%s6157_s2 + $0x58] sm:$0xff] %vm195_vm2, %v4929_v52  ;;  %v4561_v58 = vpop.f32.mrb[42].mxu0  ;;  %v1341_v59 = vld [vmem:[#allocation2 + $0x38] sm:$0xff]  ;;  %v1566_v26 = vld [vmem:[#allocation2 + $0x10] sm:$0xff] }
 0x12c   :  { %1372 = vst.msk [vmem:[#allocation2 + $0x30] sm:$0xff] %vm195_vm2, %v1356_v53  ;;  %1146 = vst.msk [vmem:[#allocation2 + $0x58] sm:$0xff] %vm195_vm2, %v4561_v58  ;;  %v1357_v60 = vadd.f32 %v4575_v44, %v1341_v59  ;;  %v1107_v61 = vpop.f32.mrb[43].mxu0  ;;  %v4578_v0 = vpop.f32.mrb[40].mxu1  ;;  %v1564_v31 = vld [vmem:[#allocation2] sm:$0xff] }
 0x12d   :  { %946 = vst.msk [vmem:[%s6157_s2 + $0x48] sm:$0xff] %vm195_vm2, %v4931_v56  ;;  %v1339_v62 = vld [vmem:[#allocation2 + $0x28] sm:$0xff]  ;;  %1370 = vst.msk [vmem:[#allocation2 + $0x20] sm:$0xff] %vm195_vm2, %v1354_v57  ;;  %v1303_v1 = vpop.f32.mrb[41].mxu1  ;;  %v1567_v36 = vld [vmem:[#allocation2 + $0x18] sm:$0xff] }
 0x12e   :  { %1144 = vst.msk [vmem:[#allocation2 + $0x48] sm:$0xff] %vm195_vm2, %v1107_v61  ;;  %v1355_v63 = vadd.f32 %v1339_v62, %v1290_v47  ;;  %1373 = vst.msk [vmem:[#allocation2 + $0x38] sm:$0xff] %vm195_vm2, %v1357_v60  ;;  %v4579_v2 = vpop.f32.mrb[42].mxu1  ;;  %v1565_v41 = vld [vmem:[#allocation2 + $0x8] sm:$0xff] }
 0x12f   :  { %v1306_v4 = vpop.f32.mrb[43].mxu1 }
 0x130   :  { %1371 = vst.msk [vmem:[#allocation2 + $0x28] sm:$0xff] %vm195_vm2, %v1355_v63  ;;  %v4933_v3 = vpop.eup %4932 }
 0x131   :  { %v4935_v5 = vpop.eup %4934  ;;  %951 = vst.msk [vmem:[%s6157_s2 + $0x70] sm:$0xff] %vm195_vm2, %v4933_v3  ;;  %v4564_v6 = vpop.f32.mrb[44].mxu0  ;;  %v1344_v7 = vld [vmem:[#allocation2 + $0x50] sm:$0xff] }
 0x132   :  { %v4937_v8 = vpop.eup %4936  ;;  %1149 = vst.msk [vmem:[#allocation2 + $0x70] sm:$0xff] %vm195_vm2, %v4564_v6  ;;  %v1360_v9 = vadd.f32 %v4578_v0, %v1344_v7  ;;  %949 = vst.msk [vmem:[%s6157_s2 + $0x60] sm:$0xff] %vm195_vm2, %v4935_v5  ;;  %v1120_v10 = vpop.f32.mrb[45].mxu0  ;;  %v1342_v11 = vld [vmem:[#allocation2 + $0x40] sm:$0xff] }
 0x133   :  { %v4939_v12 = vpop.eup %4938  ;;  %1147 = vst.msk [vmem:[#allocation2 + $0x60] sm:$0xff] %vm195_vm2, %v1120_v10  ;;  %v1358_v13 = vadd.f32 %v1342_v11, %v1303_v1  ;;  %952 = vst.msk [vmem:[%s6157_s2 + $0x78] sm:$0xff] %vm195_vm2, %v4937_v8  ;;  %v4565_v14 = vpop.f32.mrb[46].mxu0  ;;  %v1345_v15 = vld [vmem:[#allocation2 + $0x58] sm:$0xff]  ;;  %v1570_v49 = vld [vmem:[#allocation2 + $0x30] sm:$0xff] }
 0x134   :  { %1376 = vst.msk [vmem:[#allocation2 + $0x50] sm:$0xff] %vm195_vm2, %v1360_v9  ;;  %1150 = vst.msk [vmem:[#allocation2 + $0x78] sm:$0xff] %vm195_vm2, %v4565_v14  ;;  %v1361_v16 = vadd.f32 %v4579_v2, %v1345_v15  ;;  %v1123_v17 = vpop.f32.mrb[47].mxu0  ;;  %v4582_v20 = vpop.f32.mrb[44].mxu1  ;;  %v1568_v52 = vld [vmem:[#allocation2 + $0x20] sm:$0xff] }
 0x135   :  { %950 = vst.msk [vmem:[%s6157_s2 + $0x68] sm:$0xff] %vm195_vm2, %v4939_v12  ;;  %v1343_v18 = vld [vmem:[#allocation2 + $0x48] sm:$0xff]  ;;  %1374 = vst.msk [vmem:[#allocation2 + $0x40] sm:$0xff] %vm195_vm2, %v1358_v13  ;;  %v1319_v21 = vpop.f32.mrb[45].mxu1  ;;  %v1571_v56 = vld [vmem:[#allocation2 + $0x38] sm:$0xff] }
 0x136   :  { %1148 = vst.msk [vmem:[#allocation2 + $0x68] sm:$0xff] %vm195_vm2, %v1123_v17  ;;  %v1359_v19 = vadd.f32 %v1343_v18, %v1306_v4  ;;  %1377 = vst.msk [vmem:[#allocation2 + $0x58] sm:$0xff] %vm195_vm2, %v1361_v16  ;;  %v4583_v22 = vpop.f32.mrb[46].mxu1 }
 0x137   :  { %v1322_v23 = vpop.f32.mrb[47].mxu1  ;;  %v1569_v61 = vld [vmem:[#allocation2 + $0x28] sm:$0xff] }
 0x138   :  { %1375 = vst.msk [vmem:[#allocation2 + $0x48] sm:$0xff] %vm195_vm2, %v1359_v19 }
 0x139   :  { %v1348_v24 = vld [vmem:[#allocation2 + $0x70] sm:$0xff]  ;;  %v4588_v25 = vpop.f32.mrb[48].mxu0 }
 0x13a   :  { %v1364_v27 = vadd.f32 %v4582_v20, %v1348_v24  ;;  %v1582_v28 = vadd.f32 %v4588_v25, %v1566_v26  ;;  %v1346_v29 = vld [vmem:[#allocation2 + $0x60] sm:$0xff]  ;;  %v1501_v30 = vpop.f32.mrb[49].mxu0 }
 0x13b   :  { %v1362_v32 = vadd.f32 %v1346_v29, %v1319_v21  ;;  %v1580_v33 = vadd.f32 %v1564_v31, %v1501_v30  ;;  %v1349_v34 = vld [vmem:[#allocation2 + $0x78] sm:$0xff]  ;;  %v4589_v35 = vpop.f32.mrb[50].mxu0  ;;  %v4606_v44 = vpop.f32.mrb[48].mxu1  ;;  %v1574_v9 = vld [vmem:[#allocation2 + $0x50] sm:$0xff] }
 0x13c   :  { %1380 = vst.msk [vmem:[#allocation2 + $0x70] sm:$0xff] %vm195_vm2, %v1364_v27  ;;  %1598 = vst.msk [vmem:[#allocation2 + $0x10] sm:$0xff] %vm195_vm2, %v1582_v28  ;;  %v1365_v37 = vadd.f32 %v4583_v22, %v1349_v34  ;;  %v1583_v38 = vadd.f32 %v4589_v35, %v1567_v36  ;;  %v1504_v40 = vpop.f32.mrb[51].mxu0  ;;  %v1732_v45 = vpop.f32.mrb[49].mxu1  ;;  %v1572_v12 = vld [vmem:[#allocation2 + $0x40] sm:$0xff] }
 0x13d   :  { %v1347_v39 = vld [vmem:[#allocation2 + $0x68] sm:$0xff]  ;;  %1378 = vst.msk [vmem:[#allocation2 + $0x60] sm:$0xff] %vm195_vm2, %v1362_v32  ;;  %1596 = vst.msk [vmem:[#allocation2] sm:$0xff] %vm195_vm2, %v1580_v33  ;;  %v1581_v43 = vadd.f32 %v1565_v41, %v1504_v40  ;;  %v4607_v46 = vpop.f32.mrb[50].mxu1  ;;  %v1575_v16 = vld [vmem:[#allocation2 + $0x58] sm:$0xff] }
 0x13e   :  { %v1363_v42 = vadd.f32 %v1347_v39, %v1322_v23  ;;  %1381 = vst.msk [vmem:[#allocation2 + $0x78] sm:$0xff] %vm195_vm2, %v1365_v37  ;;  %1599 = vst.msk [vmem:[#allocation2 + $0x18] sm:$0xff] %vm195_vm2, %v1583_v38  ;;  %v1735_v47 = vpop.f32.mrb[51].mxu1 }
 0x13f   :  { %1597 = vst.msk [vmem:[#allocation2 + $0x8] sm:$0xff] %vm195_vm2, %v1581_v43  ;;  %v1573_v21 = vld [vmem:[#allocation2 + $0x48] sm:$0xff] }
 0x140   :  { %1379 = vst.msk [vmem:[#allocation2 + $0x68] sm:$0xff] %vm195_vm2, %v1363_v42 }
 0x141   :  { %v4592_v48 = vpop.f32.mrb[52].mxu0 }
 0x142   :  { %v1586_v50 = vadd.f32 %v4592_v48, %v1570_v49  ;;  %v1517_v51 = vpop.f32.mrb[53].mxu0 }
 0x143   :  { %v1797_v53 = vld [vmem:[#allocation2 + $0x10] sm:$0xff]  ;;  %v1584_v54 = vadd.f32 %v1568_v52, %v1517_v51  ;;  %v4593_v55 = vpop.f32.mrb[54].mxu0  ;;  %v4610_v1 = vpop.f32.mrb[52].mxu1 }
 0x144   :  { %1602 = vst.msk [vmem:[#allocation2 + $0x30] sm:$0xff] %vm195_vm2, %v1586_v50  ;;  %v1813_v57 = vadd.f32 %v4606_v44, %v1797_v53  ;;  %v1795_v58 = vld [vmem:[#allocation2] sm:$0xff]  ;;  %v1587_v59 = vadd.f32 %v4593_v55, %v1571_v56  ;;  %v1520_v60 = vpop.f32.mrb[55].mxu0  ;;  %v1748_v4 = vpop.f32.mrb[53].mxu1  ;;  %v1578_v37 = vld [vmem:[#allocation2 + $0x70] sm:$0xff] }
 0x145   :  { %1600 = vst.msk [vmem:[#allocation2 + $0x20] sm:$0xff] %vm195_vm2, %v1584_v54  ;;  %v1811_v62 = vadd.f32 %v1795_v58, %v1732_v45  ;;  %v1798_v63 = vld [vmem:[#allocation2 + $0x18] sm:$0xff]  ;;  %v1585_v0 = vadd.f32 %v1569_v61, %v1520_v60  ;;  %v4611_v6 = vpop.f32.mrb[54].mxu1  ;;  %v1576_v40 = vld [vmem:[#allocation2 + $0x60] sm:$0xff] }
 0x146   :  { %1829 = vst.msk [vmem:[#allocation2 + $0x10] sm:$0xff] %vm195_vm2, %v1813_v57  ;;  %1603 = vst.msk [vmem:[#allocation2 + $0x38] sm:$0xff] %vm195_vm2, %v1587_v59  ;;  %v1814_v2 = vadd.f32 %v4607_v46, %v1798_v63  ;;  %v1796_v3 = vld [vmem:[#allocation2 + $0x8] sm:$0xff]  ;;  %v1751_v7 = vpop.f32.mrb[55].mxu1  ;;  %v1579_v44 = vld [vmem:[#allocation2 + $0x78] sm:$0xff] }
 0x147   :  { %1827 = vst.msk [vmem:[#allocation2] sm:$0xff] %vm195_vm2, %v1811_v62  ;;  %1601 = vst.msk [vmem:[#allocation2 + $0x28] sm:$0xff] %vm195_vm2, %v1585_v0  ;;  %v1812_v5 = vadd.f32 %v1796_v3, %v1735_v47  ;;  %v1577_v49 = vld [vmem:[#allocation2 + $0x68] sm:$0xff] }
 0x148   :  { %1830 = vst.msk [vmem:[#allocation2 + $0x18] sm:$0xff] %vm195_vm2, %v1814_v2 }
 0x149   :  { %1828 = vst.msk [vmem:[#allocation2 + $0x8] sm:$0xff] %vm195_vm2, %v1812_v5  ;;  %v4596_v8 = vpop.f32.mrb[56].mxu0 }
 0x14a   :  { %v1590_v10 = vadd.f32 %v4596_v8, %v1574_v9  ;;  %v1533_v11 = vpop.f32.mrb[57].mxu0 }
 0x14b   :  { %v1801_v13 = vld [vmem:[#allocation2 + $0x30] sm:$0xff]  ;;  %v1588_v14 = vadd.f32 %v1572_v12, %v1533_v11  ;;  %v4597_v15 = vpop.f32.mrb[58].mxu0  ;;  %v4614_v25 = vpop.f32.mrb[56].mxu1 }
 0x14c   :  { %1606 = vst.msk [vmem:[#allocation2 + $0x50] sm:$0xff] %vm195_vm2, %v1590_v10  ;;  %v1817_v17 = vadd.f32 %v4610_v1, %v1801_v13  ;;  %v1799_v18 = vld [vmem:[#allocation2 + $0x20] sm:$0xff]  ;;  %v1591_v19 = vadd.f32 %v4597_v15, %v1575_v16  ;;  %v1536_v20 = vpop.f32.mrb[59].mxu0  ;;  %v1764_v29 = vpop.f32.mrb[57].mxu1 }
 0x14d   :  { %1604 = vst.msk [vmem:[#allocation2 + $0x40] sm:$0xff] %vm195_vm2, %v1588_v14  ;;  %v1815_v22 = vadd.f32 %v1799_v18, %v1748_v4  ;;  %v1802_v23 = vld [vmem:[#allocation2 + $0x38] sm:$0xff]  ;;  %v1589_v24 = vadd.f32 %v1573_v21, %v1536_v20  ;;  %v1845_v26 = vld [vmem:[#allocation2 + $0x10] sm:$0xff]  ;;  %v4615_v32 = vpop.f32.mrb[58].mxu1 }
 0x14e   :  { %1833 = vst.msk [vmem:[#allocation2 + $0x30] sm:$0xff] %vm195_vm2, %v1817_v17  ;;  %1607 = vst.msk [vmem:[#allocation2 + $0x58] sm:$0xff] %vm195_vm2, %v1591_v19  ;;  %v1818_v27 = vadd.f32 %v4611_v6, %v1802_v23  ;;  %v1800_v28 = vld [vmem:[#allocation2 + $0x28] sm:$0xff]  ;;  %4940 = vtanh.f32 %v1845_v26  ;;  %v1843_v30 = vld [vmem:[#allocation2] sm:$0xff]  ;;  %v1767_v34 = vpop.f32.mrb[59].mxu1 }
 0x14f   :  { %1831 = vst.msk [vmem:[#allocation2 + $0x20] sm:$0xff] %vm195_vm2, %v1815_v22  ;;  %1605 = vst.msk [vmem:[#allocation2 + $0x48] sm:$0xff] %vm195_vm2, %v1589_v24  ;;  %v1816_v31 = vadd.f32 %v1800_v28, %v1751_v7  ;;  %4942 = vtanh.f32 %v1843_v30  ;;  %v1846_v33 = vld [vmem:[#allocation2 + $0x18] sm:$0xff] }
 0x150   :  { %1834 = vst.msk [vmem:[#allocation2 + $0x38] sm:$0xff] %vm195_vm2, %v1818_v27  ;;  %4944 = vtanh.f32 %v1846_v33  ;;  %v1844_v35 = vld [vmem:[#allocation2 + $0x8] sm:$0xff] }
 0x151   :  { %1832 = vst.msk [vmem:[#allocation2 + $0x28] sm:$0xff] %vm195_vm2, %v1816_v31  ;;  %v4600_v36 = vpop.f32.mrb[60].mxu0  ;;  %4946 = vtanh.f32 %v1844_v35 }
 0x152   :  { %v1594_v38 = vadd.f32 %v4600_v36, %v1578_v37  ;;  %v1549_v39 = vpop.f32.mrb[61].mxu0 }
 0x153   :  { %v1805_v41 = vld [vmem:[#allocation2 + $0x50] sm:$0xff]  ;;  %v1592_v42 = vadd.f32 %v1576_v40, %v1549_v39  ;;  %v4601_v43 = vpop.f32.mrb[62].mxu0  ;;  %v4618_v53 = vpop.f32.mrb[60].mxu1 }
 0x154   :  { %1610 = vst.msk [vmem:[#allocation2 + $0x70] sm:$0xff] %vm195_vm2, %v1594_v38  ;;  %v1821_v45 = vadd.f32 %v4614_v25, %v1805_v41  ;;  %v1803_v46 = vld [vmem:[#allocation2 + $0x40] sm:$0xff]  ;;  %v1595_v47 = vadd.f32 %v4601_v43, %v1579_v44  ;;  %v1552_v48 = vpop.f32.mrb[63].mxu0  ;;  %v1780_v57 = vpop.f32.mrb[61].mxu1 }
 0x155   :  { %1608 = vst.msk [vmem:[#allocation2 + $0x60] sm:$0xff] %vm195_vm2, %v1592_v42  ;;  %v1819_v50 = vadd.f32 %v1803_v46, %v1764_v29  ;;  %v1806_v51 = vld [vmem:[#allocation2 + $0x58] sm:$0xff]  ;;  %v1593_v52 = vadd.f32 %v1577_v49, %v1552_v48  ;;  %v1849_v54 = vld [vmem:[#allocation2 + $0x30] sm:$0xff]  ;;  %v4619_v60 = vpop.f32.mrb[62].mxu1 }
 0x156   :  { %1837 = vst.msk [vmem:[#allocation2 + $0x50] sm:$0xff] %vm195_vm2, %v1821_v45  ;;  %1611 = vst.msk [vmem:[#allocation2 + $0x78] sm:$0xff] %vm195_vm2, %v1595_v47  ;;  %v1822_v55 = vadd.f32 %v4615_v32, %v1806_v51  ;;  %v1804_v56 = vld [vmem:[#allocation2 + $0x48] sm:$0xff]  ;;  %4948 = vtanh.f32 %v1849_v54  ;;  %v1847_v58 = vld [vmem:[#allocation2 + $0x20] sm:$0xff]  ;;  %v1783_v63 = vpop.f32.mrb[63].mxu1 }
 0x157   :  { %1835 = vst.msk [vmem:[#allocation2 + $0x40] sm:$0xff] %vm195_vm2, %v1819_v50  ;;  %1609 = vst.msk [vmem:[#allocation2 + $0x68] sm:$0xff] %vm195_vm2, %v1593_v52  ;;  %v1820_v59 = vadd.f32 %v1804_v56, %v1767_v34  ;;  %4950 = vtanh.f32 %v1847_v58  ;;  %v1850_v61 = vld [vmem:[#allocation2 + $0x38] sm:$0xff] }
 0x158   :  { %v4941_v62 = vpop.eup %4940  ;;  %1838 = vst.msk [vmem:[#allocation2 + $0x58] sm:$0xff] %vm195_vm2, %v1822_v55  ;;  %4952 = vtanh.f32 %v1850_v61  ;;  %v1848_v0 = vld [vmem:[#allocation2 + $0x28] sm:$0xff] }
 0x159   :  { %v4943_v1 = vpop.eup %4942  ;;  %1836 = vst.msk [vmem:[#allocation2 + $0x48] sm:$0xff] %vm195_vm2, %v1820_v59  ;;  %4022 = vst.msk [vmem:[%s6157_s2 + $0x90] sm:$0xff] %vm195_vm2, %v4941_v62  ;;  %v4624_v2 = vpop.f32.mrb[64].mxu0  ;;  %4954 = vtanh.f32 %v1848_v0 }
 0x15a   :  { %v4945_v3 = vpop.eup %4944  ;;  %2076 = vst.msk [vmem:[#allocation2 + $0x10] sm:$0xff] %vm195_vm2, %v4624_v2  ;;  %4020 = vst.msk [vmem:[%s6157_s2 + $0x80] sm:$0xff] %vm195_vm2, %v4943_v1  ;;  %v2011_v4 = vpop.f32.mrb[65].mxu0 }
 0x15b   :  { %v4947_v5 = vpop.eup %4946  ;;  %v1809_v6 = vld [vmem:[#allocation2 + $0x70] sm:$0xff]  ;;  %2074 = vst.msk [vmem:[#allocation2] sm:$0xff] %vm195_vm2, %v2011_v4  ;;  %4023 = vst.msk [vmem:[%s6157_s2 + $0x98] sm:$0xff] %vm195_vm2, %v4945_v3  ;;  %v4625_v7 = vpop.f32.mrb[66].mxu0 }
 0x15c   :  { %v1825_v8 = vadd.f32 %v4618_v53, %v1809_v6  ;;  %v1807_v9 = vld [vmem:[#allocation2 + $0x60] sm:$0xff]  ;;  %2077 = vst.msk [vmem:[#allocation2 + $0x18] sm:$0xff] %vm195_vm2, %v4625_v7  ;;  %4021 = vst.msk [vmem:[%s6157_s2 + $0x88] sm:$0xff] %vm195_vm2, %v4947_v5  ;;  %v2014_v10 = vpop.f32.mrb[67].mxu0  ;;  %v4642_v13 = vpop.f32.mrb[64].mxu1 }
 0x15d   :  { %v1823_v11 = vadd.f32 %v1807_v9, %v1780_v57  ;;  %v1810_v12 = vld [vmem:[#allocation2 + $0x78] sm:$0xff]  ;;  %2075 = vst.msk [vmem:[#allocation2 + $0x8] sm:$0xff] %vm195_vm2, %v2014_v10  ;;  %v1853_v14 = vld [vmem:[#allocation2 + $0x50] sm:$0xff]  ;;  %v2209_v17 = vpop.f32.mrb[65].mxu1 }
 0x15e   :  { %1841 = vst.msk [vmem:[#allocation2 + $0x70] sm:$0xff] %vm195_vm2, %v1825_v8  ;;  %v1826_v15 = vadd.f32 %v4619_v60, %v1810_v12  ;;  %v1808_v16 = vld [vmem:[#allocation2 + $0x68] sm:$0xff]  ;;  %4956 = vtanh.f32 %v1853_v14  ;;  %v1851_v18 = vld [vmem:[#allocation2 + $0x40] sm:$0xff]  ;;  %v4643_v20 = vpop.f32.mrb[66].mxu1 }
 0x15f   :  { %1839 = vst.msk [vmem:[#allocation2 + $0x60] sm:$0xff] %vm195_vm2, %v1823_v11  ;;  %v1824_v19 = vadd.f32 %v1808_v16, %v1783_v63  ;;  %4958 = vtanh.f32 %v1851_v18  ;;  %v1854_v21 = vld [vmem:[#allocation2 + $0x58] sm:$0xff]  ;;  %v2212_v23 = vpop.f32.mrb[67].mxu1 }
 0x160   :  { %v4949_v22 = vpop.eup %4948  ;;  %1842 = vst.msk [vmem:[#allocation2 + $0x78] sm:$0xff] %vm195_vm2, %v1826_v15  ;;  %4960 = vtanh.f32 %v1854_v21  ;;  %v1852_v24 = vld [vmem:[#allocation2 + $0x48] sm:$0xff] }
 0x161   :  { %v4951_v25 = vpop.eup %4950  ;;  %1840 = vst.msk [vmem:[#allocation2 + $0x68] sm:$0xff] %vm195_vm2, %v1824_v19  ;;  %4026 = vst.msk [vmem:[%s6157_s2 + $0xb0] sm:$0xff] %vm195_vm2, %v4949_v22  ;;  %v4628_v26 = vpop.f32.mrb[68].mxu0  ;;  %v2274_v27 = vld [vmem:[#allocation2 + $0x10] sm:$0xff]  ;;  %4962 = vtanh.f32 %v1852_v24 }
 0x162   :  { %v4953_v28 = vpop.eup %4952  ;;  %2080 = vst.msk [vmem:[#allocation2 + $0x30] sm:$0xff] %vm195_vm2, %v4628_v26  ;;  %v2290_v29 = vadd.f32 %v4642_v13, %v2274_v27  ;;  %4024 = vst.msk [vmem:[%s6157_s2 + $0xa0] sm:$0xff] %vm195_vm2, %v4951_v25  ;;  %v2027_v30 = vpop.f32.mrb[69].mxu0  ;;  %v2272_v31 = vld [vmem:[#allocation2] sm:$0xff] }
 0x163   :  { %v4955_v32 = vpop.eup %4954  ;;  %2078 = vst.msk [vmem:[#allocation2 + $0x20] sm:$0xff] %vm195_vm2, %v2027_v30  ;;  %v2288_v33 = vadd.f32 %v2272_v31, %v2209_v17  ;;  %4027 = vst.msk [vmem:[%s6157_s2 + $0xb8] sm:$0xff] %vm195_vm2, %v4953_v28  ;;  %v4629_v34 = vpop.f32.mrb[70].mxu0  ;;  %v2275_v35 = vld [vmem:[#allocation2 + $0x18] sm:$0xff] }
 0x164   :  { %2306 = vst.msk [vmem:[#allocation2 + $0x10] sm:$0xff] %vm195_vm2, %v2290_v29  ;;  %2081 = vst.msk [vmem:[#allocation2 + $0x38] sm:$0xff] %vm195_vm2, %v4629_v34  ;;  %v2291_v36 = vadd.f32 %v4643_v20, %v2275_v35  ;;  %v2030_v37 = vpop.f32.mrb[71].mxu0  ;;  %v2273_v38 = vld [vmem:[#allocation2 + $0x8] sm:$0xff]  ;;  %v4646_v40 = vpop.f32.mrb[68].mxu1 }
 0x165   :  { %4025 = vst.msk [vmem:[%s6157_s2 + $0xa8] sm:$0xff] %vm195_vm2, %v4955_v32  ;;  %2304 = vst.msk [vmem:[#allocation2] sm:$0xff] %vm195_vm2, %v2288_v33  ;;  %v2289_v39 = vadd.f32 %v2273_v38, %v2212_v23  ;;  %v1857_v41 = vld [vmem:[#allocation2 + $0x70] sm:$0xff]  ;;  %v2225_v42 = vpop.f32.mrb[69].mxu1 }
 0x166   :  { %2079 = vst.msk [vmem:[#allocation2 + $0x28] sm:$0xff] %vm195_vm2, %v2030_v37  ;;  %2307 = vst.msk [vmem:[#allocation2 + $0x18] sm:$0xff] %vm195_vm2, %v2291_v36  ;;  %4964 = vtanh.f32 %v1857_v41  ;;  %v1855_v43 = vld [vmem:[#allocation2 + $0x60] sm:$0xff]  ;;  %v4647_v44 = vpop.f32.mrb[70].mxu1 }
 0x167   :  { %2305 = vst.msk [vmem:[#allocation2 + $0x8] sm:$0xff] %vm195_vm2, %v2289_v39  ;;  %4966 = vtanh.f32 %v1855_v43  ;;  %v1858_v45 = vld [vmem:[#allocation2 + $0x78] sm:$0xff]  ;;  %v2228_v47 = vpop.f32.mrb[71].mxu1 }
 0x168   :  { %v4957_v46 = vpop.eup %4956  ;;  %4968 = vtanh.f32 %v1858_v45  ;;  %v1856_v48 = vld [vmem:[#allocation2 + $0x68] sm:$0xff] }
 0x169   :  { %v4959_v49 = vpop.eup %4958  ;;  %4030 = vst.msk [vmem:[%s6157_s2 + $0xd0] sm:$0xff] %vm195_vm2, %v4957_v46  ;;  %v4632_v50 = vpop.f32.mrb[72].mxu0  ;;  %v2278_v51 = vld [vmem:[#allocation2 + $0x30] sm:$0xff]  ;;  %4970 = vtanh.f32 %v1856_v48 }
 0x16a   :  { %v4961_v52 = vpop.eup %4960  ;;  %2084 = vst.msk [vmem:[#allocation2 + $0x50] sm:$0xff] %vm195_vm2, %v4632_v50  ;;  %v2294_v53 = vadd.f32 %v4646_v40, %v2278_v51  ;;  %4028 = vst.msk [vmem:[%s6157_s2 + $0xc0] sm:$0xff] %vm195_vm2, %v4959_v49  ;;  %v2043_v54 = vpop.f32.mrb[73].mxu0  ;;  %v2276_v55 = vld [vmem:[#allocation2 + $0x20] sm:$0xff] }
 0x16b   :  { %v4963_v56 = vpop.eup %4962  ;;  %2082 = vst.msk [vmem:[#allocation2 + $0x40] sm:$0xff] %vm195_vm2, %v2043_v54  ;;  %v2292_v57 = vadd.f32 %v2276_v55, %v2225_v42  ;;  %4031 = vst.msk [vmem:[%s6157_s2 + $0xd8] sm:$0xff] %vm195_vm2, %v4961_v52  ;;  %v4633_v58 = vpop.f32.mrb[74].mxu0  ;;  %v2279_v59 = vld [vmem:[#allocation2 + $0x38] sm:$0xff]  ;;  %v2505_v26 = vld [vmem:[#allocation2 + $0x10] sm:$0xff] }
 0x16c   :  { %2310 = vst.msk [vmem:[#allocation2 + $0x30] sm:$0xff] %vm195_vm2, %v2294_v53  ;;  %2085 = vst.msk [vmem:[#allocation2 + $0x58] sm:$0xff] %vm195_vm2, %v4633_v58  ;;  %v2295_v60 = vadd.f32 %v4647_v44, %v2279_v59  ;;  %v2046_v61 = vpop.f32.mrb[75].mxu0  ;;  %v4650_v0 = vpop.f32.mrb[72].mxu1  ;;  %v2503_v31 = vld [vmem:[#allocation2] sm:$0xff] }
 0x16d   :  { %4029 = vst.msk [vmem:[%s6157_s2 + $0xc8] sm:$0xff] %vm195_vm2, %v4963_v56  ;;  %v2277_v62 = vld [vmem:[#allocation2 + $0x28] sm:$0xff]  ;;  %2308 = vst.msk [vmem:[#allocation2 + $0x20] sm:$0xff] %vm195_vm2, %v2292_v57  ;;  %v2241_v1 = vpop.f32.mrb[73].mxu1  ;;  %v2506_v36 = vld [vmem:[#allocation2 + $0x18] sm:$0xff] }
 0x16e   :  { %2083 = vst.msk [vmem:[#allocation2 + $0x48] sm:$0xff] %vm195_vm2, %v2046_v61  ;;  %v2293_v63 = vadd.f32 %v2277_v62, %v2228_v47  ;;  %2311 = vst.msk [vmem:[#allocation2 + $0x38] sm:$0xff] %vm195_vm2, %v2295_v60  ;;  %v4651_v2 = vpop.f32.mrb[74].mxu1  ;;  %v2504_v41 = vld [vmem:[#allocation2 + $0x8] sm:$0xff] }
 0x16f   :  { %v2244_v4 = vpop.f32.mrb[75].mxu1 }
 0x170   :  { %2309 = vst.msk [vmem:[#allocation2 + $0x28] sm:$0xff] %vm195_vm2, %v2293_v63  ;;  %v4965_v3 = vpop.eup %4964 }
 0x171   :  { %v4967_v5 = vpop.eup %4966  ;;  %4034 = vst.msk [vmem:[%s6157_s2 + $0xf0] sm:$0xff] %vm195_vm2, %v4965_v3  ;;  %v4636_v6 = vpop.f32.mrb[76].mxu0  ;;  %v2282_v7 = vld [vmem:[#allocation2 + $0x50] sm:$0xff] }
 0x172   :  { %v4969_v8 = vpop.eup %4968  ;;  %2088 = vst.msk [vmem:[#allocation2 + $0x70] sm:$0xff] %vm195_vm2, %v4636_v6  ;;  %v2298_v9 = vadd.f32 %v4650_v0, %v2282_v7  ;;  %4032 = vst.msk [vmem:[%s6157_s2 + $0xe0] sm:$0xff] %vm195_vm2, %v4967_v5  ;;  %v2059_v10 = vpop.f32.mrb[77].mxu0  ;;  %v2280_v11 = vld [vmem:[#allocation2 + $0x40] sm:$0xff] }
 0x173   :  { %v4971_v12 = vpop.eup %4970  ;;  %2086 = vst.msk [vmem:[#allocation2 + $0x60] sm:$0xff] %vm195_vm2, %v2059_v10  ;;  %v2296_v13 = vadd.f32 %v2280_v11, %v2241_v1  ;;  %4035 = vst.msk [vmem:[%s6157_s2 + $0xf8] sm:$0xff] %vm195_vm2, %v4969_v8  ;;  %v4637_v14 = vpop.f32.mrb[78].mxu0  ;;  %v2283_v15 = vld [vmem:[#allocation2 + $0x58] sm:$0xff]  ;;  %v2509_v49 = vld [vmem:[#allocation2 + $0x30] sm:$0xff] }
 0x174   :  { %2314 = vst.msk [vmem:[#allocation2 + $0x50] sm:$0xff] %vm195_vm2, %v2298_v9  ;;  %2089 = vst.msk [vmem:[#allocation2 + $0x78] sm:$0xff] %vm195_vm2, %v4637_v14  ;;  %v2299_v16 = vadd.f32 %v4651_v2, %v2283_v15  ;;  %v2062_v17 = vpop.f32.mrb[79].mxu0  ;;  %v4654_v20 = vpop.f32.mrb[76].mxu1  ;;  %v2507_v52 = vld [vmem:[#allocation2 + $0x20] sm:$0xff] }
 0x175   :  { %4033 = vst.msk [vmem:[%s6157_s2 + $0xe8] sm:$0xff] %vm195_vm2, %v4971_v12  ;;  %v2281_v18 = vld [vmem:[#allocation2 + $0x48] sm:$0xff]  ;;  %2312 = vst.msk [vmem:[#allocation2 + $0x40] sm:$0xff] %vm195_vm2, %v2296_v13  ;;  %v2257_v21 = vpop.f32.mrb[77].mxu1  ;;  %v2510_v56 = vld [vmem:[#allocation2 + $0x38] sm:$0xff] }
 0x176   :  { %2087 = vst.msk [vmem:[#allocation2 + $0x68] sm:$0xff] %vm195_vm2, %v2062_v17  ;;  %v2297_v19 = vadd.f32 %v2281_v18, %v2244_v4  ;;  %2315 = vst.msk [vmem:[#allocation2 + $0x58] sm:$0xff] %vm195_vm2, %v2299_v16  ;;  %v4655_v22 = vpop.f32.mrb[78].mxu1 }
 0x177   :  { %v2260_v23 = vpop.f32.mrb[79].mxu1  ;;  %v2508_v61 = vld [vmem:[#allocation2 + $0x28] sm:$0xff] }
 0x178   :  { %2313 = vst.msk [vmem:[#allocation2 + $0x48] sm:$0xff] %vm195_vm2, %v2297_v19 }
 0x179   :  { %v2286_v24 = vld [vmem:[#allocation2 + $0x70] sm:$0xff]  ;;  %v4660_v25 = vpop.f32.mrb[80].mxu0 }
 0x17a   :  { %v2302_v27 = vadd.f32 %v4654_v20, %v2286_v24  ;;  %v2521_v28 = vadd.f32 %v4660_v25, %v2505_v26  ;;  %v2284_v29 = vld [vmem:[#allocation2 + $0x60] sm:$0xff]  ;;  %v2440_v30 = vpop.f32.mrb[81].mxu0 }
 0x17b   :  { %v2300_v32 = vadd.f32 %v2284_v29, %v2257_v21  ;;  %v2519_v33 = vadd.f32 %v2503_v31, %v2440_v30  ;;  %v2287_v34 = vld [vmem:[#allocation2 + $0x78] sm:$0xff]  ;;  %v4661_v35 = vpop.f32.mrb[82].mxu0  ;;  %v4678_v44 = vpop.f32.mrb[80].mxu1  ;;  %v2513_v9 = vld [vmem:[#allocation2 + $0x50] sm:$0xff] }
 0x17c   :  { %2318 = vst.msk [vmem:[#allocation2 + $0x70] sm:$0xff] %vm195_vm2, %v2302_v27  ;;  %2537 = vst.msk [vmem:[#allocation2 + $0x10] sm:$0xff] %vm195_vm2, %v2521_v28  ;;  %v2303_v37 = vadd.f32 %v4655_v22, %v2287_v34  ;;  %v2522_v38 = vadd.f32 %v4661_v35, %v2506_v36  ;;  %v2443_v40 = vpop.f32.mrb[83].mxu0  ;;  %v2671_v45 = vpop.f32.mrb[81].mxu1  ;;  %v2511_v12 = vld [vmem:[#allocation2 + $0x40] sm:$0xff] }
 0x17d   :  { %v2285_v39 = vld [vmem:[#allocation2 + $0x68] sm:$0xff]  ;;  %2316 = vst.msk [vmem:[#allocation2 + $0x60] sm:$0xff] %vm195_vm2, %v2300_v32  ;;  %2535 = vst.msk [vmem:[#allocation2] sm:$0xff] %vm195_vm2, %v2519_v33  ;;  %v2520_v43 = vadd.f32 %v2504_v41, %v2443_v40  ;;  %v4679_v46 = vpop.f32.mrb[82].mxu1  ;;  %v2514_v16 = vld [vmem:[#allocation2 + $0x58] sm:$0xff] }
 0x17e   :  { %v2301_v42 = vadd.f32 %v2285_v39, %v2260_v23  ;;  %2319 = vst.msk [vmem:[#allocation2 + $0x78] sm:$0xff] %vm195_vm2, %v2303_v37  ;;  %2538 = vst.msk [vmem:[#allocation2 + $0x18] sm:$0xff] %vm195_vm2, %v2522_v38  ;;  %v2674_v47 = vpop.f32.mrb[83].mxu1 }
 0x17f   :  { %2536 = vst.msk [vmem:[#allocation2 + $0x8] sm:$0xff] %vm195_vm2, %v2520_v43  ;;  %v2512_v21 = vld [vmem:[#allocation2 + $0x48] sm:$0xff] }
 0x180   :  { %2317 = vst.msk [vmem:[#allocation2 + $0x68] sm:$0xff] %vm195_vm2, %v2301_v42 }
 0x181   :  { %v4664_v48 = vpop.f32.mrb[84].mxu0 }
 0x182   :  { %v2525_v50 = vadd.f32 %v4664_v48, %v2509_v49  ;;  %v2456_v51 = vpop.f32.mrb[85].mxu0 }
 0x183   :  { %v2736_v53 = vld [vmem:[#allocation2 + $0x10] sm:$0xff]  ;;  %v2523_v54 = vadd.f32 %v2507_v52, %v2456_v51  ;;  %v4665_v55 = vpop.f32.mrb[86].mxu0  ;;  %v4682_v1 = vpop.f32.mrb[84].mxu1 }
 0x184   :  { %2541 = vst.msk [vmem:[#allocation2 + $0x30] sm:$0xff] %vm195_vm2, %v2525_v50  ;;  %v2752_v57 = vadd.f32 %v4678_v44, %v2736_v53  ;;  %v2734_v58 = vld [vmem:[#allocation2] sm:$0xff]  ;;  %v2526_v59 = vadd.f32 %v4665_v55, %v2510_v56  ;;  %v2459_v60 = vpop.f32.mrb[87].mxu0  ;;  %v2687_v4 = vpop.f32.mrb[85].mxu1  ;;  %v2517_v37 = vld [vmem:[#allocation2 + $0x70] sm:$0xff] }
 0x185   :  { %2539 = vst.msk [vmem:[#allocation2 + $0x20] sm:$0xff] %vm195_vm2, %v2523_v54  ;;  %v2750_v62 = vadd.f32 %v2734_v58, %v2671_v45  ;;  %v2737_v63 = vld [vmem:[#allocation2 + $0x18] sm:$0xff]  ;;  %v2524_v0 = vadd.f32 %v2508_v61, %v2459_v60  ;;  %v4683_v6 = vpop.f32.mrb[86].mxu1  ;;  %v2515_v40 = vld [vmem:[#allocation2 + $0x60] sm:$0xff] }
 0x186   :  { %2768 = vst.msk [vmem:[#allocation2 + $0x10] sm:$0xff] %vm195_vm2, %v2752_v57  ;;  %2542 = vst.msk [vmem:[#allocation2 + $0x38] sm:$0xff] %vm195_vm2, %v2526_v59  ;;  %v2753_v2 = vadd.f32 %v4679_v46, %v2737_v63  ;;  %v2735_v3 = vld [vmem:[#allocation2 + $0x8] sm:$0xff]  ;;  %v2690_v7 = vpop.f32.mrb[87].mxu1  ;;  %v2518_v44 = vld [vmem:[#allocation2 + $0x78] sm:$0xff] }
 0x187   :  { %2766 = vst.msk [vmem:[#allocation2] sm:$0xff] %vm195_vm2, %v2750_v62  ;;  %2540 = vst.msk [vmem:[#allocation2 + $0x28] sm:$0xff] %vm195_vm2, %v2524_v0  ;;  %v2751_v5 = vadd.f32 %v2735_v3, %v2674_v47  ;;  %v2516_v49 = vld [vmem:[#allocation2 + $0x68] sm:$0xff] }
 0x188   :  { %2769 = vst.msk [vmem:[#allocation2 + $0x18] sm:$0xff] %vm195_vm2, %v2753_v2 }
 0x189   :  { %2767 = vst.msk [vmem:[#allocation2 + $0x8] sm:$0xff] %vm195_vm2, %v2751_v5  ;;  %v4668_v8 = vpop.f32.mrb[88].mxu0 }
 0x18a   :  { %v2529_v10 = vadd.f32 %v4668_v8, %v2513_v9  ;;  %v2472_v11 = vpop.f32.mrb[89].mxu0 }
 0x18b   :  { %v2740_v13 = vld [vmem:[#allocation2 + $0x30] sm:$0xff]  ;;  %v2527_v14 = vadd.f32 %v2511_v12, %v2472_v11  ;;  %v4669_v15 = vpop.f32.mrb[90].mxu0  ;;  %v4686_v25 = vpop.f32.mrb[88].mxu1 }
 0x18c   :  { %2545 = vst.msk [vmem:[#allocation2 + $0x50] sm:$0xff] %vm195_vm2, %v2529_v10  ;;  %v2756_v17 = vadd.f32 %v4682_v1, %v2740_v13  ;;  %v2738_v18 = vld [vmem:[#allocation2 + $0x20] sm:$0xff]  ;;  %v2530_v19 = vadd.f32 %v4669_v15, %v2514_v16  ;;  %v2475_v20 = vpop.f32.mrb[91].mxu0  ;;  %v2703_v29 = vpop.f32.mrb[89].mxu1 }
 0x18d   :  { %2543 = vst.msk [vmem:[#allocation2 + $0x40] sm:$0xff] %vm195_vm2, %v2527_v14  ;;  %v2754_v22 = vadd.f32 %v2738_v18, %v2687_v4  ;;  %v2741_v23 = vld [vmem:[#allocation2 + $0x38] sm:$0xff]  ;;  %v2528_v24 = vadd.f32 %v2512_v21, %v2475_v20  ;;  %v2784_v26 = vld [vmem:[#allocation2 + $0x10] sm:$0xff]  ;;  %v4687_v32 = vpop.f32.mrb[90].mxu1 }
 0x18e   :  { %2772 = vst.msk [vmem:[#allocation2 + $0x30] sm:$0xff] %vm195_vm2, %v2756_v17  ;;  %2546 = vst.msk [vmem:[#allocation2 + $0x58] sm:$0xff] %vm195_vm2, %v2530_v19  ;;  %v2757_v27 = vadd.f32 %v4683_v6, %v2741_v23  ;;  %v2739_v28 = vld [vmem:[#allocation2 + $0x28] sm:$0xff]  ;;  %4972 = vtanh.f32 %v2784_v26  ;;  %v2782_v30 = vld [vmem:[#allocation2] sm:$0xff]  ;;  %v2706_v34 = vpop.f32.mrb[91].mxu1 }
 0x18f   :  { %2770 = vst.msk [vmem:[#allocation2 + $0x20] sm:$0xff] %vm195_vm2, %v2754_v22  ;;  %2544 = vst.msk [vmem:[#allocation2 + $0x48] sm:$0xff] %vm195_vm2, %v2528_v24  ;;  %v2755_v31 = vadd.f32 %v2739_v28, %v2690_v7  ;;  %4974 = vtanh.f32 %v2782_v30  ;;  %v2785_v33 = vld [vmem:[#allocation2 + $0x18] sm:$0xff] }
 0x190   :  { %2773 = vst.msk [vmem:[#allocation2 + $0x38] sm:$0xff] %vm195_vm2, %v2757_v27  ;;  %4976 = vtanh.f32 %v2785_v33  ;;  %v2783_v35 = vld [vmem:[#allocation2 + $0x8] sm:$0xff] }
 0x191   :  { %2771 = vst.msk [vmem:[#allocation2 + $0x28] sm:$0xff] %vm195_vm2, %v2755_v31  ;;  %v4672_v36 = vpop.f32.mrb[92].mxu0  ;;  %4978 = vtanh.f32 %v2783_v35 }
 0x192   :  { %v2533_v38 = vadd.f32 %v4672_v36, %v2517_v37  ;;  %v2488_v39 = vpop.f32.mrb[93].mxu0 }
 0x193   :  { %v2744_v41 = vld [vmem:[#allocation2 + $0x50] sm:$0xff]  ;;  %v2531_v42 = vadd.f32 %v2515_v40, %v2488_v39  ;;  %v4673_v43 = vpop.f32.mrb[94].mxu0  ;;  %v4690_v53 = vpop.f32.mrb[92].mxu1 }
 0x194   :  { %2549 = vst.msk [vmem:[#allocation2 + $0x70] sm:$0xff] %vm195_vm2, %v2533_v38  ;;  %v2760_v45 = vadd.f32 %v4686_v25, %v2744_v41  ;;  %v2742_v46 = vld [vmem:[#allocation2 + $0x40] sm:$0xff]  ;;  %v2534_v47 = vadd.f32 %v4673_v43, %v2518_v44  ;;  %v2491_v48 = vpop.f32.mrb[95].mxu0  ;;  %v2719_v57 = vpop.f32.mrb[93].mxu1 }
 0x195   :  { %2547 = vst.msk [vmem:[#allocation2 + $0x60] sm:$0xff] %vm195_vm2, %v2531_v42  ;;  %v2758_v50 = vadd.f32 %v2742_v46, %v2703_v29  ;;  %v2745_v51 = vld [vmem:[#allocation2 + $0x58] sm:$0xff]  ;;  %v2532_v52 = vadd.f32 %v2516_v49, %v2491_v48  ;;  %v2788_v54 = vld [vmem:[#allocation2 + $0x30] sm:$0xff]  ;;  %v4691_v60 = vpop.f32.mrb[94].mxu1 }
 0x196   :  { %2776 = vst.msk [vmem:[#allocation2 + $0x50] sm:$0xff] %vm195_vm2, %v2760_v45  ;;  %2550 = vst.msk [vmem:[#allocation2 + $0x78] sm:$0xff] %vm195_vm2, %v2534_v47  ;;  %v2761_v55 = vadd.f32 %v4687_v32, %v2745_v51  ;;  %v2743_v56 = vld [vmem:[#allocation2 + $0x48] sm:$0xff]  ;;  %4980 = vtanh.f32 %v2788_v54  ;;  %v2786_v58 = vld [vmem:[#allocation2 + $0x20] sm:$0xff]  ;;  %v2722_v63 = vpop.f32.mrb[95].mxu1 }
 0x197   :  { %2774 = vst.msk [vmem:[#allocation2 + $0x40] sm:$0xff] %vm195_vm2, %v2758_v50  ;;  %2548 = vst.msk [vmem:[#allocation2 + $0x68] sm:$0xff] %vm195_vm2, %v2532_v52  ;;  %v2759_v59 = vadd.f32 %v2743_v56, %v2706_v34  ;;  %4982 = vtanh.f32 %v2786_v58  ;;  %v2789_v61 = vld [vmem:[#allocation2 + $0x38] sm:$0xff] }
 0x198   :  { %v4973_v62 = vpop.eup %4972  ;;  %2777 = vst.msk [vmem:[#allocation2 + $0x58] sm:$0xff] %vm195_vm2, %v2761_v55  ;;  %4984 = vtanh.f32 %v2789_v61  ;;  %v2787_v0 = vld [vmem:[#allocation2 + $0x28] sm:$0xff] }
 0x199   :  { %v4975_v1 = vpop.eup %4974  ;;  %2775 = vst.msk [vmem:[#allocation2 + $0x48] sm:$0xff] %vm195_vm2, %v2759_v59  ;;  %4170 = vst.msk [vmem:[%s6157_s2 + $0x110] sm:$0xff] %vm195_vm2, %v4973_v62  ;;  %v4696_v2 = vpop.f32.mrb[96].mxu0  ;;  %4986 = vtanh.f32 %v2787_v0 }
 0x19a   :  { %v4977_v3 = vpop.eup %4976  ;;  %3015 = vst.msk [vmem:[#allocation2 + $0x10] sm:$0xff] %vm195_vm2, %v4696_v2  ;;  %4168 = vst.msk [vmem:[%s6157_s2 + $0x100] sm:$0xff] %vm195_vm2, %v4975_v1  ;;  %v2950_v4 = vpop.f32.mrb[97].mxu0 }
 0x19b   :  { %v4979_v5 = vpop.eup %4978  ;;  %v2748_v6 = vld [vmem:[#allocation2 + $0x70] sm:$0xff]  ;;  %3013 = vst.msk [vmem:[#allocation2] sm:$0xff] %vm195_vm2, %v2950_v4  ;;  %4171 = vst.msk [vmem:[%s6157_s2 + $0x118] sm:$0xff] %vm195_vm2, %v4977_v3  ;;  %v4697_v7 = vpop.f32.mrb[98].mxu0 }
 0x19c   :  { %v2764_v8 = vadd.f32 %v4690_v53, %v2748_v6  ;;  %v2746_v9 = vld [vmem:[#allocation2 + $0x60] sm:$0xff]  ;;  %3016 = vst.msk [vmem:[#allocation2 + $0x18] sm:$0xff] %vm195_vm2, %v4697_v7  ;;  %4169 = vst.msk [vmem:[%s6157_s2 + $0x108] sm:$0xff] %vm195_vm2, %v4979_v5  ;;  %v2953_v10 = vpop.f32.mrb[99].mxu0  ;;  %v4714_v13 = vpop.f32.mrb[96].mxu1 }
 0x19d   :  { %v2762_v11 = vadd.f32 %v2746_v9, %v2719_v57  ;;  %v2749_v12 = vld [vmem:[#allocation2 + $0x78] sm:$0xff]  ;;  %3014 = vst.msk [vmem:[#allocation2 + $0x8] sm:$0xff] %vm195_vm2, %v2953_v10  ;;  %v2792_v14 = vld [vmem:[#allocation2 + $0x50] sm:$0xff]  ;;  %v3148_v17 = vpop.f32.mrb[97].mxu1 }
 0x19e   :  { %2780 = vst.msk [vmem:[#allocation2 + $0x70] sm:$0xff] %vm195_vm2, %v2764_v8  ;;  %v2765_v15 = vadd.f32 %v4691_v60, %v2749_v12  ;;  %v2747_v16 = vld [vmem:[#allocation2 + $0x68] sm:$0xff]  ;;  %4988 = vtanh.f32 %v2792_v14  ;;  %v2790_v18 = vld [vmem:[#allocation2 + $0x40] sm:$0xff]  ;;  %v4715_v20 = vpop.f32.mrb[98].mxu1 }
 0x19f   :  { %2778 = vst.msk [vmem:[#allocation2 + $0x60] sm:$0xff] %vm195_vm2, %v2762_v11  ;;  %v2763_v19 = vadd.f32 %v2747_v16, %v2722_v63  ;;  %4990 = vtanh.f32 %v2790_v18  ;;  %v2793_v21 = vld [vmem:[#allocation2 + $0x58] sm:$0xff]  ;;  %v3151_v23 = vpop.f32.mrb[99].mxu1 }
 0x1a0   :  { %v4981_v22 = vpop.eup %4980  ;;  %2781 = vst.msk [vmem:[#allocation2 + $0x78] sm:$0xff] %vm195_vm2, %v2765_v15  ;;  %4992 = vtanh.f32 %v2793_v21  ;;  %v2791_v24 = vld [vmem:[#allocation2 + $0x48] sm:$0xff] }
 0x1a1   :  { %v4983_v25 = vpop.eup %4982  ;;  %2779 = vst.msk [vmem:[#allocation2 + $0x68] sm:$0xff] %vm195_vm2, %v2763_v19  ;;  %4174 = vst.msk [vmem:[%s6157_s2 + $0x130] sm:$0xff] %vm195_vm2, %v4981_v22  ;;  %v4700_v26 = vpop.f32.mrb[100].mxu0  ;;  %v3213_v27 = vld [vmem:[#allocation2 + $0x10] sm:$0xff]  ;;  %4994 = vtanh.f32 %v2791_v24 }
 0x1a2   :  { %v4985_v28 = vpop.eup %4984  ;;  %3019 = vst.msk [vmem:[#allocation2 + $0x30] sm:$0xff] %vm195_vm2, %v4700_v26  ;;  %v3229_v29 = vadd.f32 %v4714_v13, %v3213_v27  ;;  %4172 = vst.msk [vmem:[%s6157_s2 + $0x120] sm:$0xff] %vm195_vm2, %v4983_v25  ;;  %v2966_v30 = vpop.f32.mrb[101].mxu0  ;;  %v3211_v31 = vld [vmem:[#allocation2] sm:$0xff] }
 0x1a3   :  { %v4987_v32 = vpop.eup %4986  ;;  %3017 = vst.msk [vmem:[#allocation2 + $0x20] sm:$0xff] %vm195_vm2, %v2966_v30  ;;  %v3227_v33 = vadd.f32 %v3211_v31, %v3148_v17  ;;  %4175 = vst.msk [vmem:[%s6157_s2 + $0x138] sm:$0xff] %vm195_vm2, %v4985_v28  ;;  %v4701_v34 = vpop.f32.mrb[102].mxu0  ;;  %v3214_v35 = vld [vmem:[#allocation2 + $0x18] sm:$0xff] }
 0x1a4   :  { %3245 = vst.msk [vmem:[#allocation2 + $0x10] sm:$0xff] %vm195_vm2, %v3229_v29  ;;  %3020 = vst.msk [vmem:[#allocation2 + $0x38] sm:$0xff] %vm195_vm2, %v4701_v34  ;;  %v3230_v36 = vadd.f32 %v4715_v20, %v3214_v35  ;;  %v2969_v37 = vpop.f32.mrb[103].mxu0  ;;  %v3212_v38 = vld [vmem:[#allocation2 + $0x8] sm:$0xff]  ;;  %v4718_v40 = vpop.f32.mrb[100].mxu1 }
 0x1a5   :  { %4173 = vst.msk [vmem:[%s6157_s2 + $0x128] sm:$0xff] %vm195_vm2, %v4987_v32  ;;  %3243 = vst.msk [vmem:[#allocation2] sm:$0xff] %vm195_vm2, %v3227_v33  ;;  %v3228_v39 = vadd.f32 %v3212_v38, %v3151_v23  ;;  %v2796_v41 = vld [vmem:[#allocation2 + $0x70] sm:$0xff]  ;;  %v3164_v42 = vpop.f32.mrb[101].mxu1 }
 0x1a6   :  { %3018 = vst.msk [vmem:[#allocation2 + $0x28] sm:$0xff] %vm195_vm2, %v2969_v37  ;;  %3246 = vst.msk [vmem:[#allocation2 + $0x18] sm:$0xff] %vm195_vm2, %v3230_v36  ;;  %4996 = vtanh.f32 %v2796_v41  ;;  %v2794_v43 = vld [vmem:[#allocation2 + $0x60] sm:$0xff]  ;;  %v4719_v44 = vpop.f32.mrb[102].mxu1 }
 0x1a7   :  { %3244 = vst.msk [vmem:[#allocation2 + $0x8] sm:$0xff] %vm195_vm2, %v3228_v39  ;;  %4998 = vtanh.f32 %v2794_v43  ;;  %v2797_v45 = vld [vmem:[#allocation2 + $0x78] sm:$0xff]  ;;  %v3167_v47 = vpop.f32.mrb[103].mxu1 }
 0x1a8   :  { %v4989_v46 = vpop.eup %4988  ;;  %5000 = vtanh.f32 %v2797_v45  ;;  %v2795_v48 = vld [vmem:[#allocation2 + $0x68] sm:$0xff] }
 0x1a9   :  { %v4991_v49 = vpop.eup %4990  ;;  %4178 = vst.msk [vmem:[%s6157_s2 + $0x150] sm:$0xff] %vm195_vm2, %v4989_v46  ;;  %v4704_v50 = vpop.f32.mrb[104].mxu0  ;;  %v3217_v51 = vld [vmem:[#allocation2 + $0x30] sm:$0xff]  ;;  %5002 = vtanh.f32 %v2795_v48 }
 0x1aa   :  { %v4993_v52 = vpop.eup %4992  ;;  %3023 = vst.msk [vmem:[#allocation2 + $0x50] sm:$0xff] %vm195_vm2, %v4704_v50  ;;  %v3233_v53 = vadd.f32 %v4718_v40, %v3217_v51  ;;  %4176 = vst.msk [vmem:[%s6157_s2 + $0x140] sm:$0xff] %vm195_vm2, %v4991_v49  ;;  %v2982_v54 = vpop.f32.mrb[105].mxu0  ;;  %v3215_v55 = vld [vmem:[#allocation2 + $0x20] sm:$0xff] }
 0x1ab   :  { %v4995_v56 = vpop.eup %4994  ;;  %3021 = vst.msk [vmem:[#allocation2 + $0x40] sm:$0xff] %vm195_vm2, %v2982_v54  ;;  %v3231_v57 = vadd.f32 %v3215_v55, %v3164_v42  ;;  %4179 = vst.msk [vmem:[%s6157_s2 + $0x158] sm:$0xff] %vm195_vm2, %v4993_v52  ;;  %v4705_v58 = vpop.f32.mrb[106].mxu0  ;;  %v3218_v59 = vld [vmem:[#allocation2 + $0x38] sm:$0xff]  ;;  %v3443_v26 = vld [vmem:[#allocation2 + $0x10] sm:$0xff] }
 0x1ac   :  { %3249 = vst.msk [vmem:[#allocation2 + $0x30] sm:$0xff] %vm195_vm2, %v3233_v53  ;;  %3024 = vst.msk [vmem:[#allocation2 + $0x58] sm:$0xff] %vm195_vm2, %v4705_v58  ;;  %v3234_v60 = vadd.f32 %v4719_v44, %v3218_v59  ;;  %v2985_v61 = vpop.f32.mrb[107].mxu0  ;;  %v4722_v0 = vpop.f32.mrb[104].mxu1  ;;  %v3441_v31 = vld [vmem:[#allocation2] sm:$0xff] }
 0x1ad   :  { %4177 = vst.msk [vmem:[%s6157_s2 + $0x148] sm:$0xff] %vm195_vm2, %v4995_v56  ;;  %v3216_v62 = vld [vmem:[#allocation2 + $0x28] sm:$0xff]  ;;  %3247 = vst.msk [vmem:[#allocation2 + $0x20] sm:$0xff] %vm195_vm2, %v3231_v57  ;;  %v3180_v1 = vpop.f32.mrb[105].mxu1  ;;  %v3444_v36 = vld [vmem:[#allocation2 + $0x18] sm:$0xff] }
 0x1ae   :  { %3022 = vst.msk [vmem:[#allocation2 + $0x48] sm:$0xff] %vm195_vm2, %v2985_v61  ;;  %v3232_v63 = vadd.f32 %v3216_v62, %v3167_v47  ;;  %3250 = vst.msk [vmem:[#allocation2 + $0x38] sm:$0xff] %vm195_vm2, %v3234_v60  ;;  %v4723_v2 = vpop.f32.mrb[106].mxu1  ;;  %v3442_v41 = vld [vmem:[#allocation2 + $0x8] sm:$0xff] }
 0x1af   :  { %v3183_v4 = vpop.f32.mrb[107].mxu1 }
 0x1b0   :  { %3248 = vst.msk [vmem:[#allocation2 + $0x28] sm:$0xff] %vm195_vm2, %v3232_v63  ;;  %v4997_v3 = vpop.eup %4996 }
 0x1b1   :  { %v4999_v5 = vpop.eup %4998  ;;  %4182 = vst.msk [vmem:[%s6157_s2 + $0x170] sm:$0xff] %vm195_vm2, %v4997_v3  ;;  %v4708_v6 = vpop.f32.mrb[108].mxu0  ;;  %v3221_v7 = vld [vmem:[#allocation2 + $0x50] sm:$0xff] }
 0x1b2   :  { %v5001_v8 = vpop.eup %5000  ;;  %3027 = vst.msk [vmem:[#allocation2 + $0x70] sm:$0xff] %vm195_vm2, %v4708_v6  ;;  %v3237_v9 = vadd.f32 %v4722_v0, %v3221_v7  ;;  %4180 = vst.msk [vmem:[%s6157_s2 + $0x160] sm:$0xff] %vm195_vm2, %v4999_v5  ;;  %v2998_v10 = vpop.f32.mrb[109].mxu0  ;;  %v3219_v11 = vld [vmem:[#allocation2 + $0x40] sm:$0xff] }
 0x1b3   :  { %v5003_v12 = vpop.eup %5002  ;;  %3025 = vst.msk [vmem:[#allocation2 + $0x60] sm:$0xff] %vm195_vm2, %v2998_v10  ;;  %v3235_v13 = vadd.f32 %v3219_v11, %v3180_v1  ;;  %4183 = vst.msk [vmem:[%s6157_s2 + $0x178] sm:$0xff] %vm195_vm2, %v5001_v8  ;;  %v4709_v14 = vpop.f32.mrb[110].mxu0  ;;  %v3222_v15 = vld [vmem:[#allocation2 + $0x58] sm:$0xff]  ;;  %v3447_v49 = vld [vmem:[#allocation2 + $0x30] sm:$0xff] }
 0x1b4   :  { %3253 = vst.msk [vmem:[#allocation2 + $0x50] sm:$0xff] %vm195_vm2, %v3237_v9  ;;  %3028 = vst.msk [vmem:[#allocation2 + $0x78] sm:$0xff] %vm195_vm2, %v4709_v14  ;;  %v3238_v16 = vadd.f32 %v4723_v2, %v3222_v15  ;;  %v3001_v17 = vpop.f32.mrb[111].mxu0  ;;  %v4726_v20 = vpop.f32.mrb[108].mxu1  ;;  %v3445_v52 = vld [vmem:[#allocation2 + $0x20] sm:$0xff] }
 0x1b5   :  { %4181 = vst.msk [vmem:[%s6157_s2 + $0x168] sm:$0xff] %vm195_vm2, %v5003_v12  ;;  %v3220_v18 = vld [vmem:[#allocation2 + $0x48] sm:$0xff]  ;;  %3251 = vst.msk [vmem:[#allocation2 + $0x40] sm:$0xff] %vm195_vm2, %v3235_v13  ;;  %v3196_v21 = vpop.f32.mrb[109].mxu1  ;;  %v3448_v56 = vld [vmem:[#allocation2 + $0x38] sm:$0xff] }
 0x1b6   :  { %3026 = vst.msk [vmem:[#allocation2 + $0x68] sm:$0xff] %vm195_vm2, %v3001_v17  ;;  %v3236_v19 = vadd.f32 %v3220_v18, %v3183_v4  ;;  %3254 = vst.msk [vmem:[#allocation2 + $0x58] sm:$0xff] %vm195_vm2, %v3238_v16  ;;  %v4727_v22 = vpop.f32.mrb[110].mxu1 }
 0x1b7   :  { %v3199_v23 = vpop.f32.mrb[111].mxu1  ;;  %v3446_v61 = vld [vmem:[#allocation2 + $0x28] sm:$0xff] }
 0x1b8   :  { %3252 = vst.msk [vmem:[#allocation2 + $0x48] sm:$0xff] %vm195_vm2, %v3236_v19 }
 0x1b9   :  { %v3225_v24 = vld [vmem:[#allocation2 + $0x70] sm:$0xff]  ;;  %v4732_v25 = vpop.f32.mrb[112].mxu0 }
 0x1ba   :  { %v3241_v27 = vadd.f32 %v4726_v20, %v3225_v24  ;;  %v3459_v28 = vadd.f32 %v4732_v25, %v3443_v26  ;;  %v3223_v29 = vld [vmem:[#allocation2 + $0x60] sm:$0xff]  ;;  %v3378_v30 = vpop.f32.mrb[113].mxu0 }
 0x1bb   :  { %v3239_v32 = vadd.f32 %v3223_v29, %v3196_v21  ;;  %v3457_v33 = vadd.f32 %v3441_v31, %v3378_v30  ;;  %v3226_v34 = vld [vmem:[#allocation2 + $0x78] sm:$0xff]  ;;  %v4733_v35 = vpop.f32.mrb[114].mxu0  ;;  %v4750_v44 = vpop.f32.mrb[112].mxu1  ;;  %v3451_v9 = vld [vmem:[#allocation2 + $0x50] sm:$0xff] }
 0x1bc   :  { %3257 = vst.msk [vmem:[#allocation2 + $0x70] sm:$0xff] %vm195_vm2, %v3241_v27  ;;  %3475 = vst.msk [vmem:[#allocation2 + $0x10] sm:$0xff] %vm195_vm2, %v3459_v28  ;;  %v3242_v37 = vadd.f32 %v4727_v22, %v3226_v34  ;;  %v3460_v38 = vadd.f32 %v4733_v35, %v3444_v36  ;;  %v3381_v40 = vpop.f32.mrb[115].mxu0  ;;  %v3609_v45 = vpop.f32.mrb[113].mxu1  ;;  %v3449_v12 = vld [vmem:[#allocation2 + $0x40] sm:$0xff] }
 0x1bd   :  { %v3224_v39 = vld [vmem:[#allocation2 + $0x68] sm:$0xff]  ;;  %3255 = vst.msk [vmem:[#allocation2 + $0x60] sm:$0xff] %vm195_vm2, %v3239_v32  ;;  %3473 = vst.msk [vmem:[#allocation2] sm:$0xff] %vm195_vm2, %v3457_v33  ;;  %v3458_v43 = vadd.f32 %v3442_v41, %v3381_v40  ;;  %v4751_v46 = vpop.f32.mrb[114].mxu1  ;;  %v3452_v16 = vld [vmem:[#allocation2 + $0x58] sm:$0xff] }
 0x1be   :  { %v3240_v42 = vadd.f32 %v3224_v39, %v3199_v23  ;;  %3258 = vst.msk [vmem:[#allocation2 + $0x78] sm:$0xff] %vm195_vm2, %v3242_v37  ;;  %3476 = vst.msk [vmem:[#allocation2 + $0x18] sm:$0xff] %vm195_vm2, %v3460_v38  ;;  %v3612_v47 = vpop.f32.mrb[115].mxu1 }
 0x1bf   :  { %3474 = vst.msk [vmem:[#allocation2 + $0x8] sm:$0xff] %vm195_vm2, %v3458_v43  ;;  %v3450_v21 = vld [vmem:[#allocation2 + $0x48] sm:$0xff] }
 0x1c0   :  { %3256 = vst.msk [vmem:[#allocation2 + $0x68] sm:$0xff] %vm195_vm2, %v3240_v42 }
 0x1c1   :  { %v4736_v48 = vpop.f32.mrb[116].mxu0 }
 0x1c2   :  { %v3463_v50 = vadd.f32 %v4736_v48, %v3447_v49  ;;  %v3394_v51 = vpop.f32.mrb[117].mxu0 }
 0x1c3   :  { %v3674_v53 = vld [vmem:[#allocation2 + $0x10] sm:$0xff]  ;;  %v3461_v54 = vadd.f32 %v3445_v52, %v3394_v51  ;;  %v4737_v55 = vpop.f32.mrb[118].mxu0  ;;  %v4754_v1 = vpop.f32.mrb[116].mxu1 }
 0x1c4   :  { %3479 = vst.msk [vmem:[#allocation2 + $0x30] sm:$0xff] %vm195_vm2, %v3463_v50  ;;  %v3690_v57 = vadd.f32 %v4750_v44, %v3674_v53  ;;  %v3672_v58 = vld [vmem:[#allocation2] sm:$0xff]  ;;  %v3464_v59 = vadd.f32 %v4737_v55, %v3448_v56  ;;  %v3397_v60 = vpop.f32.mrb[119].mxu0  ;;  %v3625_v4 = vpop.f32.mrb[117].mxu1  ;;  %v3455_v37 = vld [vmem:[#allocation2 + $0x70] sm:$0xff] }
 0x1c5   :  { %3477 = vst.msk [vmem:[#allocation2 + $0x20] sm:$0xff] %vm195_vm2, %v3461_v54  ;;  %v3688_v62 = vadd.f32 %v3672_v58, %v3609_v45  ;;  %v3675_v63 = vld [vmem:[#allocation2 + $0x18] sm:$0xff]  ;;  %v3462_v0 = vadd.f32 %v3446_v61, %v3397_v60  ;;  %v4755_v6 = vpop.f32.mrb[118].mxu1  ;;  %v3453_v40 = vld [vmem:[#allocation2 + $0x60] sm:$0xff] }
 0x1c6   :  { %3706 = vst.msk [vmem:[#allocation2 + $0x10] sm:$0xff] %vm195_vm2, %v3690_v57  ;;  %3480 = vst.msk [vmem:[#allocation2 + $0x38] sm:$0xff] %vm195_vm2, %v3464_v59  ;;  %v3691_v2 = vadd.f32 %v4751_v46, %v3675_v63  ;;  %v3673_v3 = vld [vmem:[#allocation2 + $0x8] sm:$0xff]  ;;  %v3628_v7 = vpop.f32.mrb[119].mxu1  ;;  %v3456_v44 = vld [vmem:[#allocation2 + $0x78] sm:$0xff] }
 0x1c7   :  { %3704 = vst.msk [vmem:[#allocation2] sm:$0xff] %vm195_vm2, %v3688_v62  ;;  %3478 = vst.msk [vmem:[#allocation2 + $0x28] sm:$0xff] %vm195_vm2, %v3462_v0  ;;  %v3689_v5 = vadd.f32 %v3673_v3, %v3612_v47  ;;  %v3454_v49 = vld [vmem:[#allocation2 + $0x68] sm:$0xff] }
 0x1c8   :  { %3707 = vst.msk [vmem:[#allocation2 + $0x18] sm:$0xff] %vm195_vm2, %v3691_v2 }
 0x1c9   :  { %3705 = vst.msk [vmem:[#allocation2 + $0x8] sm:$0xff] %vm195_vm2, %v3689_v5  ;;  %v4740_v8 = vpop.f32.mrb[120].mxu0 }
 0x1ca   :  { %v3467_v10 = vadd.f32 %v4740_v8, %v3451_v9  ;;  %v3410_v11 = vpop.f32.mrb[121].mxu0 }
 0x1cb   :  { %v3678_v13 = vld [vmem:[#allocation2 + $0x30] sm:$0xff]  ;;  %v3465_v14 = vadd.f32 %v3449_v12, %v3410_v11  ;;  %v4741_v15 = vpop.f32.mrb[122].mxu0  ;;  %v4758_v26 = vpop.f32.mrb[120].mxu1 }
 0x1cc   :  { %3483 = vst.msk [vmem:[#allocation2 + $0x50] sm:$0xff] %vm195_vm2, %v3467_v10  ;;  %v3694_v17 = vadd.f32 %v4754_v1, %v3678_v13  ;;  %v3676_v18 = vld [vmem:[#allocation2 + $0x20] sm:$0xff]  ;;  %v3468_v19 = vadd.f32 %v4741_v15, %v3452_v16  ;;  %v3413_v20 = vpop.f32.mrb[123].mxu0  ;;  %v3641_v30 = vpop.f32.mrb[121].mxu1 }
 0x1cd   :  { %v3722_v22 = vld [vmem:[#allocation2 + $0x10] sm:$0xff]  ;;  %3481 = vst.msk [vmem:[#allocation2 + $0x40] sm:$0xff] %vm195_vm2, %v3465_v14  ;;  %v3692_v23 = vadd.f32 %v3676_v18, %v3625_v4  ;;  %v3679_v24 = vld [vmem:[#allocation2 + $0x38] sm:$0xff]  ;;  %v3466_v25 = vadd.f32 %v3450_v21, %v3413_v20  ;;  %v4759_v33 = vpop.f32.mrb[122].mxu1 }
 0x1ce   :  { %5004 = vtanh.f32 %v3722_v22  ;;  %v3720_v27 = vld [vmem:[#allocation2] sm:$0xff]  ;;  %3710 = vst.msk [vmem:[#allocation2 + $0x30] sm:$0xff] %vm195_vm2, %v3694_v17  ;;  %3484 = vst.msk [vmem:[#allocation2 + $0x58] sm:$0xff] %vm195_vm2, %v3468_v19  ;;  %v3695_v28 = vadd.f32 %v4755_v6, %v3679_v24  ;;  %v3677_v29 = vld [vmem:[#allocation2 + $0x28] sm:$0xff]  ;;  %v3644_v35 = vpop.f32.mrb[123].mxu1 }
 0x1cf   :  { %5006 = vtanh.f32 %v3720_v27  ;;  %v3723_v31 = vld [vmem:[#allocation2 + $0x18] sm:$0xff]  ;;  %3708 = vst.msk [vmem:[#allocation2 + $0x20] sm:$0xff] %vm195_vm2, %v3692_v23  ;;  %3482 = vst.msk [vmem:[#allocation2 + $0x48] sm:$0xff] %vm195_vm2, %v3466_v25  ;;  %v3693_v32 = vadd.f32 %v3677_v29, %v3628_v7 }
 0x1d0   :  { %5008 = vtanh.f32 %v3723_v31  ;;  %v3721_v34 = vld [vmem:[#allocation2 + $0x8] sm:$0xff]  ;;  %3711 = vst.msk [vmem:[#allocation2 + $0x38] sm:$0xff] %vm195_vm2, %v3695_v28 }
 0x1d1   :  { %5010 = vtanh.f32 %v3721_v34  ;;  %3709 = vst.msk [vmem:[#allocation2 + $0x28] sm:$0xff] %vm195_vm2, %v3693_v32  ;;  %v4744_v36 = vpop.f32.mrb[124].mxu0 }
 0x1d2   :  { %v3471_v38 = vadd.f32 %v4744_v36, %v3455_v37  ;;  %v3426_v39 = vpop.f32.mrb[125].mxu0 }
 0x1d3   :  { %v3682_v41 = vld [vmem:[#allocation2 + $0x50] sm:$0xff]  ;;  %v3469_v42 = vadd.f32 %v3453_v40, %v3426_v39  ;;  %v4745_v43 = vpop.f32.mrb[126].mxu0  ;;  %v4762_v54 = vpop.f32.mrb[124].mxu1 }
 0x1d4   :  { %3487 = vst.msk [vmem:[#allocation2 + $0x70] sm:$0xff] %vm195_vm2, %v3471_v38  ;;  %v3698_v45 = vadd.f32 %v4758_v26, %v3682_v41  ;;  %v3680_v46 = vld [vmem:[#allocation2 + $0x40] sm:$0xff]  ;;  %v3472_v47 = vadd.f32 %v4745_v43, %v3456_v44  ;;  %v3429_v48 = vpop.f32.mrb[127].mxu0  ;;  %v3657_v58 = vpop.f32.mrb[125].mxu1 }
 0x1d5   :  { %v3726_v50 = vld [vmem:[#allocation2 + $0x30] sm:$0xff]  ;;  %3485 = vst.msk [vmem:[#allocation2 + $0x60] sm:$0xff] %vm195_vm2, %v3469_v42  ;;  %v3696_v51 = vadd.f32 %v3680_v46, %v3641_v30  ;;  %v3683_v52 = vld [vmem:[#allocation2 + $0x58] sm:$0xff]  ;;  %v3470_v53 = vadd.f32 %v3454_v49, %v3429_v48  ;;  %v4763_v61 = vpop.f32.mrb[126].mxu1 }
 0x1d6   :  { %5012 = vtanh.f32 %v3726_v50  ;;  %v3724_v55 = vld [vmem:[#allocation2 + $0x20] sm:$0xff]  ;;  %3714 = vst.msk [vmem:[#allocation2 + $0x50] sm:$0xff] %vm195_vm2, %v3698_v45  ;;  %3488 = vst.msk [vmem:[#allocation2 + $0x78] sm:$0xff] %vm195_vm2, %v3472_v47  ;;  %v3699_v56 = vadd.f32 %v4759_v33, %v3683_v52  ;;  %v3681_v57 = vld [vmem:[#allocation2 + $0x48] sm:$0xff]  ;;  %v3660_v0 = vpop.f32.mrb[127].mxu1 }
 0x1d7   :  { %5014 = vtanh.f32 %v3724_v55  ;;  %v3727_v59 = vld [vmem:[#allocation2 + $0x38] sm:$0xff]  ;;  %3712 = vst.msk [vmem:[#allocation2 + $0x40] sm:$0xff] %vm195_vm2, %v3696_v51  ;;  %3486 = vst.msk [vmem:[#allocation2 + $0x68] sm:$0xff] %vm195_vm2, %v3470_v53  ;;  %v3697_v60 = vadd.f32 %v3681_v57, %v3644_v35 }
 0x1d8   :  { %v5005_v62 = vpop.eup %5004  ;;  %5016 = vtanh.f32 %v3727_v59  ;;  %v3725_v63 = vld [vmem:[#allocation2 + $0x28] sm:$0xff]  ;;  %3715 = vst.msk [vmem:[#allocation2 + $0x58] sm:$0xff] %vm195_vm2, %v3699_v56 }
 0x1d9   :  { %v5007_v1 = vpop.eup %5006  ;;  %4318 = vst.msk [vmem:[%s6157_s2 + $0x190] sm:$0xff] %vm195_vm2, %v5005_v62  ;;  %5018 = vtanh.f32 %v3725_v63  ;;  %3713 = vst.msk [vmem:[#allocation2 + $0x48] sm:$0xff] %vm195_vm2, %v3697_v60 }
 0x1da   :  { %v5009_v2 = vpop.eup %5008  ;;  %4316 = vst.msk [vmem:[%s6157_s2 + $0x180] sm:$0xff] %vm195_vm2, %v5007_v1 }
 0x1db   :  { %v5011_v3 = vpop.eup %5010  ;;  %4319 = vst.msk [vmem:[%s6157_s2 + $0x198] sm:$0xff] %vm195_vm2, %v5009_v2  ;;  %v3686_v4 = vld [vmem:[#allocation2 + $0x70] sm:$0xff] }
 0x1dc   :  { %4317 = vst.msk [vmem:[%s6157_s2 + $0x188] sm:$0xff] %vm195_vm2, %v5011_v3  ;;  %v3702_v5 = vadd.f32 %v4762_v54, %v3686_v4  ;;  %v3684_v6 = vld [vmem:[#allocation2 + $0x60] sm:$0xff] }
 0x1dd   :  { %v3730_v7 = vld [vmem:[#allocation2 + $0x50] sm:$0xff]  ;;  %v3700_v8 = vadd.f32 %v3684_v6, %v3657_v58  ;;  %v3687_v9 = vld [vmem:[#allocation2 + $0x78] sm:$0xff] }
 0x1de   :  { %5020 = vtanh.f32 %v3730_v7  ;;  %v3728_v10 = vld [vmem:[#allocation2 + $0x40] sm:$0xff]  ;;  %3718 = vst.msk [vmem:[#allocation2 + $0x70] sm:$0xff] %vm195_vm2, %v3702_v5  ;;  %v3703_v11 = vadd.f32 %v4763_v61, %v3687_v9  ;;  %v3685_v12 = vld [vmem:[#allocation2 + $0x68] sm:$0xff] }
 0x1df   :  { %5022 = vtanh.f32 %v3728_v10  ;;  %v3731_v13 = vld [vmem:[#allocation2 + $0x58] sm:$0xff]  ;;  %3716 = vst.msk [vmem:[#allocation2 + $0x60] sm:$0xff] %vm195_vm2, %v3700_v8  ;;  %v3701_v14 = vadd.f32 %v3685_v12, %v3660_v0 }
 0x1e0   :  { %v5013_v15 = vpop.eup %5012  ;;  %5024 = vtanh.f32 %v3731_v13  ;;  %v3729_v16 = vld [vmem:[#allocation2 + $0x48] sm:$0xff]  ;;  %3719 = vst.msk [vmem:[#allocation2 + $0x78] sm:$0xff] %vm195_vm2, %v3703_v11 }
 0x1e1   :  { %v5015_v17 = vpop.eup %5014  ;;  %4322 = vst.msk [vmem:[%s6157_s2 + $0x1b0] sm:$0xff] %vm195_vm2, %v5013_v15  ;;  %5026 = vtanh.f32 %v3729_v16  ;;  %3717 = vst.msk [vmem:[#allocation2 + $0x68] sm:$0xff] %vm195_vm2, %v3701_v14 }
 0x1e2   :  { %v5017_v18 = vpop.eup %5016  ;;  %4320 = vst.msk [vmem:[%s6157_s2 + $0x1a0] sm:$0xff] %vm195_vm2, %v5015_v17 }
 0x1e3   :  { %v5019_v19 = vpop.eup %5018  ;;  %4323 = vst.msk [vmem:[%s6157_s2 + $0x1b8] sm:$0xff] %vm195_vm2, %v5017_v18 }
 0x1e4   :  { %4321 = vst.msk [vmem:[%s6157_s2 + $0x1a8] sm:$0xff] %vm195_vm2, %v5019_v19 }
 0x1e5   :  { %v3734_v20 = vld [vmem:[#allocation2 + $0x70] sm:$0xff] }
 0x1e6   :  { %5028 = vtanh.f32 %v3734_v20  ;;  %v3732_v21 = vld [vmem:[#allocation2 + $0x60] sm:$0xff] }
 0x1e7   :  { %5030 = vtanh.f32 %v3732_v21  ;;  %v3735_v22 = vld [vmem:[#allocation2 + $0x78] sm:$0xff] }
 0x1e8   :  { %v5021_v23 = vpop.eup %5020  ;;  %5032 = vtanh.f32 %v3735_v22  ;;  %v3733_v24 = vld [vmem:[#allocation2 + $0x68] sm:$0xff] }
 0x1e9   :  { %v5023_v25 = vpop.eup %5022  ;;  %4326 = vst.msk [vmem:[%s6157_s2 + $0x1d0] sm:$0xff] %vm195_vm2, %v5021_v23  ;;  %5034 = vtanh.f32 %v3733_v24 }
 0x1ea   :  { %v5025_v26 = vpop.eup %5024  ;;  %4324 = vst.msk [vmem:[%s6157_s2 + $0x1c0] sm:$0xff] %vm195_vm2, %v5023_v25 }
 0x1eb   :  { %v5027_v27 = vpop.eup %5026  ;;  %4327 = vst.msk [vmem:[%s6157_s2 + $0x1d8] sm:$0xff] %vm195_vm2, %v5025_v26 }
 0x1ec   :  { %4325 = vst.msk [vmem:[%s6157_s2 + $0x1c8] sm:$0xff] %vm195_vm2, %v5027_v27 }
 0x1f0   :  { %v5029_v28 = vpop.eup %5028 }
 0x1f1   :  { %v5031_v29 = vpop.eup %5030  ;;  %4330 = vst.msk [vmem:[%s6157_s2 + $0x1f0] sm:$0xff] %vm195_vm2, %v5029_v28 }
 0x1f2   :  { %v5033_v30 = vpop.eup %5032  ;;  %4328 = vst.msk [vmem:[%s6157_s2 + $0x1e0] sm:$0xff] %vm195_vm2, %v5031_v29 }
 0x1f3   :  { %v5035_v31 = vpop.eup %5034  ;;  %4331 = vst.msk [vmem:[%s6157_s2 + $0x1f8] sm:$0xff] %vm195_vm2, %v5033_v30 }
 0x1f4   :  { %4329 = vst.msk [vmem:[%s6157_s2 + $0x1e8] sm:$0xff] %vm195_vm2, %v5035_v31 }

</bundles_post_ra>
